<compile_context>
chip_gen: v5e
topology: v5e:2x2
jax: 0.10.0
libtpu: 0.0.40
codegen_flags: <defaults>
</compile_context>

<pallas_src>
import functools

import jax
import jax.numpy as jnp
from jax import lax
from jax.experimental import pallas as pl
from jax.experimental.pallas import tpu as pltpu


def _round_up(x, m):
    return (x + m - 1) // m * m


# ----------------------------------------------------------------------------
# Kernel
# ----------------------------------------------------------------------------
def _double_conv_kernel(x_ref, w1_ref, b1_ref, w2_ref, b2_ref, o_ref,
                        xpad_ref, mid_ref):
    """Fused (3x3 conv -> folded BN -> ReLU) x 2 for one NHWC image.

    x_ref:    (1, H, W, Cin)          un-padded f32 input image
    w1_ref:   (9*Cin_p, Cmid_p)       bf16, BN1 scale folded, row = k*Cin_p + c
    b1_ref:   (1, Cmid_p)             f32 folded bias
    w2_ref:   (9*Cmid_p, Cout_p)      bf16, BN2 scale folded
    b2_ref:   (1, Cout_p)             f32 folded bias
    o_ref:    (1, H, W, Cout_p)       f32 output (padded channels exactly 0)
    xpad_ref: VMEM (H+2, W+2, Cin_p)  f32 scratch: zero halo + channel pad
    mid_ref:  VMEM (H+2, W+2, Cmid_p) f32 scratch: padded layer-1 activation
    """
    _, H, W, Cout_p = o_ref.shape
    Cin = x_ref.shape[3]
    Cin_p = xpad_ref.shape[2]
    Cmid_p = mid_ref.shape[2]

    def conv3x3_bias_relu(src_ref, w_ref, b_ref):
        # im2col: 9 shifted (H*W, C) slabs concatenated along the lane axis ->
        # ONE MXU matmul with K = 9*C (vs 9 tiny-K dots).
        c = src_ref.shape[2]
        taps = [src_ref[dy:dy + H, dx:dx + W, :].reshape(H * W, c)
                for dy in range(3) for dx in range(3)]
        slab = jnp.concatenate(taps, axis=1).astype(jnp.bfloat16)
        acc = jnp.dot(slab, w_ref[...], preferred_element_type=jnp.float32)
        return jnp.maximum(acc + b_ref[...], 0.0)     # folded BN bias + ReLU

    # Build the zero-haloed (and channel-padded) input in VMEM: the input is
    # read from HBM exactly once, no host-side jnp.pad round trip.
    xv = x_ref[0]                                      # (H, W, Cin) f32
    if Cin_p > Cin:                                    # static Python branch
        xv = jnp.concatenate(
            [xv, jnp.zeros((H, W, Cin_p - Cin), xv.dtype)], axis=-1)
    xpad_ref[...] = jnp.zeros_like(xpad_ref)           # memset halo (+ pad ch.)
    xpad_ref[1:H + 1, 1:W + 1, :] = xv                 # interior store

    # Layer 1: conv -> +bias -> ReLU; result kept in VMEM with a fresh halo.
    y1 = conv3x3_bias_relu(xpad_ref, w1_ref, b1_ref)   # (H*W, Cmid_p) f32
    mid_ref[...] = jnp.zeros_like(mid_ref)
    mid_ref[1:H + 1, 1:W + 1, :] = y1.reshape(H, W, Cmid_p)

    # Layer 2: same, straight to the lane-dense output block.
    y2 = conv3x3_bias_relu(mid_ref, w2_ref, b2_ref)    # (H*W, Cout_p) f32
    o_ref[0] = y2.reshape(H, W, Cout_p).astype(o_ref.dtype)


# ----------------------------------------------------------------------------
# pallas_call wrapper
# ----------------------------------------------------------------------------
def _double_conv_nhwc_padded(x_nhwc, params):
    """Runs the fused kernel; returns the channel-padded (B,H,W,Cout_p) output."""
    B, H, W, Cin = x_nhwc.shape
    K1, Cmid_p = params["w1"].shape
    K2, Cout_p = params["w2"].shape
    Cin_p = K1 // 9
    assert K2 == 9 * Cmid_p

    return pl.pallas_call(
        _double_conv_kernel,
        out_shape=jax.ShapeDtypeStruct((B, H, W, Cout_p), jnp.float32),
        grid_spec=pltpu.PrefetchScalarGridSpec(
            num_scalar_prefetch=0,
            grid=(B,),                                 # one image per grid step
            in_specs=[
                pl.BlockSpec((1, H, W, Cin), lambda b: (b, 0, 0, 0)),
                pl.BlockSpec((K1, Cmid_p), lambda b: (0, 0)),
                pl.BlockSpec((1, Cmid_p), lambda b: (0, 0)),
                pl.BlockSpec((K2, Cout_p), lambda b: (0, 0)),
                pl.BlockSpec((1, Cout_p), lambda b: (0, 0)),
            ],
            out_specs=pl.BlockSpec((1, H, W, Cout_p), lambda b: (b, 0, 0, 0)),
            scratch_shapes=[
                pltpu.VMEM((H + 2, W + 2, Cin_p), jnp.float32),
                pltpu.VMEM((H + 2, W + 2, Cmid_p), jnp.float32),
            ],
        ),
        compiler_params=pltpu.CompilerParams(
            dimension_semantics=("parallel",),   # batch axis -> v7x 2-core split
            vmem_limit_bytes=32 * 1024 * 1024,   # safe on v5e/v6e/v7x; usage ~MBs
        ),
    )(x_nhwc, params["w1"], params["b1"], params["w2"], params["b2"])


@functools.partial(jax.jit, static_argnames=("out_ch",))
def double_conv_forward_nhwc(x_nhwc, params, *, out_ch):
    """NHWC fast path (no layout transposes) — use this inside an NHWC model."""
    return _double_conv_nhwc_padded(x_nhwc, params)[..., :out_ch]


@functools.partial(jax.jit, static_argnames=("out_ch",))
def double_conv_forward(x_nchw, params, *, out_ch):
    """PyTorch-interface wrapper: NCHW in / NCHW out.

    NOTE: for production keep the whole network NHWC end-to-end and call
    double_conv_forward_nhwc — the two transposes here are full HBM round
    trips kept only for NCHW interface parity with the nn.Module.
    """
    x_nhwc = jnp.transpose(x_nchw, (0, 2, 3, 1))
    y = _double_conv_nhwc_padded(x_nhwc, params)[..., :out_ch]
    return jnp.transpose(y, (0, 3, 1, 2))


# ----------------------------------------------------------------------------
# Parameter preparation (BN fold + channel padding + im2col weight layout)
# ----------------------------------------------------------------------------
def _fold_and_pack(w_pt, b_conv, gamma, beta, mean, var, cin_p, cout_p, eps):
    """PyTorch conv weight (Cout, Cin, 3, 3) + BN params -> MXU-ready operands.

    Returns:
      w: (9*cin_p, cout_p) bf16 — BN scale folded into the weights, zero-padded
         channels; row index = (ky*3 + kx)*cin_p + cin (kernel im2col order).
      b: (1, cout_p) f32 — folded bias beta + (conv_bias - mean)*scale, zero in
         padded channels so ReLU keeps them exactly 0.
    """
    cout, cin = w_pt.shape[0], w_pt.shape[1]
    scale = gamma / jnp.sqrt(var + eps)
    bias = beta + (b_conv - mean) * scale
    w = w_pt * scale[:, None, None, None]            # fold BN scale -> weights
    w = jnp.transpose(w, (2, 3, 1, 0))               # (3, 3, cin, cout)
    w = jnp.pad(w, ((0, 0), (0, 0), (0, cin_p - cin), (0, cout_p - cout)))
    w = w.reshape(9 * cin_p, cout_p).astype(jnp.bfloat16)
    b = jnp.pad(bias, (0, cout_p - cout)).reshape(1, cout_p).astype(jnp.float32)
    return w, b


def init_params(key, in_ch, out_ch, eps=1e-5):
    ks = jax.random.split(key, 12)

    def conv_init(kw, kb, cin, cout):
        bound = 1.0 / (cin * 9) ** 0.5               # PyTorch default conv init
        w = jax.random.uniform(kw, (cout, cin, 3, 3), jnp.float32, -bound, bound)
        b = jax.random.uniform(kb, (cout,), jnp.float32, -bound, bound)
        return w, b

    w1_pt, b1 = conv_init(ks[0], ks[1], in_ch, out_ch)
    w2_pt, b2 = conv_init(ks[2], ks[3], out_ch, out_ch)

    # Nontrivial BN parameters / running stats (inference semantics).
    g1 = jax.random.uniform(ks[4], (out_ch,), jnp.float32, 0.5, 1.5)
    be1 = jax.random.uniform(ks[5], (out_ch,), jnp.float32, -0.5, 0.5)
    m1 = 0.1 * jax.random.normal(ks[6], (out_ch,), jnp.float32)
    v1 = jax.random.uniform(ks[7], (out_ch,), jnp.float32, 0.8, 1.2)
    g2 = jax.random.uniform(ks[8], (out_ch,), jnp.float32, 0.5, 1.5)
    be2 = jax.random.uniform(ks[9], (out_ch,), jnp.float32, -0.5, 0.5)
    m2 = 0.1 * jax.random.normal(ks[10], (out_ch,), jnp.float32)
    v2 = jax.random.uniform(ks[11], (out_ch,), jnp.float32, 0.8, 1.2)

    cin_p = _round_up(in_ch, 8)       # sublane-friendly im2col pieces
    cmid_p = _round_up(out_ch, 128)   # lane-dense matmul N / store path
    cout_p = _round_up(out_ch, 128)

    w1, fb1 = _fold_and_pack(w1_pt, b1, g1, be1, m1, v1, cin_p, cmid_p, eps)
    w2, fb2 = _fold_and_pack(w2_pt, b2, g2, be2, m2, v2, cmid_p, cout_p, eps)

    params = dict(w1=w1, b1=fb1, w2=w2, b2=fb2)
    raw = dict(w1=w1_pt, b1=b1, g1=g1, be1=be1, m1=m1, v1=v1,
               w2=w2_pt, b2=b2, g2=g2, be2=be2, m2=m2, v2=v2)
    return params, raw


# ----------------------------------------------------------------------------
# References
# ----------------------------------------------------------------------------
def reference_forward_f32(x_nchw, raw, eps=1e-5):
    """Full-f32 PyTorch-semantics reference: (conv -> BN(eval) -> ReLU) x 2."""
    def layer(x, w, b, g, be, m, v):
        y = lax.conv_general_dilated(
            x, w, window_strides=(1, 1), padding=[(1, 1), (1, 1)],
            dimension_numbers=("NCHW", "OIHW", "NCHW"))
        y = y + b[None, :, None, None]
        y = (y - m[None, :, None, None]) / jnp.sqrt(v[None, :, None, None] + eps)
        y = y * g[None, :, None, None] + be[None, :, None, None]
        return jnp.maximum(y, 0.0)

    y = layer(x_nchw, raw["w1"], raw["b1"], raw["g1"], raw["be1"], raw["m1"], raw["v1"])
    y = layer(y, raw["w2"], raw["b2"], raw["g2"], raw["be2"], raw["m2"], raw["v2"])
    return y


def reference_forward_bf16(x_nhwc, params):
    """XLA reference mirroring the kernel numerics (folded bf16 weights, bf16
    MXU inputs, f32 accumulation) on the channel-padded NHWC layout."""
    cin_p = params["w1"].shape[0] // 9
    cmid_p = params["w1"].shape[1]
    cout_p = params["w2"].shape[1]
    cin = x_nhwc.shape[-1]
    x = jnp.pad(x_nhwc, ((0, 0), (0, 0), (0, 0), (0, cin_p - cin)))

    def layer(x, w_packed, b, ci, co):
        w = w_packed.reshape(3, 3, ci, co)               # HWIO
        y = lax.conv_general_dilated(
            x.astype(jnp.bfloat16), w, window_strides=(1, 1),
            padding=[(1, 1), (1, 1)],
            dimension_numbers=("NHWC", "HWIO", "NHWC"),
            preferred_element_type=jnp.float32)
        return jnp.maximum(y + b, 0.0)

    y1 = layer(x, params["w1"], params["b1"], cin_p, cmid_p)
    y2 = layer(y1, params["w2"], params["b2"], cmid_p, cout_p)
    return y2


# ----------------------------------------------------------------------------
# Test
# ----------------------------------------------------------------------------
if __name__ == "__main__":
    B, Cin, Cout, H, W = 2, 4, 8, 16, 16
    key = jax.random.PRNGKey(0)
    kx, kp = jax.random.split(key)
    x_nchw = jax.random.normal(kx, (B, Cin, H, W), jnp.float32)  # PyTorch NCHW

    params, raw = init_params(kp, Cin, Cout)

    out = double_conv_forward(x_nchw, params, out_ch=Cout)
    out = jax.block_until_ready(out)
    assert out.shape == (B, Cout, H, W)

    # 1) Strict check vs an XLA reference with identical numerics (same folded
    #    bf16 weights, bf16 activations into the MXU, f32 accumulation):
    #    verifies im2col ordering, halo handling and channel padding exactly.
    x_nhwc = jnp.transpose(x_nchw, (0, 2, 3, 1))
    out_pad = jax.block_until_ready(_double_conv_nhwc_padded(x_nhwc, params))
    ref_bf16 = reference_forward_bf16(x_nhwc, params)
    err_strict = float(jnp.max(jnp.abs(out_pad - ref_bf16)))
    assert jnp.allclose(out_pad, ref_bf16, atol=5e-3, rtol=5e-3), \
        f"strict (bf16-matched) max abs err {err_strict}"

    # 2) Semantics check vs the full-f32 PyTorch-style reference; tolerance
    #    covers bf16 rounding on the MXU path.
    ref_f32 = reference_forward_f32(x_nchw, raw)
    err_f32 = float(jnp.max(jnp.abs(out - ref_f32)))
    assert jnp.allclose(out, ref_f32, atol=5e-2, rtol=5e-2), \
        f"f32 max abs err {err_f32}"

    print("KERNEL_OK")
</pallas_src>

<mosaic_0001>
module attributes {stable_mosaic.version = 11 : i64} {
  func.func @_double_conv_kernel(%arg0: i32, %arg1: memref<1x16x16x4xf32, #tpu.memory_space<vmem>>, %arg2: memref<72x128xbf16, #tpu.memory_space<vmem>>, %arg3: memref<1x128xf32, #tpu.memory_space<vmem>>, %arg4: memref<1152x128xbf16, #tpu.memory_space<vmem>>, %arg5: memref<1x128xf32, #tpu.memory_space<vmem>>, %arg6: memref<1x16x16x128xf32, #tpu.memory_space<vmem>>, %arg7: memref<18x18x8xf32, #tpu.memory_space<vmem>>, %arg8: memref<18x18x128xf32, #tpu.memory_space<vmem>>) attributes {dimension_semantics = [#tpu.dimension_semantics<parallel>], iteration_bounds = array<i64: 2>, scalar_prefetch = 0 : i64, scratch_operands = 2 : i64, tpu.core_type = #tpu.core_type<tc>, window_params = [{transform_indices = @transform_0, window_bounds = array<i64: 1, 16, 16, 4>}, {pipeline_mode = #tpu.pipeline_mode<synchronous>, transform_indices = @transform_1, window_bounds = array<i64: 72, 128>}, {pipeline_mode = #tpu.pipeline_mode<synchronous>, transform_indices = @transform_2, window_bounds = array<i64: 1, 128>}, {pipeline_mode = #tpu.pipeline_mode<synchronous>, transform_indices = @transform_3, window_bounds = array<i64: 1152, 128>}, {pipeline_mode = #tpu.pipeline_mode<synchronous>, transform_indices = @transform_4, window_bounds = array<i64: 1, 128>}, {transform_indices = @transform_5, window_bounds = array<i64: 1, 16, 16, 128>}]} {
    %c0 = arith.constant 0 : index
    %c0_0 = arith.constant 0 : index
    %c0_1 = arith.constant 0 : index
    %c0_2 = arith.constant 0 : index
    %0 = vector.load %arg1[%c0, %c0_0, %c0_1, %c0_2] : memref<1x16x16x4xf32, #tpu.memory_space<vmem>>, vector<1x16x16x4xf32>
    %1 = vector.shape_cast %0 : vector<1x16x16x4xf32> to vector<16x16x4xf32>
    %cst = arith.constant 0.000000e+00 : f32
    %2 = vector.broadcast %cst : f32 to vector<16x16x4xf32>
    %3 = tpu.concatenate %1, %2 in 2 : vector<16x16x4xf32>, vector<16x16x4xf32> -> vector<16x16x8xf32>
    %cst_3 = arith.constant 0.000000e+00 : f32
    %4 = vector.broadcast %cst_3 : f32 to vector<18x18x8xf32>
    %c0_4 = arith.constant 0 : index
    %c0_5 = arith.constant 0 : index
    %c0_6 = arith.constant 0 : index
    %5 = vector.load %arg7[%c0_4, %c0_5, %c0_6] : memref<18x18x8xf32, #tpu.memory_space<vmem>>, vector<18x18x8xf32>
    tpu.vector_store %arg7[%c0_4, %c0_5, %c0_6], %4 {strides = array<i32>} : memref<18x18x8xf32, #tpu.memory_space<vmem>>, vector<18x18x8xf32>,
    %c1 = arith.constant 1 : index
    %c1_7 = arith.constant 1 : index
    %c0_8 = arith.constant 0 : index
    %6 = vector.load %arg7[%c1, %c1_7, %c0_8] : memref<18x18x8xf32, #tpu.memory_space<vmem>>, vector<16x16x8xf32>
    tpu.vector_store %arg7[%c1, %c1_7, %c0_8], %3 {strides = array<i32>} : memref<18x18x8xf32, #tpu.memory_space<vmem>>, vector<16x16x8xf32>,
    %c0_9 = arith.constant 0 : index
    %c0_10 = arith.constant 0 : index
    %c0_11 = arith.constant 0 : index
    %7 = vector.load %arg7[%c0_9, %c0_10, %c0_11] : memref<18x18x8xf32, #tpu.memory_space<vmem>>, vector<16x16x8xf32>
    %8 = vector.shape_cast %7 : vector<16x16x8xf32> to vector<256x8xf32>
    %c0_12 = arith.constant 0 : index
    %c1_13 = arith.constant 1 : index
    %c0_14 = arith.constant 0 : index
    %9 = vector.load %arg7[%c0_12, %c1_13, %c0_14] : memref<18x18x8xf32, #tpu.memory_space<vmem>>, vector<16x16x8xf32>
    %10 = vector.shape_cast %9 : vector<16x16x8xf32> to vector<256x8xf32>
    %c0_15 = arith.constant 0 : index
    %c2 = arith.constant 2 : index
    %c0_16 = arith.constant 0 : index
    %11 = vector.load %arg7[%c0_15, %c2, %c0_16] : memref<18x18x8xf32, #tpu.memory_space<vmem>>, vector<16x16x8xf32>
    %12 = vector.shape_cast %11 : vector<16x16x8xf32> to vector<256x8xf32>
    %c1_17 = arith.constant 1 : index
    %c0_18 = arith.constant 0 : index
    %c0_19 = arith.constant 0 : index
    %13 = vector.load %arg7[%c1_17, %c0_18, %c0_19] : memref<18x18x8xf32, #tpu.memory_space<vmem>>, vector<16x16x8xf32>
    %14 = vector.shape_cast %13 : vector<16x16x8xf32> to vector<256x8xf32>
    %c1_20 = arith.constant 1 : index
    %c1_21 = arith.constant 1 : index
    %c0_22 = arith.constant 0 : index
    %15 = vector.load %arg7[%c1_20, %c1_21, %c0_22] : memref<18x18x8xf32, #tpu.memory_space<vmem>>, vector<16x16x8xf32>
    %16 = vector.shape_cast %15 : vector<16x16x8xf32> to vector<256x8xf32>
    %c1_23 = arith.constant 1 : index
    %c2_24 = arith.constant 2 : index
    %c0_25 = arith.constant 0 : index
    %17 = vector.load %arg7[%c1_23, %c2_24, %c0_25] : memref<18x18x8xf32, #tpu.memory_space<vmem>>, vector<16x16x8xf32>
    %18 = vector.shape_cast %17 : vector<16x16x8xf32> to vector<256x8xf32>
    %c2_26 = arith.constant 2 : index
    %c0_27 = arith.constant 0 : index
    %c0_28 = arith.constant 0 : index
    %19 = vector.load %arg7[%c2_26, %c0_27, %c0_28] : memref<18x18x8xf32, #tpu.memory_space<vmem>>, vector<16x16x8xf32>
    %20 = vector.shape_cast %19 : vector<16x16x8xf32> to vector<256x8xf32>
    %c2_29 = arith.constant 2 : index
    %c1_30 = arith.constant 1 : index
    %c0_31 = arith.constant 0 : index
    %21 = vector.load %arg7[%c2_29, %c1_30, %c0_31] : memref<18x18x8xf32, #tpu.memory_space<vmem>>, vector<16x16x8xf32>
    %22 = vector.shape_cast %21 : vector<16x16x8xf32> to vector<256x8xf32>
    %c2_32 = arith.constant 2 : index
    %c2_33 = arith.constant 2 : index
    %c0_34 = arith.constant 0 : index
    %23 = vector.load %arg7[%c2_32, %c2_33, %c0_34] : memref<18x18x8xf32, #tpu.memory_space<vmem>>, vector<16x16x8xf32>
    %24 = vector.shape_cast %23 : vector<16x16x8xf32> to vector<256x8xf32>
    %25 = tpu.concatenate %8, %10, %12, %14, %16, %18, %20, %22, %24 in 1 : vector<256x8xf32>, vector<256x8xf32>, vector<256x8xf32>, vector<256x8xf32>, vector<256x8xf32>, vector<256x8xf32>, vector<256x8xf32>, vector<256x8xf32>, vector<256x8xf32> -> vector<256x72xf32>
    %26 = arith.truncf %25 : vector<256x72xf32> to vector<256x72xbf16>
    %c0_35 = arith.constant 0 : index
    %c0_36 = arith.constant 0 : index
    %27 = vector.load %arg2[%c0_35, %c0_36] : memref<72x128xbf16, #tpu.memory_space<vmem>>, vector<72x128xbf16>
    %cst_37 = arith.constant dense<0.000000e+00> : vector<256x128xf32>
    %28 = tpu.matmul %26, %27, %cst_37 {dimension_numbers = #tpu.dot_dimension_numbers<[1], [0], [0], [1], [0, 0, 1, 1], [], []>} : vector<256x72xbf16>, vector<72x128xbf16>, vector<256x128xf32> -> vector<256x128xf32>
    %c0_38 = arith.constant 0 : index
    %c0_39 = arith.constant 0 : index
    %29 = vector.load %arg3[%c0_38, %c0_39] : memref<1x128xf32, #tpu.memory_space<vmem>>, vector<1x128xf32>
    %30 = vector.broadcast %29 : vector<1x128xf32> to vector<256x128xf32>
    %31 = arith.addf %28, %30 : vector<256x128xf32>
    %cst_40 = arith.constant 0.000000e+00 : f32
    %32 = vector.broadcast %cst_40 : f32 to vector<256x128xf32>
    %33 = arith.maximumf %31, %32 : vector<256x128xf32>
    %cst_41 = arith.constant 0.000000e+00 : f32
    %34 = vector.broadcast %cst_41 : f32 to vector<18x18x128xf32>
    %c0_42 = arith.constant 0 : index
    %c0_43 = arith.constant 0 : index
    %c0_44 = arith.constant 0 : index
    %35 = vector.load %arg8[%c0_42, %c0_43, %c0_44] : memref<18x18x128xf32, #tpu.memory_space<vmem>>, vector<18x18x128xf32>
    tpu.vector_store %arg8[%c0_42, %c0_43, %c0_44], %34 {strides = array<i32>} : memref<18x18x128xf32, #tpu.memory_space<vmem>>, vector<18x18x128xf32>,
    %36 = vector.shape_cast %33 : vector<256x128xf32> to vector<16x16x128xf32>
    %c1_45 = arith.constant 1 : index
    %c1_46 = arith.constant 1 : index
    %c0_47 = arith.constant 0 : index
    %37 = vector.load %arg8[%c1_45, %c1_46, %c0_47] : memref<18x18x128xf32, #tpu.memory_space<vmem>>, vector<16x16x128xf32>
    tpu.vector_store %arg8[%c1_45, %c1_46, %c0_47], %36 {strides = array<i32>} : memref<18x18x128xf32, #tpu.memory_space<vmem>>, vector<16x16x128xf32>,
    %c0_48 = arith.constant 0 : index
    %c0_49 = arith.constant 0 : index
    %c0_50 = arith.constant 0 : index
    %38 = vector.load %arg8[%c0_48, %c0_49, %c0_50] : memref<18x18x128xf32, #tpu.memory_space<vmem>>, vector<16x16x128xf32>
    %39 = vector.shape_cast %38 : vector<16x16x128xf32> to vector<256x128xf32>
    %c0_51 = arith.constant 0 : index
    %c1_52 = arith.constant 1 : index
    %c0_53 = arith.constant 0 : index
    %40 = vector.load %arg8[%c0_51, %c1_52, %c0_53] : memref<18x18x128xf32, #tpu.memory_space<vmem>>, vector<16x16x128xf32>
    %41 = vector.shape_cast %40 : vector<16x16x128xf32> to vector<256x128xf32>
    %c0_54 = arith.constant 0 : index
    %c2_55 = arith.constant 2 : index
    %c0_56 = arith.constant 0 : index
    %42 = vector.load %arg8[%c0_54, %c2_55, %c0_56] : memref<18x18x128xf32, #tpu.memory_space<vmem>>, vector<16x16x128xf32>
    %43 = vector.shape_cast %42 : vector<16x16x128xf32> to vector<256x128xf32>
    %c1_57 = arith.constant 1 : index
    %c0_58 = arith.constant 0 : index
    %c0_59 = arith.constant 0 : index
    %44 = vector.load %arg8[%c1_57, %c0_58, %c0_59] : memref<18x18x128xf32, #tpu.memory_space<vmem>>, vector<16x16x128xf32>
    %45 = vector.shape_cast %44 : vector<16x16x128xf32> to vector<256x128xf32>
    %c1_60 = arith.constant 1 : index
    %c1_61 = arith.constant 1 : index
    %c0_62 = arith.constant 0 : index
    %46 = vector.load %arg8[%c1_60, %c1_61, %c0_62] : memref<18x18x128xf32, #tpu.memory_space<vmem>>, vector<16x16x128xf32>
    %47 = vector.shape_cast %46 : vector<16x16x128xf32> to vector<256x128xf32>
    %c1_63 = arith.constant 1 : index
    %c2_64 = arith.constant 2 : index
    %c0_65 = arith.constant 0 : index
    %48 = vector.load %arg8[%c1_63, %c2_64, %c0_65] : memref<18x18x128xf32, #tpu.memory_space<vmem>>, vector<16x16x128xf32>
    %49 = vector.shape_cast %48 : vector<16x16x128xf32> to vector<256x128xf32>
    %c2_66 = arith.constant 2 : index
    %c0_67 = arith.constant 0 : index
    %c0_68 = arith.constant 0 : index
    %50 = vector.load %arg8[%c2_66, %c0_67, %c0_68] : memref<18x18x128xf32, #tpu.memory_space<vmem>>, vector<16x16x128xf32>
    %51 = vector.shape_cast %50 : vector<16x16x128xf32> to vector<256x128xf32>
    %c2_69 = arith.constant 2 : index
    %c1_70 = arith.constant 1 : index
    %c0_71 = arith.constant 0 : index
    %52 = vector.load %arg8[%c2_69, %c1_70, %c0_71] : memref<18x18x128xf32, #tpu.memory_space<vmem>>, vector<16x16x128xf32>
    %53 = vector.shape_cast %52 : vector<16x16x128xf32> to vector<256x128xf32>
    %c2_72 = arith.constant 2 : index
    %c2_73 = arith.constant 2 : index
    %c0_74 = arith.constant 0 : index
    %54 = vector.load %arg8[%c2_72, %c2_73, %c0_74] : memref<18x18x128xf32, #tpu.memory_space<vmem>>, vector<16x16x128xf32>
    %55 = vector.shape_cast %54 : vector<16x16x128xf32> to vector<256x128xf32>
    %56 = tpu.concatenate %39, %41, %43, %45, %47, %49, %51, %53, %55 in 1 : vector<256x128xf32>, vector<256x128xf32>, vector<256x128xf32>, vector<256x128xf32>, vector<256x128xf32>, vector<256x128xf32>, vector<256x128xf32>, vector<256x128xf32>, vector<256x128xf32> -> vector<256x1152xf32>
    %57 = arith.truncf %56 : vector<256x1152xf32> to vector<256x1152xbf16>
    %c0_75 = arith.constant 0 : index
    %c0_76 = arith.constant 0 : index
    %58 = vector.load %arg4[%c0_75, %c0_76] : memref<1152x128xbf16, #tpu.memory_space<vmem>>, vector<1152x128xbf16>
    %cst_77 = arith.constant dense<0.000000e+00> : vector<256x128xf32>
    %59 = tpu.matmul %57, %58, %cst_77 {dimension_numbers = #tpu.dot_dimension_numbers<[1], [0], [0], [1], [0, 0, 1, 1], [], []>} : vector<256x1152xbf16>, vector<1152x128xbf16>, vector<256x128xf32> -> vector<256x128xf32>
    %c0_78 = arith.constant 0 : index
    %c0_79 = arith.constant 0 : index
    %60 = vector.load %arg5[%c0_78, %c0_79] : memref<1x128xf32, #tpu.memory_space<vmem>>, vector<1x128xf32>
    %61 = vector.broadcast %60 : vector<1x128xf32> to vector<256x128xf32>
    %62 = arith.addf %59, %61 : vector<256x128xf32>
    %cst_80 = arith.constant 0.000000e+00 : f32
    %63 = vector.broadcast %cst_80 : f32 to vector<256x128xf32>
    %64 = arith.maximumf %62, %63 : vector<256x128xf32>
    %65 = vector.shape_cast %64 : vector<256x128xf32> to vector<16x16x128xf32>
    %c0_81 = arith.constant 0 : index
    %c0_82 = arith.constant 0 : index
    %c0_83 = arith.constant 0 : index
    %c0_84 = arith.constant 0 : index
    %66 = vector.load %arg6[%c0_81, %c0_82, %c0_83, %c0_84] : memref<1x16x16x128xf32, #tpu.memory_space<vmem>>, vector<1x16x16x128xf32>
    %67 = vector.shape_cast %66 : vector<1x16x16x128xf32> to vector<16x16x128xf32>
    %68 = vector.shape_cast %65 : vector<16x16x128xf32> to vector<1x16x16x128xf32>
    tpu.vector_store %arg6[%c0_81, %c0_82, %c0_83, %c0_84], %68 {strides = array<i32>} : memref<1x16x16x128xf32, #tpu.memory_space<vmem>>, vector<1x16x16x128xf32>,
    return
  }
  func.func @transform_0(%arg0: i32) -> (i32, i32, i32, i32) {
    %c0_i32 = arith.constant 0 : i32
    %c0_i32_0 = arith.constant 0 : i32
    %c0_i32_1 = arith.constant 0 : i32
    %c0_i32_2 = arith.constant 0 : i32
    return %arg0, %c0_i32, %c0_i32_0, %c0_i32_1 : i32, i32, i32, i32
  }
  func.func @transform_1(%arg0: i32) -> (i32, i32) {
    %c0_i32 = arith.constant 0 : i32
    %c0_i32_0 = arith.constant 0 : i32
    %c0_i32_1 = arith.constant 0 : i32
    return %c0_i32, %c0_i32_0 : i32, i32
  }
  func.func @transform_2(%arg0: i32) -> (i32, i32) {
    %c0_i32 = arith.constant 0 : i32
    %c0_i32_0 = arith.constant 0 : i32
    %c0_i32_1 = arith.constant 0 : i32
    return %c0_i32, %c0_i32_0 : i32, i32
  }
  func.func @transform_3(%arg0: i32) -> (i32, i32) {
    %c0_i32 = arith.constant 0 : i32
    %c0_i32_0 = arith.constant 0 : i32
    %c0_i32_1 = arith.constant 0 : i32
    return %c0_i32, %c0_i32_0 : i32, i32
  }
  func.func @transform_4(%arg0: i32) -> (i32, i32) {
    %c0_i32 = arith.constant 0 : i32
    %c0_i32_0 = arith.constant 0 : i32
    %c0_i32_1 = arith.constant 0 : i32
    return %c0_i32, %c0_i32_0 : i32, i32
  }
  func.func @transform_5(%arg0: i32) -> (i32, i32, i32, i32) {
    %c0_i32 = arith.constant 0 : i32
    %c0_i32_0 = arith.constant 0 : i32
    %c0_i32_1 = arith.constant 0 : i32
    %c0_i32_2 = arith.constant 0 : i32
    return %arg0, %c0_i32, %c0_i32_0, %c0_i32_1 : i32, i32, i32, i32
  }
}

</mosaic_0001>

<bundles_post_ra>
// kernel: double_conv_forward.1
= control target key start
LH: loop header
LB: loop body
LE: loop exit
PB: predicated region body
PF: predicated region fallthrough
CT: control target
= control target key end

     0   :  { %s5338_s18 = smov 0   ;;  %s7448_s0 = inlined_call_operand.vmem [shape: f32[2,16,16,4], index: 0, kind: input, shape index: {}]   ;;  %s7449_s1 = inlined_call_operand.vmem [shape: bf16[72,128], index: 1, kind: input, shape index: {}]   ;;  %s7450_s2 = inlined_call_operand.vmem [shape: f32[1,128], index: 2, kind: input, shape index: {}]   ;;  %s7451_s3 = inlined_call_operand.vmem [shape: bf16[1152,128], index: 3, kind: input, shape index: {}]   ;;  %s7452_s4 = inlined_call_operand.vmem [shape: f32[1,128], index: 4, kind: input, shape index: {}]   ;;  %s7453_s5 = inlined_call_operand.vmem [shape: f32[2,16,16,128], index: 5, kind: output, shape index: {}]  }
   0x1 LB: > { %s4206_s19 = sadd.s32 4294967295, %s5297_s18   ;;  %p4210_p0 = scmp.ge.s32.totalorder %s5297_s18, 1  ;;  %s5297_s18 = sphi %s5338_s18, %s15_s18  }
   0x2   : > { %p187_p1 = scmp.lt.s32.totalorder %s5297_s18, 3 }
   0x4   : > { %p188_p2 = pnand %p4210_p0, %p187_p1 }
   0x6   : > { %191 = sbr.rel (%p188_p2) target bundleno = 1381 (0x565), region = 40 }
   0xb   : > { %vm291_vm0 = vcmask 64512   ;;  %vm294_vm1 = vcmask 58368   ;;  %v5299_v0 = vmov 0.0   ;;  %s5300_s20 = smov 8   ;;  %p215_p3 = scmp.lt.s32.totalorder %s4206_s19, 1  ;;  %vm258_vm2 = vcmask 31744  }
   0xc   : > { %292 = vst.msk [vmem:[#allocation2] sm:$0xff] %vm291_vm0, %v5299_v0  ;;  %s5301_s21 = smov 16   ;;  %s5302_s26 = smov 24   ;;  %vm2061_vm3 = vcmask 1043456   ;;  %vm1725_vm4 = vcmask 130048   ;;  %vm1758_vm5 = vcmask 195584  }
   0xd   : > { %293 = vst.msk [vmem:[#allocation2 + $0x8] sm:$0xff] %vm291_vm0, %v5299_v0  ;;  %s7678_s19 = smov (!%p215_p3, %s4206_s19), 1  ;;  %s5303_s27 = smov 40   ;;  %vm1791_vm6 = vcmask 261120   ;;  %vm1824_vm7 = vcmask 326656   ;;  %vm1857_vm8 = vcmask 392192  }
   0xe   : > { %295 = vst.msk [vmem:[#allocation2 + $0x10] sm:$0x3] %vm294_vm1, %v5299_v0  ;;  %s4537_s22 = sshll.u32 %s7678_s19, 8  ;;  %s5304_s28 = smov 56   ;;  %vm1890_vm9 = vcmask 457728   ;;  %vm1923_vm10 = vcmask 523264  }
   0xf   : > { %296 = vst.msk [vmem:[#allocation2 + $0x18] sm:$0xff] %vm291_vm0, %v5299_v0  ;;  %s5514_s25 = scalar_lea.vmem %s7448_s0, %s4537_s22  ;;  %s5305_s29 = smov 32   ;;  %vm2012_vm11 = vcmask 588800  }
  0x10   : > { %297 = vst.msk [vmem:[#allocation2 + $0x20] sm:$0xff] %vm291_vm0, %v5299_v0  ;;  %v226_v7 = vld [vmem:[%s5514_s25] sm:$0xff]  ;;  %v227_v8 = vld [vmem:[%s5514_s25 + $0x8] sm:$0xff]  ;;  %v228_v9 = vld [vmem:[%s5514_s25 + $0x10] sm:$0xff]  ;;  %s5306_s30 = smov 48   ;;  %s5307_s6 = smov 64  }
  0x11   : > { %298 = vst.msk [vmem:[#allocation2 + $0x28] sm:$0x3] %vm294_vm1, %v5299_v0  ;;  %v259_v10 = vsel %vm258_vm2, %v226_v7, 0.0  ;;  %v229_v11 = vld [vmem:[%s5514_s25 + $0x18] sm:$0xff]  ;;  %v260_v12 = vsel %vm258_vm2, %v227_v8, 0.0  ;;  %v261_v13 = vsel %vm258_vm2, %v228_v9, 0.0  ;;  %s7181_s11 = scalar_lea.vmem %s7453_s5, %s4537_s22 }
  0x12   : > { %299 = vst.msk [vmem:[#allocation2 + $0x30] sm:$0xff] %vm291_vm0, %v5299_v0  ;;  %v230_v14 = vld [vmem:[%s5514_s25 + $0x20] sm:$0xff]  ;;  %v231_v15 = vld [vmem:[%s5514_s25 + $0x28] sm:$0xff]  ;;  %v262_v16 = vsel %vm258_vm2, %v229_v11, 0.0  ;;  %v232_v33 = vld [vmem:[%s5514_s25 + $0x30] sm:$0xff] }
  0x13   : > { %300 = vst.msk [vmem:[#allocation2 + $0x38] sm:$0xff] %vm291_vm0, %v5299_v0  ;;  %v263_v17 = vsel %vm258_vm2, %v230_v14, 0.0  ;;  %v264_v18 = vsel %vm258_vm2, %v231_v15, 0.0  ;;  %v233_v34 = vld [vmem:[%s5514_s25 + $0x38] sm:$0xff]  ;;  %v265_v36 = vsel %vm258_vm2, %v232_v33, 0.0  ;;  %v234_v49 = vld [vmem:[%s5514_s25 + $0x40] sm:$0xff] }
  0x14   : > { %v412_v1 = vld [vmem:[#allocation2 + $0x1] sm:$0xff]  ;;  %301 = vst.msk [vmem:[#allocation2 + $0x40] sm:$0x3] %vm294_vm1, %v5299_v0  ;;  %v266_v37 = vsel %vm258_vm2, %v233_v34, 0.0  ;;  %v267_v52 = vsel %vm258_vm2, %v234_v49, 0.0  ;;  %v236_v62 = vld [vmem:[%s5514_s25 + $0x50] sm:$0xff] }
  0x15   : > { %v413_v2 = vld [vmem:[#allocation2 + $0x9] sm:$0xff]  ;;  %302 = vst.msk [vmem:[#allocation2 + $0x48] sm:$0xff] %vm291_vm0, %v5299_v0  ;;  %v237_v63 = vld [vmem:[%s5514_s25 + $0x58] sm:$0xff]  ;;  %v238_v8 = vld [vmem:[%s5514_s25 + $0x60] sm:$0xff] }
  0x16   : > { %v4645_v3 = vpack.i.bf16 %v413_v2, %v412_v1  ;;  %303 = vst.msk [vmem:[#allocation2 + $0x50] sm:$0xff] %vm291_vm0, %v5299_v0  ;;  %v444_v4 = vld [vmem:[#allocation2 + $0x2] sm:$0xff]  ;;  %v445_v5 = vld [vmem:[#allocation2 + $0xa] sm:$0xff]  ;;  %v270_v1 = vsel %vm258_vm2, %v237_v63, 0.0  ;;  %v271_v11 = vsel %vm258_vm2, %v238_v8, 0.0 }
  0x17   : > { %304 = vst.msk [vmem:[#allocation2 + $0x58] sm:$0x3] %vm294_vm1, %v5299_v0  ;;  %v4650_v6 = vpack.i.bf16 %v445_v5, %v444_v4  ;;  %v235_v50 = vld [vmem:[%s5514_s25 + $0x48] sm:$0xff] }
  0x18   : > { %4646 = vrot.lane.b32.xlu0 %v4645_v3, %s5300_s20  ;;  %305 = vst.msk [vmem:[#allocation2 + $0x60] sm:$0xff] %vm291_vm0, %v5299_v0  ;;  %v268_v53 = vsel %vm258_vm2, %v235_v50, 0.0  ;;  %v239_v9 = vld [vmem:[%s5514_s25 + $0x68] sm:$0xff] }
  0x19   : > { %306 = vst.msk [vmem:[#allocation2 + $0x68] sm:$0xff] %vm291_vm0, %v5299_v0 }
  0x1a   : > { %307 = vst.msk [vmem:[#allocation2 + $0x70] sm:$0x3] %vm294_vm1, %v5299_v0 }
  0x1b   : > { %308 = vst.msk [vmem:[#allocation2 + $0x78] sm:$0xff] %vm291_vm0, %v5299_v0 }
  0x1c   : > { %309 = vst.msk [vmem:[#allocation2 + $0x80] sm:$0xff] %vm291_vm0, %v5299_v0 }
  0x1d   : > { %310 = vst.msk [vmem:[#allocation2 + $0x88] sm:$0x3] %vm294_vm1, %v5299_v0 }
  0x1e   : > { %311 = vst.msk [vmem:[#allocation2 + $0x90] sm:$0xff] %vm291_vm0, %v5299_v0 }
  0x1f   : > { %312 = vst.msk [vmem:[#allocation2 + $0x98] sm:$0xff] %vm291_vm0, %v5299_v0 }
  0x20   : > { %313 = vst.msk [vmem:[#allocation2 + $0xa0] sm:$0x3] %vm294_vm1, %v5299_v0  ;;  %4651 = vrot.lane.b32.xlu0 %v4650_v6, %s5301_s21 }
  0x21   : > { %314 = vst.msk [vmem:[#allocation2 + $0xa8] sm:$0xff] %vm291_vm0, %v5299_v0 }
  0x22   : > { %315 = vst.msk [vmem:[#allocation2 + $0xb0] sm:$0xff] %vm291_vm0, %v5299_v0 }
  0x23   : > { %316 = vst.msk [vmem:[#allocation2 + $0xb8] sm:$0x3] %vm294_vm1, %v5299_v0 }
  0x24   : > { %317 = vst.msk [vmem:[#allocation2 + $0xc0] sm:$0xff] %vm291_vm0, %v5299_v0 }
  0x25   : > { %318 = vst.msk [vmem:[#allocation2 + $0xc8] sm:$0xff] %vm291_vm0, %v5299_v0 }
  0x26   : > { %319 = vst.msk [vmem:[#allocation2 + $0xd0] sm:$0x3] %vm294_vm1, %v5299_v0 }
  0x27   : > { %320 = vst.msk [vmem:[#allocation2 + $0xd8] sm:$0xff] %vm291_vm0, %v5299_v0 }
  0x28   : > { %321 = vst.msk [vmem:[#allocation2 + $0xe0] sm:$0xff] %vm291_vm0, %v5299_v0 }
  0x29   : > { %322 = vst.msk [vmem:[#allocation2 + $0xe8] sm:$0x3] %vm294_vm1, %v5299_v0 }
  0x2a   : > { %323 = vst.msk [vmem:[#allocation2 + $0xf0] sm:$0xff] %vm291_vm0, %v5299_v0 }
  0x2b   : > { %324 = vst.msk [vmem:[#allocation2 + $0xf8] sm:$0xff] %vm291_vm0, %v5299_v0 }
  0x2c   : > { %325 = vst.msk [vmem:[#allocation2 + $0x100] sm:$0x3] %vm294_vm1, %v5299_v0 }
  0x2d   : > { %326 = vst.msk [vmem:[#allocation2 + $0x108] sm:$0xff] %vm291_vm0, %v5299_v0 }
  0x2e   : > { %327 = vst.msk [vmem:[#allocation2 + $0x110] sm:$0xff] %vm291_vm0, %v5299_v0 }
  0x2f   : > { %328 = vst.msk [vmem:[#allocation2 + $0x118] sm:$0x3] %vm294_vm1, %v5299_v0 }
  0x30   : > { %329 = vst.msk [vmem:[#allocation2 + $0x120] sm:$0xff] %vm291_vm0, %v5299_v0 }
  0x31   : > { %330 = vst.msk [vmem:[#allocation2 + $0x128] sm:$0xff] %vm291_vm0, %v5299_v0 }
  0x32   : > { %331 = vst.msk [vmem:[#allocation2 + $0x130] sm:$0x3] %vm294_vm1, %v5299_v0 }
  0x33   : > { %332 = vst.msk [vmem:[#allocation2 + $0x138] sm:$0xff] %vm291_vm0, %v5299_v0 }
  0x34   : > { %333 = vst.msk [vmem:[#allocation2 + $0x140] sm:$0xff] %vm291_vm0, %v5299_v0 }
  0x35   : > { %334 = vst.msk [vmem:[#allocation2 + $0x148] sm:$0x3] %vm294_vm1, %v5299_v0 }
  0x36   : > { %335 = vst.msk [vmem:[#allocation2 + $0x150] sm:$0xff] %vm291_vm0, %v5299_v0 }
  0x37   : > { %336 = vst.msk [vmem:[#allocation2 + $0x158] sm:$0xff] %vm291_vm0, %v5299_v0 }
  0x38   : > { %337 = vst.msk [vmem:[#allocation2 + $0x160] sm:$0x3] %vm294_vm1, %v5299_v0 }
  0x39   : > { %338 = vst.msk [vmem:[#allocation2 + $0x168] sm:$0xff] %vm291_vm0, %v5299_v0 }
  0x3a   : > { %339 = vst.msk [vmem:[#allocation2 + $0x170] sm:$0xff] %vm291_vm0, %v5299_v0 }
  0x3b   : > { %340 = vst.msk [vmem:[#allocation2 + $0x178] sm:$0x3] %vm294_vm1, %v5299_v0 }
  0x3c   : > { %341 = vst.msk [vmem:[#allocation2 + $0x180] sm:$0xff] %vm291_vm0, %v5299_v0 }
  0x3d   : > { %342 = vst.msk [vmem:[#allocation2 + $0x188] sm:$0xff] %vm291_vm0, %v5299_v0 }
  0x3e   : > { %343 = vst.msk [vmem:[#allocation2 + $0x190] sm:$0x3] %vm294_vm1, %v5299_v0 }
  0x3f   : > { %344 = vst.msk [vmem:[#allocation2 + $0x198] sm:$0xff] %vm291_vm0, %v5299_v0 }
  0x40   : > { %345 = vst.msk [vmem:[#allocation2 + $0x1a0] sm:$0xff] %vm291_vm0, %v5299_v0 }
  0x41   : > { %346 = vst.msk [vmem:[#allocation2 + $0x1a8] sm:$0x3] %vm294_vm1, %v5299_v0 }
  0x42   : > { %2186 = vst [vmem:[#allocation3] sm:$0xff] %v5299_v0 }
  0x43   : > { %2187 = vst [vmem:[#allocation3 + $0x8] sm:$0xff] %v5299_v0 }
  0x44   : > { %2188 = vst [vmem:[#allocation3 + $0x10] sm:$0x3] %v5299_v0 }
  0x45   : > { %2189 = vst [vmem:[#allocation3 + $0x18] sm:$0xff] %v5299_v0 }
  0x46   : > { %2190 = vst [vmem:[#allocation3 + $0x20] sm:$0xff] %v5299_v0 }
  0x47   : > { %2191 = vst [vmem:[#allocation3 + $0x28] sm:$0x3] %v5299_v0 }
  0x48   : > { %2192 = vst [vmem:[#allocation3 + $0x30] sm:$0xff] %v5299_v0 }
  0x49   : > { %2193 = vst [vmem:[#allocation3 + $0x38] sm:$0xff] %v5299_v0 }
  0x4a   : > { %2194 = vst [vmem:[#allocation3 + $0x40] sm:$0x3] %v5299_v0 }
  0x4b   : > { %2195 = vst [vmem:[#allocation3 + $0x48] sm:$0xff] %v5299_v0 }
  0x4c   : > { %2196 = vst [vmem:[#allocation3 + $0x50] sm:$0xff] %v5299_v0 }
  0x4d   : > { %2197 = vst [vmem:[#allocation3 + $0x58] sm:$0x3] %v5299_v0 }
  0x4e   : > { %2198 = vst [vmem:[#allocation3 + $0x60] sm:$0xff] %v5299_v0 }
  0x4f   : > { %2199 = vst [vmem:[#allocation3 + $0x68] sm:$0xff] %v5299_v0 }
  0x50   : > { %2200 = vst [vmem:[#allocation3 + $0x70] sm:$0x3] %v5299_v0 }
  0x51   : > { %2201 = vst [vmem:[#allocation3 + $0x78] sm:$0xff] %v5299_v0 }
  0x52   : > { %2202 = vst [vmem:[#allocation3 + $0x80] sm:$0xff] %v5299_v0 }
  0x53   : > { %2203 = vst [vmem:[#allocation3 + $0x88] sm:$0x3] %v5299_v0 }
  0x54   : > { %2204 = vst [vmem:[#allocation3 + $0x90] sm:$0xff] %v5299_v0 }
  0x55   : > { %2205 = vst [vmem:[#allocation3 + $0x98] sm:$0xff] %v5299_v0 }
  0x56   : > { %2206 = vst [vmem:[#allocation3 + $0xa0] sm:$0x3] %v5299_v0 }
  0x57   : > { %2207 = vst [vmem:[#allocation3 + $0xa8] sm:$0xff] %v5299_v0 }
  0x58   : > { %2208 = vst [vmem:[#allocation3 + $0xb0] sm:$0xff] %v5299_v0 }
  0x59   : > { %2209 = vst [vmem:[#allocation3 + $0xb8] sm:$0x3] %v5299_v0 }
  0x5a   : > { %2210 = vst [vmem:[#allocation3 + $0xc0] sm:$0xff] %v5299_v0 }
  0x5b   : > { %2211 = vst [vmem:[#allocation3 + $0xc8] sm:$0xff] %v5299_v0 }
  0x5c   : > { %2212 = vst [vmem:[#allocation3 + $0xd0] sm:$0x3] %v5299_v0 }
  0x5d   : > { %2213 = vst [vmem:[#allocation3 + $0xd8] sm:$0xff] %v5299_v0 }
  0x5e   : > { %2214 = vst [vmem:[#allocation3 + $0xe0] sm:$0xff] %v5299_v0 }
  0x5f   : > { %2215 = vst [vmem:[#allocation3 + $0xe8] sm:$0x3] %v5299_v0 }
  0x60   : > { %2216 = vst [vmem:[#allocation3 + $0xf0] sm:$0xff] %v5299_v0 }
  0x61   : > { %2217 = vst [vmem:[#allocation3 + $0xf8] sm:$0xff] %v5299_v0 }
  0x62   : > { %2218 = vst [vmem:[#allocation3 + $0x100] sm:$0x3] %v5299_v0 }
  0x63   : > { %2219 = vst [vmem:[#allocation3 + $0x108] sm:$0xff] %v5299_v0 }
  0x64   : > { %2220 = vst [vmem:[#allocation3 + $0x110] sm:$0xff] %v5299_v0 }
  0x65   : > { %2221 = vst [vmem:[#allocation3 + $0x118] sm:$0x3] %v5299_v0 }
  0x66   : > { %2222 = vst [vmem:[#allocation3 + $0x120] sm:$0xff] %v5299_v0 }
  0x67   : > { %2223 = vst [vmem:[#allocation3 + $0x128] sm:$0xff] %v5299_v0 }
  0x68   : > { %2224 = vst [vmem:[#allocation3 + $0x130] sm:$0x3] %v5299_v0 }
  0x69   : > { %2225 = vst [vmem:[#allocation3 + $0x138] sm:$0xff] %v5299_v0 }
  0x6a   : > { %2226 = vst [vmem:[#allocation3 + $0x140] sm:$0xff] %v5299_v0 }
  0x6b   : > { %2227 = vst [vmem:[#allocation3 + $0x148] sm:$0x3] %v5299_v0 }
  0x6c   : > { %2228 = vst [vmem:[#allocation3 + $0x150] sm:$0xff] %v5299_v0 }
  0x6d   : > { %2229 = vst [vmem:[#allocation3 + $0x158] sm:$0xff] %v5299_v0 }
  0x6e   : > { %2230 = vst [vmem:[#allocation3 + $0x160] sm:$0x3] %v5299_v0 }
  0x6f   : > { %2231 = vst [vmem:[#allocation3 + $0x168] sm:$0xff] %v5299_v0 }
  0x70   : > { %2232 = vst [vmem:[#allocation3 + $0x170] sm:$0xff] %v5299_v0 }
  0x71   : > { %2233 = vst [vmem:[#allocation3 + $0x178] sm:$0x3] %v5299_v0 }
  0x72   : > { %2234 = vst [vmem:[#allocation3 + $0x180] sm:$0xff] %v5299_v0 }
  0x73   : > { %2235 = vst [vmem:[#allocation3 + $0x188] sm:$0xff] %v5299_v0 }
  0x74   : > { %2236 = vst [vmem:[#allocation3 + $0x190] sm:$0x3] %v5299_v0 }
  0x75   : > { %2237 = vst [vmem:[#allocation3 + $0x198] sm:$0xff] %v5299_v0 }
  0x76   : > { %2238 = vst [vmem:[#allocation3 + $0x1a0] sm:$0xff] %v5299_v0 }
  0x77   : > { %2239 = vst [vmem:[#allocation3 + $0x1a8] sm:$0x3] %v5299_v0  ;;  %v269_v0 = vsel %vm258_vm2, %v236_v62, 0.0 }
  0x78   : > { %348 = vst.msk [vmem:[#allocation2 + $0x19] sm:$0xff] %vm291_vm0, %v259_v10 }
  0x79   : > { %349 = vst.msk [vmem:[#allocation2 + $0x21] sm:$0xff] %vm291_vm0, %v260_v12  ;;  %v272_v12 = vsel %vm258_vm2, %v239_v9, 0.0 }
  0x7a   : > { %350 = vst.msk [vmem:[#allocation2 + $0x31] sm:$0xff] %vm291_vm0, %v261_v13 }
  0x7b   : > { %351 = vst.msk [vmem:[#allocation2 + $0x39] sm:$0xff] %vm291_vm0, %v262_v16  ;;  %v1980_v16 = vld [vmem:[%s7449_s1 + $0x20] sm:$0xf] }
  0x7c   : > { %352 = vst.msk [vmem:[#allocation2 + $0x49] sm:$0xff] %vm291_vm0, %v263_v17  ;;  %v2002_v17 = vunpack.c.l.b16 %v1980_v16 }
  0x7d   : > { %353 = vst.msk [vmem:[#allocation2 + $0x51] sm:$0xff] %vm291_vm0, %v264_v18 }
  0x7e   : > { %354 = vst.msk [vmem:[#allocation2 + $0x61] sm:$0xff] %vm291_vm0, %v265_v36  ;;  %v2007_v18 = vpack.c.b16 %v2002_v17, %v2002_v17  ;;  %v241_v36 = vld [vmem:[%s5514_s25 + $0x78] sm:$0xff] }
  0x7f   : > { %v5542_v19 = vld [vmem:[#allocation2 + $0x18] sm:$0xff]  ;;  %355 = vst.msk [vmem:[#allocation2 + $0x69] sm:$0xff] %vm291_vm0, %v266_v37 }
  0x80   : > { %v5544_v20 = vld [vmem:[#allocation2 + $0x20] sm:$0xff]  ;;  %356 = vst.msk [vmem:[#allocation2 + $0x79] sm:$0xff] %vm291_vm0, %v267_v52 }
  0x81   : > { %v446_v21 = vld [vmem:[#allocation2 + $0x1a] sm:$0xff]  ;;  %v4655_v22 = vpack.i.bf16 %v5544_v20, %v5542_v19  ;;  %v605_v23 = vld [vmem:[#allocation2 + $0x31] sm:$0xff]  ;;  %v447_v24 = vld [vmem:[#allocation2 + $0x22] sm:$0xff]  ;;  %357 = vst.msk [vmem:[#allocation2 + $0x81] sm:$0xff] %vm291_vm0, %v268_v53 }
  0x82   : > { %v606_v25 = vld [vmem:[#allocation2 + $0x39] sm:$0xff]  ;;  %v4690_v26 = vpack.i.bf16 %v447_v24, %v446_v21  ;;  %v509_v29 = vld [vmem:[#allocation2 + $0x21] sm:$0xff]  ;;  %v5551_v31 = vld [vmem:[#allocation2 + $0x30] sm:$0xff]  ;;  %358 = vst.msk [vmem:[#allocation2 + $0x91] sm:$0xff] %vm291_vm0, %v269_v0 }
  0x83   : > { %4656 = vrot.lane.b32.xlu1 %v4655_v22, %s5302_s26  ;;  %v4675_v27 = vpack.i.bf16 %v606_v25, %v605_v23  ;;  %v508_v28 = vld [vmem:[#allocation2 + $0x19] sm:$0xff]  ;;  %v5570_v44 = vld [vmem:[#allocation2 + $0x48] sm:$0xff]  ;;  %359 = vst.msk [vmem:[#allocation2 + $0x99] sm:$0xff] %vm291_vm0, %v270_v1  ;;  %v2063_v23 = vsel %vm2061_vm3, %v2007_v18, 0 }
  0x84   : > { %4666 = vrot.lane.b32.xlu2 %v4690_v26, %s5303_s27  ;;  %v4660_v30 = vpack.i.bf16 %v509_v29, %v508_v28  ;;  %v5553_v32 = vld [vmem:[#allocation2 + $0x38] sm:$0xff]  ;;  %v639_v41 = vld [vmem:[#allocation2 + $0x4a] sm:$0xff]  ;;  %360 = vst.msk [vmem:[#allocation2 + $0xa9] sm:$0xff] %vm291_vm0, %v271_v11  ;;  %2068 = vmatpush.bf16.msra.mxu0 %v2063_v23  ;;  %v242_v1 = vld [vmem:[%s5514_s25 + $0x80] sm:$0xff] }
  0x85   : > { %4676 = vrot.lane.b32.xlu0 %v4675_v27, %s5304_s28  ;;  %v4695_v35 = vpack.i.bf16 %v5553_v32, %v5551_v31  ;;  %v637_v38 = vld [vmem:[#allocation2 + $0x32] sm:$0xff]  ;;  %v638_v39 = vld [vmem:[#allocation2 + $0x3a] sm:$0xff]  ;;  %v512_v47 = vld [vmem:[#allocation2 + $0x49] sm:$0xff]  ;;  %361 = vst.msk [vmem:[#allocation2 + $0xb1] sm:$0xff] %vm291_vm0, %v272_v12  ;;  %4615 = vmatpush.bf16.msra.mxu3 %v2063_v23  ;;  %v275_v9 = vsel %vm258_vm2, %v242_v1, 0.0 }
  0x86   : > { %v4680_v40 = vpack.i.bf16 %v638_v39, %v637_v38  ;;  %v640_v42 = vld [vmem:[#allocation2 + $0x52] sm:$0xff]  ;;  %v5587_v54 = vld [vmem:[#allocation2 + $0x60] sm:$0xff]  ;;  %v5589_v55 = vld [vmem:[#allocation2 + $0x68] sm:$0xff]  ;;  %364 = vst.msk [vmem:[#allocation2 + $0xd9] sm:$0xff] %vm291_vm0, %v275_v9 }
  0x87   : > { %v4720_v43 = vpack.i.bf16 %v640_v42, %v639_v41  ;;  %v5572_v45 = vld [vmem:[#allocation2 + $0x50] sm:$0xff]  ;;  %v4750_v56 = vpack.i.bf16 %v5589_v55, %v5587_v54  ;;  %v609_v57 = vld [vmem:[#allocation2 + $0x61] sm:$0xff]  ;;  %v611_v3 = vld [vmem:[#allocation2 + $0x79] sm:$0xff] }
  0x88   : > { %v4710_v46 = vpack.i.bf16 %v5572_v45, %v5570_v44  ;;  %v513_v48 = vld [vmem:[#allocation2 + $0x51] sm:$0xff]  ;;  %v610_v58 = vld [vmem:[#allocation2 + $0x69] sm:$0xff]  ;;  %v612_v4 = vld [vmem:[#allocation2 + $0x81] sm:$0xff] }
  0x89   : > { %v4740_v51 = vpack.i.bf16 %v513_v48, %v512_v47  ;;  %v546_v59 = vld [vmem:[#allocation2 + $0x62] sm:$0xff]  ;;  %v4755_v60 = vpack.i.bf16 %v610_v58, %v609_v57  ;;  %v547_v61 = vld [vmem:[#allocation2 + $0x6a] sm:$0xff]  ;;  %v5608_v5 = vpack.i.bf16 %v612_v4, %v611_v3  ;;  %v5614_v6 = vld [vmem:[#allocation2 + $0x78] sm:$0xff] }
  0x8a   : > { %v4785_v2 = vpack.i.bf16 %v547_v61, %v546_v59  ;;  %v5616_v7 = vld [vmem:[#allocation2 + $0x80] sm:$0xff]  ;;  %v645_v21 = vld [vmem:[#allocation2 + $0x92] sm:$0xff]  ;;  %v4540_v38 = vld [vmem:[%s7449_s1 + $0x8] sm:$0xff]  ;;  %v4647_v41 = vpop.permute.xlu0 %4646 }
  0x8b   : > { %4661 = vrot.lane.b32.xlu1 %v4660_v30, %s5305_s29  ;;  %v4815_v10 = vpack.i.bf16 %v5616_v7, %v5614_v6  ;;  %v643_v13 = vld [vmem:[#allocation2 + $0x7a] sm:$0xff]  ;;  %v644_v14 = vld [vmem:[#allocation2 + $0x82] sm:$0xff]  ;;  %v4541_v29 = vld [vmem:[%s7449_s1 + $0x10] sm:$0xff]  ;;  %v4648_v57 = vunpack.i.l.bf16 %v4647_v41 }
  0x8c   : > { %4671 = vrot.lane.b32.xlu2 %v4695_v35, %s5306_s30  ;;  %v4800_v15 = vpack.i.bf16 %v644_v14, %v643_v13  ;;  %v646_v22 = vld [vmem:[#allocation2 + $0x9a] sm:$0xff]  ;;  %v518_v33 = vld [vmem:[#allocation2 + $0x91] sm:$0xff]  ;;  %v583_v42 = vld [vmem:[#allocation2 + $0xa8] sm:$0xff] }
  0x8d   : > { %4691 = vrot.lane.b32.xlu0 %v4690_v26, %s5301_s21  ;;  %v5635_v24 = vpack.i.bf16 %v646_v22, %v645_v21  ;;  %v4542_v25 = vld [vmem:[%s7449_s1 + $0x18] sm:$0xff]  ;;  %v581_v26 = vld [vmem:[#allocation2 + $0x90] sm:$0xff]  ;;  %v4539_v47 = vld [vmem:[%s7449_s1] sm:$0xff] }
  0x8e   : > { %2069 = vmatpush.bf16.msra.mxu0 %v4542_v25  ;;  %4616 = vmatpush.bf16.msra.mxu3 %v4542_v25  ;;  %v519_v34 = vld [vmem:[#allocation2 + $0x99] sm:$0xff]  ;;  %v615_v52 = vld [vmem:[#allocation2 + $0xa9] sm:$0xff]  ;;  %v616_v53 = vld [vmem:[#allocation2 + $0xb1] sm:$0xff] }
  0x8f   : > { %v4860_v37 = vpack.i.bf16 %v519_v34, %v518_v33  ;;  %v380_v59 = vld [vmem:[#allocation2] sm:$0xff]  ;;  %v5682_v62 = vpack.i.bf16 %v616_v53, %v615_v52  ;;  %v553_v0 = vld [vmem:[#allocation2 + $0xb2] sm:$0xff] }
  0x90   : > { %v1693_v8 = vsel %vm291_vm0, %v380_v59, %v4648_v57 }
  0x92   : > { %2070 = vmatpush.bf16.msra.mxu0 %v4541_v29  ;;  %4617 = vmatpush.bf16.msra.mxu3 %v4541_v29  ;;  %v4652_v49 = vpop.permute.xlu0 %4651 }
  0x93   : > { %4681 = vrot.lane.b32.xlu1 %v4680_v40, %s5307_s6  ;;  %v4654_v4 = vunpack.i.h.bf16 %v4652_v49 }
  0x94   : > { %4686 = vrot.lane.b32.xlu2 %v4660_v30, %s5300_s20 }
  0x95   : > { %4706 = vrot.lane.b32.xlu0 %v4680_v40, %s5303_s27 }
  0x96   : > { %2071 = vmatpush.bf16.msra.mxu0 %v4540_v38  ;;  %4618 = vmatpush.bf16.msra.mxu3 %v4540_v38 }
  0x9a   : > { %2072 = vmatpush.bf16.msra.mxu0 %v4539_v47  ;;  %4619 = vmatpush.bf16.msra.mxu3 %v4539_v47 }
  0x9b   : > { %4696 = vrot.lane.b32.xlu1 %v4695_v35, %s5302_s26  ;;  %v240_v35 = vld [vmem:[%s5514_s25 + $0x70] sm:$0xff] }
  0x9c   : > { %4701 = vrot.lane.b32.xlu2 %v4675_v27, %s5305_s29  ;;  %v273_v39 = vsel %vm258_vm2, %v240_v35, 0.0 }
  0x9d   : > { %4721 = vrot.lane.b32.xlu0 %v4720_v43, %s5307_s6  ;;  %362 = vst.msk [vmem:[#allocation2 + $0xc1] sm:$0xff] %vm291_vm0, %v273_v39 }
  0xa3   : > { %4711 = vrot.lane.b32.xlu1 %v4710_v46, %s5306_s30 }
  0xa4   : > { %4716 = vrot.lane.b32.xlu2 %v4740_v51, %s5304_s28  ;;  %v617_v21 = vld [vmem:[#allocation2 + $0xc1] sm:$0xff] }
  0xa5   : > { %4736 = vrot.lane.b32.xlu0 %v4710_v46, %s5302_s26  ;;  %v490_v53 = vld [vmem:[#allocation2 + $0xc0] sm:$0xff] }
  0xab   : > { %4726 = vrot.lane.b32.xlu1 %v4675_v27, %s5300_s20  ;;  %v582_v27 = vld [vmem:[#allocation2 + $0x98] sm:$0xff] }
  0xac   : > { %4731 = vrot.lane.b32.xlu2 %v4680_v40, %s5301_s21  ;;  %v4830_v30 = vpack.i.bf16 %v582_v27, %v581_v26  ;;  %v274_v40 = vsel %vm258_vm2, %v241_v36, 0.0 }
  0xad   : > { %4751 = vrot.lane.b32.xlu0 %v4750_v56, %s5306_s30  ;;  %363 = vst.msk [vmem:[#allocation2 + $0xc9] sm:$0xff] %vm291_vm0, %v274_v40 }
  0xb3   : > { %4741 = vrot.lane.b32.xlu1 %v4740_v51, %s5305_s29 }
  0xb4   : > { %4746 = vrot.lane.b32.xlu2 %v4720_v43, %s5303_s27  ;;  %v618_v22 = vld [vmem:[#allocation2 + $0xc9] sm:$0xff] }
  0xb5   : > { %4766 = vrot.lane.b32.xlu0 %v4740_v51, %s5300_s20  ;;  %v4649_v51 = vunpack.i.h.bf16 %v4647_v41  ;;  %v5714_v39 = vpack.i.bf16 %v618_v22, %v617_v21  ;;  %v650_v9 = vld [vmem:[#allocation2 + $0xca] sm:$0xff] }
  0xbb   : > { %4756 = vrot.lane.b32.xlu1 %v4755_v60, %s5304_s28 }
  0xbc   : > { %4761 = vrot.lane.b32.xlu2 %v4785_v2, %s5307_s6 }
  0xbd   : > { %4781 = vrot.lane.b32.xlu0 %v4755_v60, %s5305_s29 }
  0xc3   : > { %4771 = vrot.lane.b32.xlu1 %v4720_v43, %s5301_s21  ;;  %v584_v43 = vld [vmem:[#allocation2 + $0xb0] sm:$0xff] }
  0xc4   : > { %4776 = vrot.lane.b32.xlu2 %v4750_v56, %s5302_s26  ;;  %v5667_v48 = vpack.i.bf16 %v584_v43, %v583_v42  ;;  %v381_v56 = vld [vmem:[#allocation2 + $0x8] sm:$0xff] }
  0xc5   : > { %4796 = vrot.lane.b32.xlu0 %v5608_v5, %s5304_s28  ;;  %v1694_v3 = vsel %vm291_vm0, %v381_v56, %v4649_v51  ;;  %v491_v56 = vld [vmem:[#allocation2 + $0xc8] sm:$0xff] }
  0xc6   : > { %v1727_v13 = vsel %vm1725_vm4, %v1694_v3, %v4654_v4  ;;  %v4935_v1 = vpack.i.bf16 %v491_v56, %v490_v53  ;;  %v587_v56 = vld [vmem:[#allocation2 + $0xd8] sm:$0xff] }
  0xcb   : > { %4786 = vrot.lane.b32.xlu1 %v4785_v2, %s5303_s27 }
  0xcc   : > { %4791 = vrot.lane.b32.xlu2 %v4815_v10, %s5306_s30 }
  0xcd   : > { %4811 = vrot.lane.b32.xlu0 %v4785_v2, %s5301_s21  ;;  %v243_v2 = vld [vmem:[%s5514_s25 + $0x88] sm:$0xff] }
  0xd3   : > { %4801 = vrot.lane.b32.xlu1 %v4800_v15, %s5307_s6 }
  0xd4   : > { %4806 = vrot.lane.b32.xlu2 %v4755_v60, %s5300_s20  ;;  %v552_v60 = vld [vmem:[#allocation2 + $0xaa] sm:$0xff] }
  0xd5   : > { %4826 = vrot.lane.b32.xlu0 %v4800_v15, %s5303_s27  ;;  %v5690_v11 = vpack.i.bf16 %v553_v0, %v552_v60  ;;  %v245_v0 = vld [vmem:[%s5514_s25 + $0x98] sm:$0xff] }
  0xd6   : > { %v278_v3 = vsel %vm258_vm2, %v245_v0, 0.0 }
  0xd7   : > { %367 = vst.msk [vmem:[#allocation2 + $0xf9] sm:$0xff] %vm291_vm0, %v278_v3 }
  0xdb   : > { %4816 = vrot.lane.b32.xlu1 %v4815_v10, %s5302_s26  ;;  %v276_v10 = vsel %vm258_vm2, %v243_v2, 0.0 }
  0xdc   : > { %4821 = vrot.lane.b32.xlu2 %v5608_v5, %s5305_s29  ;;  %365 = vst.msk [vmem:[#allocation2 + $0xe1] sm:$0xff] %vm291_vm0, %v276_v10 }
  0xdd   : > { %4841 = vrot.lane.b32.xlu0 %v5635_v24, %s5307_s6 }
  0xde   : > { %v5645_v28 = vpop.permute.xlu2 %4666 }
  0xdf   : > { %v4669_v25 = vunpack.i.h.bf16 %v5645_v28  ;;  %v4668_v26 = vunpack.i.l.bf16 %v5645_v28 }
  0xe3   : > { %4831 = vrot.lane.b32.xlu1 %v4830_v30, %s5306_s30 }
  0xe4   : > { %4836 = vrot.lane.b32.xlu2 %v4860_v37, %s5304_s28 }
  0xe5   : > { %4856 = vrot.lane.b32.xlu0 %v4830_v30, %s5302_s26 }
  0xe6   : > { %v5662_v46 = vpop.permute.xlu2 %4671 }
  0xe7   : > { %v4674_v35 = vunpack.i.h.bf16 %v5662_v46  ;;  %v4673_v36 = vunpack.i.l.bf16 %v5662_v46 }
  0xeb   : > { %4846 = vrot.lane.b32.xlu1 %v5608_v5, %s5300_s20  ;;  %v4653_v5 = vunpack.i.l.bf16 %v4652_v49 }
  0xec   : > { %4851 = vrot.lane.b32.xlu2 %v4800_v15, %s5301_s21 }
  0xed   : > { %4871 = vrot.lane.b32.xlu0 %v5667_v48, %s5306_s30  ;;  %v1726_v12 = vsel %vm1725_vm4, %v1693_v8, %v4653_v5  ;;  %v649_v8 = vld [vmem:[#allocation2 + $0xc2] sm:$0xff] }
  0xee   : > { %v5674_v50 = vpop.permute.xlu2 %4686 }
  0xef   : > { %v4688_v59 = vunpack.i.l.bf16 %v5674_v50 }
  0xf3   : > { %4861 = vrot.lane.b32.xlu1 %v4860_v37, %s5305_s29 }
  0xf4   : > { %4866 = vrot.lane.b32.xlu2 %v5635_v24, %s5303_s27 }
  0xf5   : > { %v4657_v58 = vpop.permute.xlu1 %4656  ;;  %4886 = vrot.lane.b32.xlu0 %v4860_v37, %s5300_s20 }
  0xf6   : > { %v5680_v61 = vpop.permute.xlu2 %4701  ;;  %v4659_v14 = vunpack.i.h.bf16 %v4657_v58  ;;  %v4658_v15 = vunpack.i.l.bf16 %v4657_v58  ;;  %v4689_v58 = vunpack.i.h.bf16 %v5674_v50  ;;  %v1695_v50 = vsel %vm291_vm0, %v5542_v19, %v4688_v59 }
  0xf7   : > { %v4677_v63 = vpop.permute.xlu0 %4676  ;;  %v4704_v19 = vunpack.i.h.bf16 %v5680_v61  ;;  %v4703_v22 = vunpack.i.l.bf16 %v5680_v61 }
  0xf8   : > { %v1759_v27 = vsel %vm1758_vm5, %v1726_v12, %v4658_v15  ;;  %v1760_v29 = vsel %vm1758_vm5, %v1727_v13, %v4659_v14  ;;  %v4679_v28 = vunpack.i.h.bf16 %v4677_v63  ;;  %v4678_v40 = vunpack.i.l.bf16 %v4677_v63  ;;  %v244_v63 = vld [vmem:[%s5514_s25 + $0x90] sm:$0xff] }
  0xf9   : > { %v277_v2 = vsel %vm258_vm2, %v244_v63, 0.0  ;;  %v1696_v10 = vsel %vm291_vm0, %v5544_v20, %v4689_v58  ;;  %v525_v63 = vld [vmem:[#allocation2 + $0xe1] sm:$0xff] }
  0xfa   : > { %366 = vst.msk [vmem:[#allocation2 + $0xf1] sm:$0xff] %vm291_vm0, %v277_v2 }
  0xfb   : > { %4876 = vrot.lane.b32.xlu1 %v5682_v62, %s5304_s28 }
  0xfc   : > { %4881 = vrot.lane.b32.xlu2 %v5690_v11, %s5307_s6 }
  0xfd   : > { %v4662_v16 = vpop.permute.xlu1 %4661  ;;  %4901 = vrot.lane.b32.xlu0 %v5682_v62, %s5305_s29 }
  0xfe   : > { %v4664_v17 = vunpack.i.h.bf16 %v4662_v16  ;;  %v4663_v18 = vunpack.i.l.bf16 %v4662_v16  ;;  %v5702_v23 = vpop.permute.xlu2 %4716  ;;  %v5750_v16 = vpack.i.bf16 %v650_v9, %v649_v8  ;;  %v246_v8 = vld [vmem:[%s5514_s25 + $0xa0] sm:$0xff]  ;;  %v247_v9 = vld [vmem:[%s5514_s25 + $0xa8] sm:$0xff] }
  0xff   : > { %v4692_v30 = vpop.permute.xlu0 %4691  ;;  %v4718_v61 = vunpack.i.l.bf16 %v5702_v23 }
 0x100   : > { %v1792_v33 = vsel %vm1791_vm6, %v1759_v27, %v4663_v18  ;;  %v1793_v34 = vsel %vm1791_vm6, %v1760_v29, %v4664_v17  ;;  %v4694_v4 = vunpack.i.h.bf16 %v4692_v30  ;;  %v4693_v5 = vunpack.i.l.bf16 %v4692_v30 }
 0x101   : > { %v1825_v37 = vsel %vm1824_vm7, %v1792_v33, %v4668_v26  ;;  %v1826_v38 = vsel %vm1824_vm7, %v1793_v34, %v4669_v25  ;;  %v4719_v33 = vunpack.i.h.bf16 %v5702_v23 }
 0x102   : > { %v1858_v41 = vsel %vm1857_vm8, %v1825_v37, %v4673_v36  ;;  %v1859_v42 = vsel %vm1857_vm8, %v1826_v38, %v4674_v35  ;;  %v1728_v18 = vsel %vm1725_vm4, %v1695_v50, %v4693_v5  ;;  %v1729_v21 = vsel %vm1725_vm4, %v1696_v10, %v4694_v4  ;;  %v651_v38 = vld [vmem:[#allocation2 + $0xda] sm:$0xff] }
 0x103   : > { %4891 = vrot.lane.b32.xlu1 %v5635_v24, %s5301_s21  ;;  %v1891_v24 = vsel %vm1890_vm9, %v1858_v41, %v4678_v40  ;;  %v1892_v51 = vsel %vm1890_vm9, %v1859_v42, %v4679_v28  ;;  %v652_v28 = vld [vmem:[#allocation2 + $0xe2] sm:$0xff] }
 0x104   : > { %4896 = vrot.lane.b32.xlu2 %v5667_v48, %s5302_s26 }
 0x105   : > { %v4682_v43 = vpop.permute.xlu1 %4681  ;;  %4916 = vrot.lane.b32.xlu0 %v5714_v39, %s5304_s28 }
 0x106   : > { %v4684_v46 = vunpack.i.h.bf16 %v4682_v43  ;;  %v4683_v47 = vunpack.i.l.bf16 %v4682_v43  ;;  %v5724_v49 = vpop.permute.xlu2 %4731 }
 0x107   : > { %v4707_v52 = vpop.permute.xlu0 %4706  ;;  %v4734_v3 = vunpack.i.h.bf16 %v5724_v49  ;;  %v4733_v4 = vunpack.i.l.bf16 %v5724_v49 }
 0x108   : > { %v1924_v48 = vsel %vm1923_vm10, %v1891_v24, %v4683_v47  ;;  %v1925_v57 = vsel %vm1923_vm10, %v1892_v51, %v4684_v46  ;;  %v4708_v26 = vunpack.i.l.bf16 %v4707_v52  ;;  %v5776_v24 = vpack.i.bf16 %v652_v28, %v651_v38 }
 0x109   : > { %v1956_v60 = vpack.c.bf16 %v1925_v57, %v1924_v48  ;;  %v588_v48 = vld [vmem:[#allocation2 + $0xe0] sm:$0xff] }
 0x10b   : > { %4906 = vrot.lane.b32.xlu1 %v5690_v11, %s5303_s27  ;;  %4231 = vmatmul.msk.bf16.vlgmr.msra.gmra.mxu0 %vm2012_vm11, %v1956_v60  ;;  %v524_v60 = vld [vmem:[#allocation2 + $0xd9] sm:$0xff] }
 0x10c   : > { %4911 = vrot.lane.b32.xlu2 %v4935_v1, %s5306_s30  ;;  %v4980_v5 = vpack.i.bf16 %v525_v63, %v524_v60  ;;  %v558_v60 = vld [vmem:[#allocation2 + $0xf2] sm:$0xff] }
 0x10d   : > { %v4697_v12 = vpop.permute.xlu1 %4696  ;;  %4931 = vrot.lane.b32.xlu0 %v5690_v11, %s5301_s21  ;;  %v4709_v11 = vunpack.i.h.bf16 %v4707_v52 }
 0x10e   : > { %v4699_v13 = vunpack.i.h.bf16 %v4697_v12  ;;  %v4698_v14 = vunpack.i.l.bf16 %v4697_v12  ;;  %v5748_v15 = vpop.permute.xlu2 %4746  ;;  %v279_v12 = vsel %vm258_vm2, %v246_v8, 0.0  ;;  %v559_v8 = vld [vmem:[#allocation2 + $0xfa] sm:$0xff] }
 0x10f   : > { %v4722_v17 = vpop.permute.xlu0 %4721  ;;  %368 = vst.msk [vmem:[#allocation2 + $0x109] sm:$0xff] %vm291_vm0, %v279_v12 }
 0x110   : > { %v1761_v20 = vsel %vm1758_vm5, %v1728_v18, %v4698_v14  ;;  %v1762_v25 = vsel %vm1758_vm5, %v1729_v21, %v4699_v13  ;;  %v4724_v36 = vunpack.i.h.bf16 %v4722_v17  ;;  %v4723_v37 = vunpack.i.l.bf16 %v4722_v17 }
 0x111   : > { %v1794_v27 = vsel %vm1791_vm6, %v1761_v20, %v4703_v22  ;;  %v1795_v29 = vsel %vm1791_vm6, %v1762_v25, %v4704_v19  ;;  %v280_v13 = vsel %vm258_vm2, %v247_v9, 0.0  ;;  %v589_v19 = vld [vmem:[#allocation2 + $0xf0] sm:$0xff]  ;;  %v590_v22 = vld [vmem:[#allocation2 + $0xf8] sm:$0xff] }
 0x112   : > { %v1827_v41 = vsel %vm1824_vm7, %v1794_v27, %v4708_v26  ;;  %369 = vst.msk [vmem:[#allocation2 + $0x111] sm:$0xff] %vm291_vm0, %v280_v13  ;;  %v4749_v27 = vunpack.i.h.bf16 %v5748_v15  ;;  %v248_v9 = vld [vmem:[%s5514_s25 + $0xb0] sm:$0xff] }
 0x113   : > { %4921 = vrot.lane.b32.xlu1 %v5750_v16, %s5307_s6  ;;  %v281_v12 = vsel %vm258_vm2, %v248_v9, 0.0 }
 0x114   : > { %4926 = vrot.lane.b32.xlu2 %v5682_v62, %s5300_s20  ;;  %v1828_v62 = vsel %vm1824_vm7, %v1795_v29, %v4709_v11  ;;  %v4748_v29 = vunpack.i.l.bf16 %v5748_v15  ;;  %370 = vst.msk [vmem:[#allocation2 + $0x121] sm:$0xff] %vm291_vm0, %v281_v12 }
 0x115   : > { %v4712_v30 = vpop.permute.xlu1 %4711  ;;  %4946 = vrot.lane.b32.xlu0 %v5750_v16, %s5303_s27 }
 0x116   : > { %v4714_v34 = vunpack.i.h.bf16 %v4712_v30  ;;  %v4713_v35 = vunpack.i.l.bf16 %v4712_v30  ;;  %v5768_v40 = vpop.permute.xlu2 %4761 }
 0x117   : > { %v4737_v42 = vpop.permute.xlu0 %4736  ;;  %v4764_v15 = vunpack.i.h.bf16 %v5768_v40  ;;  %v4763_v28 = vunpack.i.l.bf16 %v5768_v40 }
 0x118   : > { %v1860_v43 = vsel %vm1857_vm8, %v1827_v41, %v4713_v35  ;;  %v1861_v23 = vsel %vm1857_vm8, %v1828_v62, %v4714_v34  ;;  %v4739_v14 = vunpack.i.h.bf16 %v4737_v42  ;;  %v4738_v17 = vunpack.i.l.bf16 %v4737_v42 }
 0x119   : > { %v1893_v46 = vsel %vm1890_vm9, %v1860_v43, %v4718_v61  ;;  %v1894_v47 = vsel %vm1890_vm9, %v1861_v23, %v4719_v33  ;;  %v5813_v61 = vpack.i.bf16 %v590_v22, %v589_v19  ;;  %v623_v19 = vld [vmem:[#allocation2 + $0x109] sm:$0xff]  ;;  %v624_v22 = vld [vmem:[#allocation2 + $0x111] sm:$0xff] }
 0x11a   : > { %v1926_v51 = vsel %vm1923_vm10, %v1893_v46, %v4723_v37  ;;  %v1927_v52 = vsel %vm1923_vm10, %v1894_v47, %v4724_v36 }
 0x11b   : > { %4936 = vrot.lane.b32.xlu1 %v4935_v1, %s5302_s26  ;;  %v1957_v53 = vpack.c.bf16 %v1927_v52, %v1926_v51  ;;  %v4950_v1 = vpack.i.bf16 %v588_v48, %v587_v56  ;;  %v621_v56 = vld [vmem:[#allocation2 + $0xf1] sm:$0xff]  ;;  %v622_v48 = vld [vmem:[#allocation2 + $0xf9] sm:$0xff] }
 0x11c   : > { %4941 = vrot.lane.b32.xlu2 %v5714_v39, %s5305_s29 }
 0x11d   : > { %v4727_v57 = vpop.permute.xlu1 %4726  ;;  %4232 = vmatmul.msk.bf16.gmra.mxu0 %vm2012_vm11, %v1957_v53  ;;  %4961 = vrot.lane.b32.xlu0 %v5776_v24, %s5307_s6 }
 0x11e   : > { %v4729_v58 = vunpack.i.h.bf16 %v4727_v57  ;;  %v4728_v59 = vunpack.i.l.bf16 %v4727_v57  ;;  %v5786_v0 = vpop.permute.xlu2 %4776 }
 0x11f   : > { %v4752_v2 = vpop.permute.xlu0 %4751 }
 0x120   : > { %v1698_v50 = vsel %vm291_vm0, %v5553_v32, %v4729_v58  ;;  %v1697_v10 = vsel %vm291_vm0, %v5551_v31, %v4728_v59  ;;  %v4754_v34 = vunpack.i.h.bf16 %v4752_v2  ;;  %v4753_v35 = vunpack.i.l.bf16 %v4752_v2 }
 0x121   : > { %v1731_v49 = vsel %vm1725_vm4, %v1698_v50, %v4734_v3  ;;  %v1730_v32 = vsel %vm1725_vm4, %v1697_v10, %v4733_v4  ;;  %v5844_v3 = vpack.i.bf16 %v622_v48, %v621_v56  ;;  %v249_v50 = vld [vmem:[%s5514_s25 + $0xb8] sm:$0xff]  ;;  %v4779_v10 = vunpack.i.h.bf16 %v5786_v0 }
 0x122   : > { %v1763_v11 = vsel %vm1758_vm5, %v1730_v32, %v4738_v17  ;;  %v1764_v26 = vsel %vm1758_vm5, %v1731_v49, %v4739_v14 }
 0x123   : > { %4951 = vrot.lane.b32.xlu1 %v4950_v1, %s5306_s30 }
 0x124   : > { %4956 = vrot.lane.b32.xlu2 %v4980_v5, %s5304_s28 }
 0x125   : > { %v4742_v18 = vpop.permute.xlu1 %4741  ;;  %4976 = vrot.lane.b32.xlu0 %v4950_v1, %s5302_s26 }
 0x126   : > { %v4744_v31 = vunpack.i.h.bf16 %v4742_v18  ;;  %v4743_v21 = vunpack.i.l.bf16 %v4742_v18  ;;  %v5805_v20 = vpop.permute.xlu2 %4791 }
 0x127   : > { %v4767_v25 = vpop.permute.xlu0 %4766 }
 0x128   : > { %v1796_v30 = vsel %vm1791_vm6, %v1763_v11, %v4743_v21  ;;  %v1797_v33 = vsel %vm1791_vm6, %v1764_v26, %v4744_v31  ;;  %v4769_v52 = vunpack.i.h.bf16 %v4767_v25  ;;  %v4768_v53 = vunpack.i.l.bf16 %v4767_v25 }
 0x129   : > { %v1829_v36 = vsel %vm1824_vm7, %v1796_v30, %v4748_v29  ;;  %v1830_v37 = vsel %vm1824_vm7, %v1797_v33, %v4749_v27  ;;  %v4794_v29 = vunpack.i.h.bf16 %v5805_v20  ;;  %v4793_v30 = vunpack.i.l.bf16 %v5805_v20 }
 0x12a   : > { %v1863_v43 = vsel %vm1857_vm8, %v1830_v37, %v4754_v34  ;;  %v1700_v1 = vsel %vm291_vm0, %v5572_v45, %v4769_v52  ;;  %v1699_v2 = vsel %vm291_vm0, %v5570_v44, %v4768_v53  ;;  %v5853_v45 = vpack.i.bf16 %v559_v8, %v558_v60  ;;  %v250_v52 = vld [vmem:[%s5514_s25 + $0xc0] sm:$0xff]  ;;  %v251_v53 = vld [vmem:[%s5514_s25 + $0xc8] sm:$0xff] }
 0x12b   : > { %4966 = vrot.lane.b32.xlu1 %v5714_v39, %s5300_s20  ;;  %v1862_v39 = vsel %vm1857_vm8, %v1829_v36, %v4753_v35  ;;  %v282_v44 = vsel %vm258_vm2, %v249_v50, 0.0  ;;  %v5874_v35 = vpack.i.bf16 %v624_v22, %v623_v19  ;;  %v283_v48 = vsel %vm258_vm2, %v250_v52, 0.0  ;;  %v655_v60 = vld [vmem:[#allocation2 + $0x10a] sm:$0xff]  ;;  %v4546_v52 = vld [vmem:[%s7451_s3 + $0x18] sm:$0xff] }
 0x12c   : > { %4971 = vrot.lane.b32.xlu2 %v5750_v16, %s5301_s21  ;;  %371 = vst.msk [vmem:[#allocation2 + $0x129] sm:$0xff] %vm291_vm0, %v282_v44 }
 0x12d   : > { %v4757_v38 = vpop.permute.xlu1 %4756  ;;  %4991 = vrot.lane.b32.xlu0 %v5813_v61, %s5306_s30  ;;  %372 = vst.msk [vmem:[#allocation2 + $0x139] sm:$0xff] %vm291_vm0, %v283_v48 }
 0x12e   : > { %v4759_v41 = vunpack.i.h.bf16 %v4757_v38  ;;  %v4758_v62 = vunpack.i.l.bf16 %v4757_v38  ;;  %v5825_v42 = vpop.permute.xlu2 %4806 }
 0x12f   : > { %v4782_v23 = vpop.permute.xlu0 %4781 }
 0x130   : > { %v1895_v46 = vsel %vm1890_vm9, %v1862_v39, %v4758_v62  ;;  %v1896_v16 = vsel %vm1890_vm9, %v1863_v43, %v4759_v41  ;;  %v4784_v17 = vunpack.i.h.bf16 %v4782_v23  ;;  %v4783_v49 = vunpack.i.l.bf16 %v4782_v23  ;;  %v496_v23 = vld [vmem:[#allocation2 + $0x108] sm:$0xff] }
 0x131   : > { %v1928_v47 = vsel %vm1923_vm10, %v1895_v46, %v4763_v28  ;;  %v1929_v40 = vsel %vm1923_vm10, %v1896_v16, %v4764_v15  ;;  %v497_v46 = vld [vmem:[#allocation2 + $0x110] sm:$0xff] }
 0x132   : > { %v1958_v51 = vpack.c.bf16 %v1929_v40, %v1928_v47  ;;  %v4809_v47 = vunpack.i.h.bf16 %v5825_v42  ;;  %v4808_v40 = vunpack.i.l.bf16 %v5825_v42  ;;  %v5896_v56 = vpack.i.bf16 %v497_v46, %v496_v23  ;;  %v656_v42 = vld [vmem:[#allocation2 + $0x112] sm:$0xff] }
 0x133   : > { %4981 = vrot.lane.b32.xlu1 %v4980_v5, %s5305_s29  ;;  %v594_v23 = vld [vmem:[#allocation2 + $0x128] sm:$0xff] }
 0x134   : > { %4233 = vmatmul.msk.bf16.gmra.mxu0 %vm2012_vm11, %v1958_v51  ;;  %4986 = vrot.lane.b32.xlu2 %v5776_v24, %s5303_s27 }
 0x135   : > { %v4772_v57 = vpop.permute.xlu1 %4771  ;;  %5006 = vrot.lane.b32.xlu0 %v4980_v5, %s5300_s20  ;;  %v4778_v5 = vunpack.i.l.bf16 %v5786_v0 }
 0x136   : > { %v4774_v58 = vunpack.i.h.bf16 %v4772_v57  ;;  %v4773_v59 = vunpack.i.l.bf16 %v4772_v57  ;;  %v5838_v63 = vpop.permute.xlu2 %4821  ;;  %v284_v57 = vsel %vm258_vm2, %v251_v53, 0.0 }
 0x137   : > { %v4797_v4 = vpop.permute.xlu0 %4796  ;;  %373 = vst.msk [vmem:[#allocation2 + $0x141] sm:$0xff] %vm291_vm0, %v284_v57 }
 0x138   : > { %v1732_v13 = vsel %vm1725_vm4, %v1699_v2, %v4773_v59  ;;  %v1733_v14 = vsel %vm1725_vm4, %v1700_v1, %v4774_v58  ;;  %v4799_v36 = vunpack.i.h.bf16 %v4797_v4  ;;  %v4798_v37 = vunpack.i.l.bf16 %v4797_v4 }
 0x139   : > { %v1766_v0 = vsel %vm1758_vm5, %v1733_v14, %v4779_v10  ;;  %v1765_v32 = vsel %vm1758_vm5, %v1732_v13, %v4778_v5  ;;  %v1702_v1 = vsel %vm291_vm0, %v5589_v55, %v4809_v47  ;;  %v1701_v2 = vsel %vm291_vm0, %v5587_v54, %v4808_v40  ;;  %v4550_v10 = vld [vmem:[%s7451_s3 + $0x38] sm:$0xff]  ;;  %v530_v47 = vld [vmem:[#allocation2 + $0x121] sm:$0xff]  ;;  %v531_v40 = vld [vmem:[#allocation2 + $0x129] sm:$0xff] }
 0x13a   : > { %v1798_v26 = vsel %vm1791_vm6, %v1765_v32, %v4783_v49  ;;  %v1799_v27 = vsel %vm1791_vm6, %v1766_v0, %v4784_v17  ;;  %v5918_v5 = vpack.i.bf16 %v656_v42, %v655_v60  ;;  %v4824_v54 = vunpack.i.h.bf16 %v5838_v63  ;;  %3286 = vmatpush.bf16.msra.mxu1 %v4550_v10  ;;  %4620 = vmatpush.bf16.msra.mxu2 %v4550_v10  ;;  %v4549_v17 = vld [vmem:[%s7451_s3 + $0x30] sm:$0xff]  ;;  %v253_v60 = vld [vmem:[%s5514_s25 + $0xd8] sm:$0xff] }
 0x13b   : > { %4996 = vrot.lane.b32.xlu1 %v5844_v3, %s5304_s28  ;;  %v4823_v14 = vunpack.i.l.bf16 %v5838_v63 }
 0x13c   : > { %5001 = vrot.lane.b32.xlu2 %v5853_v45, %s5307_s6 }
 0x13d   : > { %v4787_v18 = vpop.permute.xlu1 %4786  ;;  %5021 = vrot.lane.b32.xlu0 %v5844_v3, %s5305_s29 }
 0x13e   : > { %v4789_v31 = vunpack.i.h.bf16 %v4787_v18  ;;  %v4788_v21 = vunpack.i.l.bf16 %v4787_v18  ;;  %v5866_v25 = vpop.permute.xlu2 %4836  ;;  %3287 = vmatpush.bf16.msra.mxu1 %v4549_v17  ;;  %4621 = vmatpush.bf16.msra.mxu2 %v4549_v17 }
 0x13f   : > { %v4812_v11 = vpop.permute.xlu0 %4811 }
 0x140   : > { %v1831_v33 = vsel %vm1824_vm7, %v1798_v26, %v4788_v21  ;;  %v1832_v34 = vsel %vm1824_vm7, %v1799_v27, %v4789_v31  ;;  %v4814_v58 = vunpack.i.h.bf16 %v4812_v11  ;;  %v4813_v59 = vunpack.i.l.bf16 %v4812_v11  ;;  %v657_v27 = vld [vmem:[#allocation2 + $0x122] sm:$0xff] }
 0x141   : > { %v1864_v38 = vsel %vm1857_vm8, %v1831_v33, %v4793_v30  ;;  %v1865_v15 = vsel %vm1857_vm8, %v1832_v34, %v4794_v29  ;;  %v4839_v31 = vunpack.i.h.bf16 %v5866_v25  ;;  %v4838_v21 = vunpack.i.l.bf16 %v5866_v25  ;;  %v658_v29 = vld [vmem:[#allocation2 + $0x12a] sm:$0xff] }
 0x142   : > { %v1897_v39 = vsel %vm1890_vm9, %v1864_v38, %v4798_v37  ;;  %v1734_v55 = vsel %vm1725_vm4, %v1701_v2, %v4813_v59  ;;  %v1735_v13 = vsel %vm1725_vm4, %v1702_v1, %v4814_v58  ;;  %v5975_v58 = vpack.i.bf16 %v531_v40, %v530_v47  ;;  %v252_v59 = vld [vmem:[%s5514_s25 + $0xd0] sm:$0xff] }
 0x143   : > { %5011 = vrot.lane.b32.xlu1 %v5776_v24, %s5301_s21  ;;  %v1898_v24 = vsel %vm1890_vm9, %v1865_v15, %v4799_v36  ;;  %v4545_v2 = vld [vmem:[%s7451_s3 + $0x10] sm:$0xff] }
 0x144   : > { %5016 = vrot.lane.b32.xlu2 %v5813_v61, %s5302_s26 }
 0x145   : > { %v4802_v20 = vpop.permute.xlu1 %4801  ;;  %5036 = vrot.lane.b32.xlu0 %v5874_v35, %s5304_s28 }
 0x146   : > { %v4804_v28 = vunpack.i.h.bf16 %v4802_v20  ;;  %v4803_v41 = vunpack.i.l.bf16 %v4802_v20  ;;  %v5884_v62 = vpop.permute.xlu2 %4851  ;;  %v5954_v20 = vpack.i.bf16 %v658_v29, %v657_v27 }
 0x147   : > { %v5888_v43 = vpop.permute.xlu0 %4826  ;;  %v4854_v48 = vunpack.i.h.bf16 %v5884_v62  ;;  %v4853_v57 = vunpack.i.l.bf16 %v5884_v62 }
 0x148   : > { %v1930_v61 = vsel %vm1923_vm10, %v1897_v39, %v4803_v41  ;;  %v1931_v16 = vsel %vm1923_vm10, %v1898_v24, %v4804_v28  ;;  %v4829_v49 = vunpack.i.h.bf16 %v5888_v43  ;;  %v4828_v0 = vunpack.i.l.bf16 %v5888_v43  ;;  %v4547_v39 = vld [vmem:[%s7451_s3 + $0x20] sm:$0xff] }
 0x149   : > { %v1959_v51 = vpack.c.bf16 %v1931_v16, %v1930_v61  ;;  %v593_v43 = vld [vmem:[#allocation2 + $0x120] sm:$0xff] }
 0x14a   : > { %v5070_v53 = vpack.i.bf16 %v594_v23, %v593_v43  ;;  %v393_v23 = vld [vmem:[#allocation2 + $0x98] sm:$0xff] }
 0x14b   : > { %5026 = vrot.lane.b32.xlu1 %v5853_v45, %s5303_s27  ;;  %4234 = vmatmul.msk.bf16.gmra.mxu0 %vm2012_vm11, %v1959_v51 }
 0x14c   : > { %5031 = vrot.lane.b32.xlu2 %v5896_v56, %s5306_s30 }
 0x14d   : > { %v4817_v4 = vpop.permute.xlu1 %4816  ;;  %5051 = vrot.lane.b32.xlu0 %v5853_v45, %s5301_s21 }
 0x14e   : > { %v4819_v8 = vunpack.i.h.bf16 %v4817_v4  ;;  %v4818_v9 = vunpack.i.l.bf16 %v4817_v4  ;;  %v5913_v50 = vpop.permute.xlu2 %4866  ;;  %v285_v4 = vsel %vm258_vm2, %v252_v59, 0.0 }
 0x14f   : > { %v4842_v12 = vpop.permute.xlu0 %4841  ;;  %374 = vst.msk [vmem:[#allocation2 + $0x151] sm:$0xff] %vm291_vm0, %v285_v4 }
 0x150   : > { %v1767_v45 = vsel %vm1758_vm5, %v1734_v55, %v4818_v9  ;;  %v1768_v44 = vsel %vm1758_vm5, %v1735_v13, %v4819_v8  ;;  %v4844_v11 = vunpack.i.h.bf16 %v4842_v12  ;;  %v4843_v26 = vunpack.i.l.bf16 %v4842_v12  ;;  %v595_v13 = vld [vmem:[#allocation2 + $0x138] sm:$0xff] }
 0x151   : > { %v1800_v32 = vsel %vm1791_vm6, %v1767_v45, %v4823_v14  ;;  %v1801_v63 = vsel %vm1791_vm6, %v1768_v44, %v4824_v54  ;;  %v286_v8 = vsel %vm258_vm2, %v253_v60, 0.0  ;;  %v596_v54 = vld [vmem:[#allocation2 + $0x140] sm:$0xff]  ;;  %v4544_v44 = vld [vmem:[%s7451_s3 + $0x8] sm:$0xff] }
 0x152   : > { %v1833_v33 = vsel %vm1824_vm7, %v1800_v32, %v4828_v0  ;;  %v1834_v25 = vsel %vm1824_vm7, %v1801_v63, %v4829_v49  ;;  %375 = vst.msk [vmem:[#allocation2 + $0x159] sm:$0xff] %vm291_vm0, %v286_v8  ;;  %v4869_v0 = vunpack.i.h.bf16 %v5913_v50  ;;  %v4868_v32 = vunpack.i.l.bf16 %v5913_v50  ;;  %v565_v60 = vld [vmem:[#allocation2 + $0x142] sm:$0xff] }
 0x153   : > { %5041 = vrot.lane.b32.xlu1 %v5918_v5, %s5307_s6 }
 0x154   : > { %5046 = vrot.lane.b32.xlu2 %v5844_v3, %s5300_s20  ;;  %v4548_v3 = vld [vmem:[%s7451_s3 + $0x28] sm:$0xff] }
 0x155   : > { %v4832_v18 = vpop.permute.xlu1 %4831  ;;  %5066 = vrot.lane.b32.xlu0 %v5918_v5, %s5303_s27  ;;  %3288 = vmatpush.bf16.msra.mxu1 %v4548_v3 }
 0x156   : > { %v4834_v19 = vunpack.i.h.bf16 %v4832_v18  ;;  %v4833_v22 = vunpack.i.l.bf16 %v4832_v18  ;;  %v5941_v30 = vpop.permute.xlu2 %4881  ;;  %4622 = vmatpush.bf16.msra.mxu2 %v4548_v3  ;;  %v5287_v3 = vld [vmem:[#allocation3] sm:$0xff] }
 0x157   : > { %v5948_v34 = vpop.permute.xlu0 %4856  ;;  %v4884_v27 = vunpack.i.h.bf16 %v5941_v30  ;;  %v4883_v29 = vunpack.i.l.bf16 %v5941_v30 }
 0x158   : > { %v1866_v36 = vsel %vm1857_vm8, %v1833_v33, %v4833_v22  ;;  %v1867_v37 = vsel %vm1857_vm8, %v1834_v25, %v4834_v19  ;;  %v4859_v62 = vunpack.i.h.bf16 %v5948_v34  ;;  %v2562_v33 = vpack.c.bf16 %v5287_v3, %v5287_v3  ;;  %v6089_v3 = vld [vmem:[%s7450_s2] ss:$0 sm:$0xff] }
 0x159   : > { %v1899_v38 = vsel %vm1890_vm9, %v1866_v36, %v4838_v21  ;;  %v1900_v15 = vsel %vm1890_vm9, %v1867_v37, %v4839_v31  ;;  %3289 = vmatpush.bf16.msra.mxu1 %v4547_v39  ;;  %v6009_v31 = vpack.i.bf16 %v596_v54, %v595_v13  ;;  %v4543_v21 = vld [vmem:[%s7451_s3] sm:$0xff] }
 0x15a   : > { %v1932_v28 = vsel %vm1923_vm10, %v1899_v38, %v4843_v26  ;;  %v1933_v41 = vsel %vm1923_vm10, %v1900_v15, %v4844_v11  ;;  %4623 = vmatpush.bf16.msra.mxu2 %v4547_v39  ;;  %v392_v39 = vld [vmem:[#allocation2 + $0x90] sm:$0xff] }
 0x15b   : > { %5056 = vrot.lane.b32.xlu1 %v5896_v56, %s5302_s26  ;;  %v1960_v24 = vpack.c.bf16 %v1933_v41, %v1932_v28 }
 0x15c   : > { %5061 = vrot.lane.b32.xlu2 %v5874_v35, %s5305_s29 }
 0x15d   : > { %v4847_v46 = vpop.permute.xlu1 %4846  ;;  %4235 = vmatmul.msk.bf16.gmra.mxu0 %vm2012_vm11, %v1960_v24  ;;  %5081 = vrot.lane.b32.xlu0 %v5954_v20, %s5307_s6 }
 0x15e   : > { %v4849_v61 = vunpack.i.h.bf16 %v4847_v46  ;;  %v4848_v16 = vunpack.i.l.bf16 %v4847_v46  ;;  %v5968_v51 = vpop.permute.xlu2 %4896  ;;  %3290 = vmatpush.bf16.msra.mxu1 %v4546_v52  ;;  %4624 = vmatpush.bf16.msra.mxu2 %v4546_v52  ;;  %v627_v46 = vld [vmem:[#allocation2 + $0x139] sm:$0xff] }
 0x15f   : > { %v4872_v56 = vpop.permute.xlu0 %4871  ;;  %v564_v52 = vld [vmem:[#allocation2 + $0x13a] sm:$0xff]  ;;  %v4898_v4 = vunpack.i.l.bf16 %v5968_v51 }
 0x160   : > { %v1704_v42 = vsel %vm291_vm0, %v5616_v7, %v4849_v61  ;;  %v1703_v1 = vsel %vm291_vm0, %v5614_v6, %v4848_v16  ;;  %v4858_v7 = vunpack.i.l.bf16 %v5948_v34  ;;  %v4874_v19 = vunpack.i.h.bf16 %v4872_v56  ;;  %v628_v61 = vld [vmem:[#allocation2 + $0x141] sm:$0xff] }
 0x161   : > { %v1737_v6 = vsel %vm1725_vm4, %v1704_v42, %v4854_v48  ;;  %v1736_v9 = vsel %vm1725_vm4, %v1703_v1, %v4853_v57  ;;  %v4873_v22 = vunpack.i.l.bf16 %v4872_v56  ;;  %v6043_v57 = vpack.i.bf16 %v628_v61, %v627_v46  ;;  %v254_v42 = vld [vmem:[%s5514_s25 + $0xe0] sm:$0xff]  ;;  %v255_v1 = vld [vmem:[%s5514_s25 + $0xe8] sm:$0xff]  ;;  %v257_v46 = vld [vmem:[%s5514_s25 + $0xf8] sm:$0xff] }
 0x162   : > { %3291 = vmatpush.bf16.msra.mxu1 %v4545_v2  ;;  %4625 = vmatpush.bf16.msra.mxu2 %v4545_v2  ;;  %v1769_v17 = vsel %vm1758_vm5, %v1736_v9, %v4858_v7  ;;  %v1770_v49 = vsel %vm1758_vm5, %v1737_v6, %v4859_v62  ;;  %v4899_v2 = vunpack.i.h.bf16 %v5968_v51  ;;  %v6052_v7 = vpack.i.bf16 %v565_v60, %v564_v52  ;;  %v394_v61 = vld [vmem:[#allocation2 + $0xa8] sm:$0xff]  ;;  %v661_v60 = vld [vmem:[#allocation2 + $0x152] sm:$0xff] }
 0x163   : > { %5071 = vrot.lane.b32.xlu1 %v5070_v53, %s5306_s30  ;;  %v288_v6 = vsel %vm258_vm2, %v255_v1, 0.0  ;;  %v290_v52 = vsel %vm258_vm2, %v257_v46, 0.0 }
 0x164   : > { %5076 = vrot.lane.b32.xlu2 %v5975_v58, %s5304_s28  ;;  %377 = vst.msk [vmem:[#allocation2 + $0x171] sm:$0xff] %vm291_vm0, %v288_v6 }
 0x165   : > { %v4862_v10 = vpop.permute.xlu1 %4861  ;;  %5096 = vrot.lane.b32.xlu0 %v5070_v53, %s5302_s26  ;;  %379 = vst.msk [vmem:[#allocation2 + $0x189] sm:$0xff] %vm291_vm0, %v290_v52 }
 0x166   : > { %v4864_v12 = vunpack.i.h.bf16 %v4862_v10  ;;  %v4863_v55 = vunpack.i.l.bf16 %v4862_v10  ;;  %v5998_v14 = vpop.permute.xlu2 %4911  ;;  %3292 = vmatpush.bf16.msra.mxu1 %v4544_v44  ;;  %4626 = vmatpush.bf16.msra.mxu2 %v4544_v44  ;;  %v630_v44 = vld [vmem:[#allocation2 + $0x159] sm:$0xff] }
 0x167   : > { %v4887_v45 = vpop.permute.xlu0 %4886 }
 0x168   : > { %v1802_v63 = vsel %vm1791_vm6, %v1769_v17, %v4863_v55  ;;  %v1803_v18 = vsel %vm1791_vm6, %v1770_v49, %v4864_v12  ;;  %v4889_v24 = vunpack.i.h.bf16 %v4887_v45  ;;  %v4888_v43 = vunpack.i.l.bf16 %v4887_v45  ;;  %v629_v45 = vld [vmem:[#allocation2 + $0x151] sm:$0xff] }
 0x169   : > { %v1835_v11 = vsel %vm1824_vm7, %v1802_v63, %v4868_v32  ;;  %v1836_v50 = vsel %vm1824_vm7, %v1803_v18, %v4869_v0  ;;  %v4914_v63 = vunpack.i.h.bf16 %v5998_v14  ;;  %v4913_v18 = vunpack.i.l.bf16 %v5998_v14 }
 0x16a   : > { %3293 = vmatpush.bf16.msra.mxu1 %v4543_v21  ;;  %4627 = vmatpush.bf16.msra.mxu2 %v4543_v21  ;;  %v1868_v36 = vsel %vm1857_vm8, %v1835_v11, %v4873_v22  ;;  %v1706_v56 = vsel %vm291_vm0, %v393_v23, %v4889_v24  ;;  %v1705_v48 = vsel %vm291_vm0, %v392_v39, %v4888_v43  ;;  %v256_v23 = vld [vmem:[%s5514_s25 + $0xf0] sm:$0xff] }
 0x16b   : > { %5086 = vrot.lane.b32.xlu1 %v5874_v35, %s5300_s20  ;;  %v6075_v22 = vpack.i.bf16 %v630_v44, %v629_v45 }
 0x16c   : > { %5091 = vrot.lane.b32.xlu2 %v5918_v5, %s5301_s21  ;;  %v1869_v5 = vsel %vm1857_vm8, %v1836_v50, %v4874_v19 }
 0x16d   : > { %v4877_v26 = vpop.permute.xlu1 %4876  ;;  %5111 = vrot.lane.b32.xlu0 %v6009_v31, %s5306_s30  ;;  %3294 = vmatmul.bf16.vlgmr.msra.gmra.mxu1 %v2562_v33 }
 0x16e   : > { %v4879_v25 = vunpack.i.h.bf16 %v4877_v26  ;;  %v4878_v35 = vunpack.i.l.bf16 %v4877_v26  ;;  %v6024_v34 = vpop.permute.xlu2 %4926  ;;  %v4574_v26 = vld [vmem:[%s7451_s3 + $0xf8] sm:$0xff] }
 0x16f   : > { %v4902_v37 = vpop.permute.xlu0 %4901  ;;  %3553 = vmatpush.bf16.msrb.mxu0 %v4574_v26  ;;  %v4928_v39 = vunpack.i.l.bf16 %v6024_v34 }
 0x170   : > { %v1901_v38 = vsel %vm1890_vm9, %v1868_v36, %v4878_v35  ;;  %v1902_v30 = vsel %vm1890_vm9, %v1869_v5, %v4879_v25  ;;  %v4904_v9 = vunpack.i.h.bf16 %v4902_v37  ;;  %v4903_v10 = vunpack.i.l.bf16 %v4902_v37  ;;  %v502_v5 = vld [vmem:[#allocation2 + $0x150] sm:$0xff]  ;;  %v503_v37 = vld [vmem:[#allocation2 + $0x158] sm:$0xff] }
 0x171   : > { %v1934_v15 = vsel %vm1923_vm10, %v1901_v38, %v4883_v29  ;;  %v1935_v28 = vsel %vm1923_vm10, %v1902_v30, %v4884_v27  ;;  %v4573_v38 = vld [vmem:[%s7451_s3 + $0xf0] sm:$0xff] }
 0x172   : > { %v1961_v41 = vpack.c.bf16 %v1935_v28, %v1934_v15 }
 0x173   : > { %5101 = vrot.lane.b32.xlu1 %v5975_v58, %s5305_s29  ;;  %3554 = vmatpush.bf16.msrb.mxu0 %v4573_v38 }
 0x174   : > { %4236 = vmatmul.msk.bf16.gmra.mxu0 %vm2012_vm11, %v1961_v41  ;;  %5106 = vrot.lane.b32.xlu2 %v5954_v20, %s5303_s27  ;;  %v4929_v41 = vunpack.i.h.bf16 %v6024_v34  ;;  %v4572_v34 = vld [vmem:[%s7451_s3 + $0xe8] sm:$0xff] }
 0x175   : > { %v4892_v16 = vpop.permute.xlu1 %4891  ;;  %5126 = vrot.lane.b32.xlu0 %v5975_v58, %s5300_s20  ;;  %v287_v58 = vsel %vm258_vm2, %v254_v42, 0.0  ;;  %v662_v42 = vld [vmem:[#allocation2 + $0x15a] sm:$0xff] }
 0x176   : > { %v4894_v47 = vunpack.i.h.bf16 %v4892_v16  ;;  %v4893_v40 = vunpack.i.l.bf16 %v4892_v16  ;;  %v6039_v53 = vpop.permute.xlu2 %4941  ;;  %376 = vst.msk [vmem:[#allocation2 + $0x169] sm:$0xff] %vm291_vm0, %v287_v58  ;;  %v395_v16 = vld [vmem:[#allocation2 + $0xb0] sm:$0xff]  ;;  %v6131_v6 = vpack.i.bf16 %v662_v42, %v661_v60 }
 0x177   : > { %v4917_v59 = vpop.permute.xlu0 %4916  ;;  %v1708_v1 = vsel %vm291_vm0, %v395_v16, %v4929_v41  ;;  %3555 = vmatpush.bf16.msrb.mxu0 %v4572_v34  ;;  %v397_v34 = vld [vmem:[#allocation2 + $0xc8] sm:$0xff] }
 0x178   : > { %v1738_v8 = vsel %vm1725_vm4, %v1705_v48, %v4893_v40  ;;  %v1739_v62 = vsel %vm1725_vm4, %v1706_v56, %v4894_v47  ;;  %v4919_v11 = vunpack.i.h.bf16 %v4917_v59  ;;  %v4918_v50 = vunpack.i.l.bf16 %v4917_v59 }
 0x179   : > { %v1772_v51 = vsel %vm1758_vm5, %v1739_v62, %v4899_v2  ;;  %v1771_v12 = vsel %vm1758_vm5, %v1738_v8, %v4898_v4  ;;  %v6109_v47 = vpack.i.bf16 %v503_v37, %v502_v5  ;;  %v289_v40 = vsel %vm258_vm2, %v256_v23, 0.0  ;;  %v4568_v23 = vld [vmem:[%s7451_s3 + $0xc8] sm:$0xff] }
 0x17a   : > { %v1804_v0 = vsel %vm1791_vm6, %v1771_v12, %v4903_v10  ;;  %v1805_v32 = vsel %vm1791_vm6, %v1772_v51, %v4904_v9  ;;  %378 = vst.msk [vmem:[#allocation2 + $0x181] sm:$0xff] %vm291_vm0, %v289_v40  ;;  %v1707_v2 = vsel %vm291_vm0, %v394_v61, %v4928_v39  ;;  %v4571_v10 = vld [vmem:[%s7451_s3 + $0xe0] sm:$0xff] }
 0x17b   : > { %5116 = vrot.lane.b32.xlu1 %v6043_v57, %s5304_s28  ;;  %3556 = vmatpush.bf16.msrb.mxu0 %v4571_v10 }
 0x17c   : > { %5121 = vrot.lane.b32.xlu2 %v6052_v7, %s5307_s6 }
 0x17d   : > { %v4907_v55 = vpop.permute.xlu1 %4906  ;;  %5141 = vrot.lane.b32.xlu0 %v6043_v57, %s5305_s29  ;;  %v600_v16 = vld [vmem:[#allocation2 + $0x170] sm:$0xff] }
 0x17e   : > { %v4909_v13 = vunpack.i.h.bf16 %v4907_v55  ;;  %v4908_v54 = vunpack.i.l.bf16 %v4907_v55  ;;  %v6065_v17 = vpop.permute.xlu2 %4956  ;;  %v4944_v55 = vunpack.i.h.bf16 %v6039_v53 }
 0x17f   : > { %v6067_v49 = vpop.permute.xlu0 %4931 }
 0x180   : > { %v1837_v21 = vsel %vm1824_vm7, %v1804_v0, %v4908_v54  ;;  %v1838_v19 = vsel %vm1824_vm7, %v1805_v32, %v4909_v13  ;;  %v4934_v48 = vunpack.i.h.bf16 %v6067_v49  ;;  %v4933_v59 = vunpack.i.l.bf16 %v6067_v49 }
 0x181   : > { %v1870_v27 = vsel %vm1857_vm8, %v1837_v21, %v4913_v18  ;;  %v1871_v29 = vsel %vm1857_vm8, %v1838_v19, %v4914_v63  ;;  %v4959_v19 = vunpack.i.h.bf16 %v6065_v17 }
 0x182   : > { %v1903_v35 = vsel %vm1890_vm9, %v1870_v27, %v4918_v50  ;;  %v1740_v51 = vsel %vm1725_vm4, %v1707_v2, %v4933_v59  ;;  %v1741_v12 = vsel %vm1725_vm4, %v1708_v1, %v4934_v48  ;;  %v536_v2 = vld [vmem:[#allocation2 + $0x169] sm:$0xff] }
 0x183   : > { %5131 = vrot.lane.b32.xlu1 %v5954_v20, %s5301_s21 }
 0x184   : > { %5136 = vrot.lane.b32.xlu2 %v6009_v31, %s5302_s26  ;;  %v1904_v31 = vsel %vm1890_vm9, %v1871_v29, %v4919_v11  ;;  %v4958_v11 = vunpack.i.l.bf16 %v6065_v17  ;;  %v4569_v17 = vld [vmem:[%s7451_s3 + $0xd0] sm:$0xff] }
 0x185   : > { %v4922_v14 = vpop.permute.xlu1 %4921  ;;  %5156 = vrot.lane.b32.xlu0 %v6075_v22, %s5304_s28 }
 0x186   : > { %v4924_v20 = vunpack.i.h.bf16 %v4922_v14  ;;  %v4923_v33 = vunpack.i.l.bf16 %v4922_v14  ;;  %v6093_v25 = vpop.permute.xlu2 %4971  ;;  %v663_v14 = vld [vmem:[#allocation2 + $0x16a] sm:$0xff] }
 0x187   : > { %v6097_v36 = vpop.permute.xlu0 %4946 }
 0x188   : > { %v2074_v30 = vpop.f32.mrf.mxu0  ;;  %v1936_v15 = vsel %vm1923_vm10, %v1903_v35, %v4923_v33  ;;  %v1937_v28 = vsel %vm1923_vm10, %v1904_v31, %v4924_v20  ;;  %v4949_v49 = vunpack.i.h.bf16 %v6097_v36  ;;  %v4948_v0 = vunpack.i.l.bf16 %v6097_v36  ;;  %v664_v20 = vld [vmem:[#allocation2 + $0x172] sm:$0xff] }
 0x189   : > { %v2075_v24 = vadd.f32 %v6089_v3, %v2074_v30  ;;  %v1962_v43 = vpack.c.bf16 %v1937_v28, %v1936_v15  ;;  %v6171_v30 = vpack.i.bf16 %v664_v20, %v663_v14 }
 0x18b   : > { %v2154_v56 = vmax.f32 %v2075_v24, 0.0  ;;  %5146 = vrot.lane.b32.xlu1 %v6052_v7, %s5303_s27  ;;  %4237 = vmatmul.msk.bf16.gmra.mxu0 %vm2012_vm11, %v1962_v43  ;;  %v599_v43 = vld [vmem:[#allocation2 + $0x168] sm:$0xff] }
 0x18c   : > { %5151 = vrot.lane.b32.xlu2 %v6109_v47, %s5306_s30  ;;  %v5190_v42 = vpack.i.bf16 %v600_v16, %v599_v43 }
 0x18d   : > { %2241 = vst [vmem:[#allocation3 + $0x19] sm:$0xff] %v2154_v56  ;;  %v4937_v4 = vpop.permute.xlu1 %4936  ;;  %5171 = vrot.lane.b32.xlu0 %v6052_v7, %s5301_s21  ;;  %v4943_v7 = vunpack.i.l.bf16 %v6039_v53  ;;  %v4570_v53 = vld [vmem:[%s7451_s3 + $0xd8] sm:$0xff] }
 0x18e   : > { %v4939_v58 = vunpack.i.h.bf16 %v4937_v4  ;;  %v4938_v8 = vunpack.i.l.bf16 %v4937_v4  ;;  %v6129_v62 = vpop.permute.xlu2 %4986  ;;  %3557 = vmatpush.bf16.msrb.mxu0 %v4570_v53  ;;  %v537_v4 = vld [vmem:[#allocation2 + $0x171] sm:$0xff]  ;;  %v601_v53 = vld [vmem:[#allocation2 + $0x180] sm:$0xff] }
 0x18f   : > { %v4962_v9 = vpop.permute.xlu0 %4961 }
 0x190   : > { %v2076_v13 = vpop.f32.mrf.mxu0  ;;  %v1773_v54 = vsel %vm1758_vm5, %v1740_v51, %v4938_v8  ;;  %v1774_v45 = vsel %vm1758_vm5, %v1741_v12, %v4939_v58  ;;  %v4964_v27 = vunpack.i.h.bf16 %v4962_v9  ;;  %v4963_v29 = vunpack.i.l.bf16 %v4962_v9  ;;  %v4567_v58 = vld [vmem:[%s7451_s3 + $0xc0] sm:$0xff] }
 0x191   : > { %v2077_v44 = vadd.f32 %v6089_v3, %v2076_v13  ;;  %v1806_v63 = vsel %vm1791_vm6, %v1773_v54, %v4943_v7  ;;  %v1807_v18 = vsel %vm1791_vm6, %v1774_v45, %v4944_v55  ;;  %v4974_v8 = vunpack.i.h.bf16 %v6093_v25 }
 0x192   : > { %v1840_v35 = vsel %vm1824_vm7, %v1807_v18, %v4949_v49  ;;  %3558 = vmatpush.bf16.msrb.mxu0 %v4569_v17  ;;  %v4973_v9 = vunpack.i.l.bf16 %v6093_v25  ;;  %v6198_v55 = vpack.i.bf16 %v537_v4, %v536_v2 }
 0x193   : > { %v2155_v32 = vmax.f32 %v2077_v44, 0.0  ;;  %5161 = vrot.lane.b32.xlu1 %v6131_v6, %s5307_s6 }
 0x194   : > { %5166 = vrot.lane.b32.xlu2 %v6043_v57, %s5300_s20  ;;  %v1839_v57 = vsel %vm1824_vm7, %v1806_v63, %v4948_v0  ;;  %v2275_v46 = vld [vmem:[#allocation3 + $0x18] sm:$0xff] }
 0x195   : > { %2242 = vst [vmem:[#allocation3 + $0x21] sm:$0xff] %v2155_v32  ;;  %v4952_v21 = vpop.permute.xlu1 %4951  ;;  %5186 = vrot.lane.b32.xlu0 %v6131_v6, %s5303_s27  ;;  %v602_v63 = vld [vmem:[#allocation2 + $0x188] sm:$0xff] }
 0x196   : > { %v4954_v50 = vunpack.i.h.bf16 %v4952_v21  ;;  %v4953_v26 = vunpack.i.l.bf16 %v4952_v21  ;;  %v6158_v33 = vpop.permute.xlu2 %5001  ;;  %3559 = vmatpush.bf16.msrb.mxu0 %v4568_v23  ;;  %v6217_v14 = vpack.i.bf16 %v602_v63, %v601_v53 }
 0x197   : > { %v6162_v31 = vpop.permute.xlu0 %4976 }
 0x198   : > { %v1872_v36 = vsel %vm1857_vm8, %v1839_v57, %v4953_v26  ;;  %v1873_v5 = vsel %vm1857_vm8, %v1840_v35, %v4954_v50  ;;  %v4979_v13 = vunpack.i.h.bf16 %v6162_v31  ;;  %v4978_v54 = vunpack.i.l.bf16 %v6162_v31 }
 0x199   : > { %v1905_v37 = vsel %vm1890_vm9, %v1872_v36, %v4958_v11  ;;  %v1906_v38 = vsel %vm1890_vm9, %v1873_v5, %v4959_v19  ;;  %v4989_v50 = vunpack.i.h.bf16 %v6129_v62  ;;  %v4988_v26 = vunpack.i.l.bf16 %v6129_v62 }
 0x19a   : > { %v2079_v15 = vpop.f32.mrf.mxu0  ;;  %v1938_v28 = vsel %vm1923_vm10, %v1905_v37, %v4963_v29  ;;  %v1939_v41 = vsel %vm1923_vm10, %v1906_v38, %v4964_v27  ;;  %3560 = vmatpush.bf16.msrb.mxu0 %v4567_v58  ;;  %v5004_v62 = vunpack.i.h.bf16 %v6158_v33  ;;  %v5003_v36 = vunpack.i.l.bf16 %v6158_v33 }
 0x19b   : > { %v2080_v39 = vadd.f32 %v6089_v3, %v2079_v15  ;;  %5176 = vrot.lane.b32.xlu1 %v6109_v47, %s5302_s26  ;;  %v1963_v24 = vpack.c.bf16 %v1939_v41, %v1938_v28  ;;  %v396_v47 = vld [vmem:[#allocation2 + $0xc0] sm:$0xff] }
 0x19c   : > { %v2276_v61 = vld [vmem:[#allocation3 + $0x20] sm:$0xff]  ;;  %5181 = vrot.lane.b32.xlu2 %v6075_v22, %s5305_s29 }
 0x19d   : > { %v2156_v40 = vmax.f32 %v2080_v39, 0.0  ;;  %v4967_v52 = vpop.permute.xlu1 %4966  ;;  %4238 = vmatmul.msk.bf16.gmra.mxu0 %vm2012_vm11, %v1963_v24  ;;  %v6184_v56 = vpack.c.bf16 %v2276_v61, %v2275_v46  ;;  %5201 = vrot.lane.b32.xlu0 %v6171_v30, %s5307_s6 }
 0x19e   : > { %v4969_v48 = vunpack.i.h.bf16 %v4967_v52  ;;  %v4968_v59 = vunpack.i.l.bf16 %v4967_v52  ;;  %v6188_v60 = vpop.permute.xlu2 %5016 }
 0x19f   : > { %2243 = vst [vmem:[#allocation3 + $0x31] sm:$0xff] %v2156_v40  ;;  %3299 = vmatmul.bf16.gmra.mxu1 %v6184_v56  ;;  %v4992_v1 = vpop.permute.xlu0 %4991  ;;  %v398_v40 = vld [vmem:[#allocation2 + $0xd8] sm:$0xff] }
 0x1a0   : > { %v1710_v10 = vsel %vm291_vm0, %v397_v34, %v4969_v48  ;;  %v1709_v51 = vsel %vm291_vm0, %v396_v47, %v4968_v59  ;;  %v4994_v20 = vunpack.i.h.bf16 %v4992_v1  ;;  %v4993_v57 = vunpack.i.l.bf16 %v4992_v1  ;;  %v399_v34 = vld [vmem:[#allocation2 + $0xe0] sm:$0xff] }
 0x1a1   : > { %v1743_v25 = vsel %vm1725_vm4, %v1710_v10, %v4974_v8  ;;  %v1742_v45 = vsel %vm1725_vm4, %v1709_v51, %v4973_v9  ;;  %v633_v59 = vld [vmem:[#allocation2 + $0x181] sm:$0xff] }
 0x1a2   : > { %v2081_v12 = vpop.f32.mrf.mxu0  ;;  %v1775_v19 = vsel %vm1758_vm5, %v1742_v45, %v4978_v54  ;;  %v1776_v11 = vsel %vm1758_vm5, %v1743_v25, %v4979_v13  ;;  %v5019_v13 = vunpack.i.h.bf16 %v6188_v60  ;;  %v5018_v54 = vunpack.i.l.bf16 %v6188_v60 }
 0x1a3   : > { %v2082_v7 = vadd.f32 %v6089_v3, %v2081_v12  ;;  %5191 = vrot.lane.b32.xlu1 %v5190_v42, %s5306_s30  ;;  %v570_v12 = vld [vmem:[#allocation2 + $0x182] sm:$0xff] }
 0x1a4   : > { %5196 = vrot.lane.b32.xlu2 %v6198_v55, %s5304_s28 }
 0x1a5   : > { %v2157_v44 = vmax.f32 %v2082_v7, 0.0  ;;  %v4982_v49 = vpop.permute.xlu1 %4981  ;;  %5216 = vrot.lane.b32.xlu0 %v5190_v42, %s5302_s26  ;;  %v634_v42 = vld [vmem:[#allocation2 + $0x189] sm:$0xff] }
 0x1a6   : > { %v4984_v0 = vunpack.i.h.bf16 %v4982_v49  ;;  %v4983_v32 = vunpack.i.l.bf16 %v4982_v49  ;;  %v6209_v18 = vpop.permute.xlu2 %5031  ;;  %v2277_v38 = vld [vmem:[#allocation3 + $0x30] sm:$0xff]  ;;  %v5235_v10 = vpack.i.bf16 %v634_v42, %v633_v59  ;;  %v571_v7 = vld [vmem:[#allocation2 + $0x18a] sm:$0xff] }
 0x1a7   : > { %2244 = vst [vmem:[#allocation3 + $0x39] sm:$0xff] %v2157_v44  ;;  %v5007_v21 = vpop.permute.xlu0 %5006  ;;  %v5265_v49 = vpack.i.bf16 %v571_v7, %v570_v12  ;;  %v400_v42 = vld [vmem:[#allocation2 + $0xf0] sm:$0xff] }
 0x1a8   : > { %v1808_v27 = vsel %vm1791_vm6, %v1775_v19, %v4983_v32  ;;  %v1809_v29 = vsel %vm1791_vm6, %v1776_v11, %v4984_v0  ;;  %v5009_v52 = vunpack.i.h.bf16 %v5007_v21  ;;  %v5008_v47 = vunpack.i.l.bf16 %v5007_v21 }
 0x1a9   : > { %v1841_v35 = vsel %vm1824_vm7, %v1808_v27, %v4988_v26  ;;  %v1842_v31 = vsel %vm1824_vm7, %v1809_v29, %v4989_v50  ;;  %v635_v50 = vld [vmem:[#allocation2 + $0x199] sm:$0xff]  ;;  %v636_v26 = vld [vmem:[#allocation2 + $0x1a1] sm:$0xff] }
 0x1aa   : > { %v1874_v28 = vsel %vm1857_vm8, %v1841_v35, %v4993_v57  ;;  %v1875_v41 = vsel %vm1857_vm8, %v1842_v31, %v4994_v20  ;;  %v1712_v8 = vsel %vm291_vm0, %v399_v34, %v5009_v52  ;;  %v1711_v9 = vsel %vm291_vm0, %v398_v40, %v5008_v47 }
 0x1ab   : > { %5206 = vrot.lane.b32.xlu1 %v6075_v22, %s5300_s20  ;;  %v5034_v35 = vunpack.i.h.bf16 %v6209_v18  ;;  %v5033_v31 = vunpack.i.l.bf16 %v6209_v18 }
 0x1ac   : > { %5211 = vrot.lane.b32.xlu2 %v6131_v6, %s5301_s21 }
 0x1ad   : > { %v4997_v17 = vpop.permute.xlu1 %4996  ;;  %5231 = vrot.lane.b32.xlu0 %v6217_v14, %s5306_s30 }
 0x1ae   : > { %v4999_v5 = vunpack.i.h.bf16 %v4997_v17  ;;  %v4998_v37 = vunpack.i.l.bf16 %v4997_v17  ;;  %v2278_v15 = vld [vmem:[#allocation3 + $0x38] sm:$0xff]  ;;  %v6229_v22 = vpop.permute.xlu2 %5046 }
 0x1af   : > { %v6233_v39 = vpack.c.bf16 %v2278_v15, %v2277_v38  ;;  %v5022_v6 = vpop.permute.xlu0 %5021  ;;  %v5049_v47 = vunpack.i.h.bf16 %v6229_v22  ;;  %v5048_v34 = vunpack.i.l.bf16 %v6229_v22 }
 0x1b0   : > { %v1907_v24 = vsel %vm1890_vm9, %v1874_v28, %v4998_v37  ;;  %v1908_v33 = vsel %vm1890_vm9, %v1875_v41, %v4999_v5  ;;  %v5024_v0 = vunpack.i.h.bf16 %v5022_v6  ;;  %v5023_v32 = vunpack.i.l.bf16 %v5022_v6 }
 0x1b1   : > { %v2084_v43 = vpop.f32.mrf.mxu0  ;;  %3304 = vmatmul.bf16.gmra.mxu1 %v6233_v39  ;;  %v1940_v23 = vsel %vm1923_vm10, %v1907_v24, %v5003_v36  ;;  %v1941_v46 = vsel %vm1923_vm10, %v1908_v33, %v5004_v62  ;;  %v5275_v36 = vpack.i.bf16 %v636_v26, %v635_v50  ;;  %v1713_v22 = vsel %vm291_vm0, %v400_v42, %v5048_v34 }
 0x1b2   : > { %v2085_v61 = vadd.f32 %v6089_v3, %v2084_v43  ;;  %v1964_v16 = vpack.c.bf16 %v1941_v46, %v1940_v23  ;;  %v604_v23 = vld [vmem:[#allocation2 + $0x1a0] sm:$0xff] }
 0x1b3   : > { %5221 = vrot.lane.b32.xlu1 %v6198_v55, %s5305_s29 }
 0x1b4   : > { %v2158_v48 = vmax.f32 %v2085_v61, 0.0  ;;  %4239 = vmatmul.msk.bf16.gmra.mxu0 %vm2012_vm11, %v1964_v16  ;;  %5226 = vrot.lane.b32.xlu2 %v6171_v30, %s5303_s27 }
 0x1b5   : > { %v5012_v1 = vpop.permute.xlu1 %5011  ;;  %5246 = vrot.lane.b32.xlu0 %v6198_v55, %s5300_s20 }
 0x1b6   : > { %2245 = vst [vmem:[#allocation3 + $0x49] sm:$0xff] %v2158_v48  ;;  %v5014_v2 = vunpack.i.h.bf16 %v5012_v1  ;;  %v5013_v4 = vunpack.i.l.bf16 %v5012_v1  ;;  %v6248_v58 = vpop.permute.xlu2 %5061  ;;  %v401_v1 = vld [vmem:[#allocation2 + $0xf8] sm:$0xff] }
 0x1b7   : > { %v5037_v51 = vpop.permute.xlu0 %5036 }
 0x1b8   : > { %v1744_v55 = vsel %vm1725_vm4, %v1711_v9, %v5013_v4  ;;  %v1745_v45 = vsel %vm1725_vm4, %v1712_v8, %v5014_v2  ;;  %v5039_v5 = vunpack.i.h.bf16 %v5037_v51  ;;  %v5038_v37 = vunpack.i.l.bf16 %v5037_v51  ;;  %v667_v9 = vld [vmem:[#allocation2 + $0x19a] sm:$0xff] }
 0x1b9   : > { %v2086_v25 = vpop.f32.mrf.mxu0  ;;  %v1778_v63 = vsel %vm1758_vm5, %v1745_v45, %v5019_v13  ;;  %v1777_v21 = vsel %vm1758_vm5, %v1744_v55, %v5018_v54  ;;  %v1714_v51 = vsel %vm291_vm0, %v401_v1, %v5049_v47 }
 0x1ba   : > { %v2087_v44 = vadd.f32 %v6089_v3, %v2086_v25  ;;  %v1810_v20 = vsel %vm1791_vm6, %v1777_v21, %v5023_v32  ;;  %v1811_v57 = vsel %vm1791_vm6, %v1778_v63, %v5024_v0  ;;  %v5063_v0 = vunpack.i.l.bf16 %v6248_v58 }
 0x1bb   : > { %5236 = vrot.lane.b32.xlu1 %v5235_v10, %s5304_s28 }
 0x1bc   : > { %v2159_v53 = vmax.f32 %v2087_v44, 0.0  ;;  %5241 = vrot.lane.b32.xlu2 %v5265_v49, %s5307_s6 }
 0x1bd   : > { %v5027_v60 = vpop.permute.xlu1 %5026  ;;  %5261 = vrot.lane.b32.xlu0 %v5235_v10, %s5305_s29  ;;  %v2279_v28 = vld [vmem:[#allocation3 + $0x48] sm:$0xff]  ;;  %v668_v10 = vld [vmem:[#allocation2 + $0x1a2] sm:$0xff] }
 0x1be   : > { %2246 = vst [vmem:[#allocation3 + $0x51] sm:$0xff] %v2159_v53  ;;  %v5029_v19 = vunpack.i.h.bf16 %v5027_v60  ;;  %v5028_v11 = vunpack.i.l.bf16 %v5027_v60  ;;  %v6262_v27 = vpop.permute.xlu2 %5076  ;;  %v5280_v25 = vpack.i.bf16 %v668_v10, %v667_v9 }
 0x1bf   : > { %v5052_v29 = vpop.permute.xlu0 %5051 }
 0x1c0   : > { %v1843_v17 = vsel %vm1824_vm7, %v1810_v20, %v5028_v11  ;;  %v1844_v62 = vsel %vm1824_vm7, %v1811_v57, %v5029_v19  ;;  %v5054_v4 = vunpack.i.h.bf16 %v5052_v29  ;;  %v5053_v8 = vunpack.i.l.bf16 %v5052_v29 }
 0x1c1   : > { %v1876_v38 = vsel %vm1857_vm8, %v1843_v17, %v5033_v31  ;;  %v1877_v15 = vsel %vm1857_vm8, %v1844_v62, %v5034_v35  ;;  %v5079_v29 = vunpack.i.h.bf16 %v6262_v27  ;;  %v5078_v20 = vunpack.i.l.bf16 %v6262_v27 }
 0x1c2   : > { %v1909_v46 = vsel %vm1890_vm9, %v1876_v38, %v5038_v37  ;;  %v1746_v45 = vsel %vm1725_vm4, %v1713_v22, %v5053_v8  ;;  %v1747_v44 = vsel %vm1725_vm4, %v1714_v51, %v5054_v4 }
 0x1c3   : > { %5251 = vrot.lane.b32.xlu1 %v6171_v30, %s5301_s21  ;;  %v603_v30 = vld [vmem:[#allocation2 + $0x198] sm:$0xff] }
 0x1c4   : > { %3561 = vmatmul.bf16.vlgmr.msrb.gmra.mxu0 %v6184_v56  ;;  %5256 = vrot.lane.b32.xlu2 %v6217_v14, %s5302_s26  ;;  %v1910_v56 = vsel %vm1890_vm9, %v1877_v15, %v5039_v5  ;;  %v5270_v52 = vpack.i.bf16 %v604_v23, %v603_v30 }
 0x1c5   : > { %v5042_v18 = vpop.permute.xlu1 %5041  ;;  %v2280_v41 = vld [vmem:[#allocation3 + $0x50] sm:$0xff]  ;;  %5276 = vrot.lane.b32.xlu0 %v5275_v36, %s5304_s28 }
 0x1c6   : > { %v5044_v6 = vunpack.i.h.bf16 %v5042_v18  ;;  %v5043_v24 = vunpack.i.l.bf16 %v5042_v18  ;;  %v6278_v33 = vpack.c.bf16 %v2280_v41, %v2279_v28  ;;  %v6280_v43 = vpop.permute.xlu2 %5091 }
 0x1c7   : > { %v5067_v61 = vpop.permute.xlu0 %5066  ;;  %v5094_v34 = vunpack.i.h.bf16 %v6280_v43 }
 0x1c8   : > { %v2089_v16 = vpop.f32.mrf.mxu0  ;;  %3309 = vmatmul.bf16.gmra.mxu1 %v6278_v33  ;;  %v1942_v14 = vsel %vm1923_vm10, %v1909_v46, %v5043_v24  ;;  %v1943_v40 = vsel %vm1923_vm10, %v1910_v56, %v5044_v6  ;;  %v5069_v60 = vunpack.i.h.bf16 %v5067_v61  ;;  %v5068_v19 = vunpack.i.l.bf16 %v5067_v61 }
 0x1c9   : > { %v2090_v48 = vadd.f32 %v6089_v3, %v2089_v16  ;;  %v1965_v59 = vpack.c.bf16 %v1943_v40, %v1942_v14  ;;  %v402_v40 = vld [vmem:[#allocation2 + $0x108] sm:$0xff] }
 0x1cb   : > { %v2160_v2 = vmax.f32 %v2090_v48, 0.0  ;;  %5266 = vrot.lane.b32.xlu1 %v5265_v49, %s5303_s27  ;;  %4240 = vmatmul.msk.bf16.vlgmr.msra.gmra.mxu3 %vm2012_vm11, %v1965_v59  ;;  %v5064_v49 = vunpack.i.h.bf16 %v6248_v58  ;;  %v5093_v48 = vunpack.i.l.bf16 %v6280_v43 }
 0x1cc   : > { %5271 = vrot.lane.b32.xlu2 %v5270_v52, %s5306_s30  ;;  %v403_v52 = vld [vmem:[#allocation2 + $0x110] sm:$0xff] }
 0x1cd   : > { %2247 = vst [vmem:[#allocation3 + $0x61] sm:$0xff] %v2160_v2  ;;  %v5057_v12 = vpop.permute.xlu1 %5056 }
 0x1ce   : > { %v5059_v7 = vunpack.i.h.bf16 %v5057_v12  ;;  %v5058_v13 = vunpack.i.l.bf16 %v5057_v12  ;;  %v6295_v54 = vpop.permute.xlu2 %5106 }
 0x1cf   : > { %v5082_v55 = vpop.permute.xlu0 %5081 }
 0x1d0   : > { %v2091_v32 = vpop.f32.mrf.mxu0  ;;  %v1779_v53 = vsel %vm1758_vm5, %v1746_v45, %v5058_v13  ;;  %v1780_v63 = vsel %vm1758_vm5, %v1747_v44, %v5059_v7  ;;  %v5084_v31 = vunpack.i.h.bf16 %v5082_v55  ;;  %v5083_v17 = vunpack.i.l.bf16 %v5082_v55 }
 0x1d1   : > { %v6304_v21 = vadd.f32 %v6089_v3, %v2091_v32  ;;  %v1812_v50 = vsel %vm1791_vm6, %v1779_v53, %v5063_v0  ;;  %v1813_v26 = vsel %vm1791_vm6, %v1780_v63, %v5064_v49  ;;  %v5109_v44 = vunpack.i.h.bf16 %v6295_v54 }
 0x1d2   : > { %v1845_v62 = vsel %vm1824_vm7, %v1812_v50, %v5068_v19  ;;  %v1846_v36 = vsel %vm1824_vm7, %v1813_v26, %v5069_v60 }
 0x1d3   : > { %v2161_v11 = vmax.f32 %v6304_v21, 0.0  ;;  %5281 = vrot.lane.b32.xlu1 %v5280_v25, %s5307_s6 }
 0x1d4   : > { %3566 = vmatmul.bf16.gmra.mxu0 %v6233_v39  ;;  %v2281_v30 = vld [vmem:[#allocation3 + $0x60] sm:$0xff] }
 0x1d5   : > { %2248 = vst [vmem:[#allocation3 + $0x69] sm:$0xff] %v2161_v11  ;;  %v5072_v58 = vpop.permute.xlu1 %5071 }
 0x1d6   : > { %v5074_v57 = vunpack.i.h.bf16 %v5072_v58  ;;  %v5073_v35 = vunpack.i.l.bf16 %v5072_v58  ;;  %v6319_v38 = vpop.permute.xlu2 %5121 }
 0x1d7   : > { %v5097_v5 = vpop.permute.xlu0 %5096  ;;  %v5124_v26 = vunpack.i.h.bf16 %v6319_v38  ;;  %v5123_v58 = vunpack.i.l.bf16 %v6319_v38 }
 0x1d8   : > { %v1878_v37 = vsel %vm1857_vm8, %v1845_v62, %v5073_v35  ;;  %v1879_v39 = vsel %vm1857_vm8, %v1846_v36, %v5074_v57  ;;  %v5099_v8 = vunpack.i.h.bf16 %v5097_v5  ;;  %v5098_v9 = vunpack.i.l.bf16 %v5097_v5  ;;  %v4582_v35 = vld [vmem:[%s7451_s3 + $0x138] sm:$0xff] }
 0x1d9   : > { %v1911_v15 = vsel %vm1890_vm9, %v1878_v37, %v5078_v20  ;;  %v1912_v18 = vsel %vm1890_vm9, %v1879_v39, %v5079_v29  ;;  %3642 = vmatpush.bf16.msrb.mxu1 %v4582_v35 }
 0x1da   : > { %v2094_v27 = vpop.f32.mrf.mxu0  ;;  %v1944_v28 = vsel %vm1923_vm10, %v1911_v15, %v5083_v17  ;;  %v1945_v41 = vsel %vm1923_vm10, %v1912_v18, %v5084_v31 }
 0x1db   : > { %v2095_v6 = vadd.f32 %v6089_v3, %v2094_v27  ;;  %v1966_v24 = vpack.c.bf16 %v1945_v41, %v1944_v28  ;;  %v4581_v28 = vld [vmem:[%s7451_s3 + $0x130] sm:$0xff] }
 0x1dc   : > { %v2282_v23 = vld [vmem:[#allocation3 + $0x68] sm:$0xff] }
 0x1dd   : > { %v2162_v46 = vmax.f32 %v2095_v6, 0.0  ;;  %v5087_v56 = vpop.permute.xlu1 %5086  ;;  %4241 = vmatmul.msk.bf16.gmra.mxu3 %vm2012_vm11, %v1966_v24  ;;  %v6327_v61 = vpack.c.bf16 %v2282_v23, %v2281_v30  ;;  %v404_v24 = vld [vmem:[#allocation2 + $0x120] sm:$0xff]  ;;  %v405_v30 = vld [vmem:[#allocation2 + $0x128] sm:$0xff]  ;;  %3643 = vmatpush.bf16.msrb.mxu1 %v4581_v28 }
 0x1de   : > { %v5089_v16 = vunpack.i.h.bf16 %v5087_v56  ;;  %v5088_v14 = vunpack.i.l.bf16 %v5087_v56  ;;  %v6334_v2 = vpop.permute.xlu2 %5136 }
 0x1df   : > { %2249 = vst [vmem:[#allocation3 + $0x79] sm:$0xff] %v2162_v46  ;;  %3314 = vmatmul.bf16.gmra.mxu1 %v6327_v61  ;;  %v5112_v47 = vpop.permute.xlu0 %5111 }
 0x1e0   : > { %v1716_v59 = vsel %vm291_vm0, %v403_v52, %v5089_v16  ;;  %v1715_v42 = vsel %vm291_vm0, %v402_v40, %v5088_v14  ;;  %v5114_v32 = vunpack.i.h.bf16 %v5112_v47  ;;  %v5113_v53 = vunpack.i.l.bf16 %v5112_v47  ;;  %v4580_v40 = vld [vmem:[%s7451_s3 + $0x128] sm:$0xff] }
 0x1e1   : > { %v1749_v10 = vsel %vm1725_vm4, %v1716_v59, %v5094_v34  ;;  %v1748_v51 = vsel %vm1725_vm4, %v1715_v42, %v5093_v48  ;;  %v5139_v48 = vunpack.i.h.bf16 %v6334_v2  ;;  %3644 = vmatpush.bf16.msrb.mxu1 %v4580_v40 }
 0x1e2   : > { %v2096_v1 = vpop.f32.mrf.mxu0  ;;  %v1781_v55 = vsel %vm1758_vm5, %v1748_v51, %v5098_v9  ;;  %v1782_v45 = vsel %vm1758_vm5, %v1749_v10, %v5099_v8  ;;  %v4579_v8 = vld [vmem:[%s7451_s3 + $0x120] sm:$0xff] }
 0x1e3   : > { %v2097_v4 = vadd.f32 %v6089_v3, %v2096_v1 }
 0x1e4   : > { %3571 = vmatmul.bf16.gmra.mxu0 %v6278_v33  ;;  %v5108_v33 = vunpack.i.l.bf16 %v6295_v54 }
 0x1e5   : > { %v2163_v22 = vmax.f32 %v2097_v4, 0.0  ;;  %v5102_v12 = vpop.permute.xlu1 %5101  ;;  %3645 = vmatpush.bf16.msrb.mxu1 %v4579_v8 }
 0x1e6   : > { %v5104_v43 = vunpack.i.h.bf16 %v5102_v12  ;;  %v5103_v7 = vunpack.i.l.bf16 %v5102_v12  ;;  %v6350_v19 = vpop.permute.xlu2 %5151  ;;  %v2283_v54 = vld [vmem:[#allocation3 + $0x78] sm:$0xff] }
 0x1e7   : > { %2250 = vst [vmem:[#allocation3 + $0x81] sm:$0xff] %v2163_v22  ;;  %v5127_v13 = vpop.permute.xlu0 %5126  ;;  %v6340_v25 = vpack.c.bf16 %v2163_v22, %v2162_v46 }
 0x1e8   : > { %v1814_v49 = vsel %vm1791_vm6, %v1781_v55, %v5103_v7  ;;  %v1815_v0 = vsel %vm1791_vm6, %v1782_v45, %v5104_v43  ;;  %v5129_v41 = vunpack.i.h.bf16 %v5127_v13  ;;  %v5128_v6 = vunpack.i.l.bf16 %v5127_v13  ;;  %v4578_v13 = vld [vmem:[%s7451_s3 + $0x118] sm:$0xff] }
 0x1e9   : > { %v1847_v63 = vsel %vm1824_vm7, %v1814_v49, %v5108_v33  ;;  %v1848_v60 = vsel %vm1824_vm7, %v1815_v0, %v5109_v44  ;;  %v5154_v49 = vunpack.i.h.bf16 %v6350_v19  ;;  %v5153_v0 = vunpack.i.l.bf16 %v6350_v19  ;;  %3646 = vmatpush.bf16.msrb.mxu1 %v4578_v13 }
 0x1ea   : > { %v1880_v31 = vsel %vm1857_vm8, %v1847_v63, %v5113_v53  ;;  %v1881_v17 = vsel %vm1857_vm8, %v1848_v60, %v5114_v32  ;;  %v1718_v52 = vsel %vm291_vm0, %v405_v30, %v5129_v41  ;;  %v1717_v47 = vsel %vm291_vm0, %v404_v24, %v5128_v6  ;;  %v4577_v60 = vld [vmem:[%s7451_s3 + $0x110] sm:$0xff]  ;;  %v406_v41 = vld [vmem:[#allocation2 + $0x138] sm:$0xff]  ;;  %v407_v6 = vld [vmem:[#allocation2 + $0x140] sm:$0xff] }
 0x1eb   : > { %v4575_v30 = vld [vmem:[%s7451_s3 + $0x100] sm:$0xff] }
 0x1ed   : > { %v5117_v50 = vpop.permute.xlu1 %5116  ;;  %3647 = vmatpush.bf16.msrb.mxu1 %v4577_v60 }
 0x1ee   : > { %v5119_v29 = vunpack.i.h.bf16 %v5117_v50  ;;  %v5118_v20 = vunpack.i.l.bf16 %v5117_v50  ;;  %v2284_v57 = vld [vmem:[#allocation3 + $0x80] sm:$0xff]  ;;  %v6372_v14 = vpop.permute.xlu2 %5166 }
 0x1ef   : > { %v6359_v62 = vpack.c.bf16 %v2284_v57, %v2283_v54  ;;  %v5142_v36 = vpop.permute.xlu0 %5141 }
 0x1f0   : > { %v1913_v5 = vsel %vm1890_vm9, %v1880_v31, %v5118_v20  ;;  %v1914_v37 = vsel %vm1890_vm9, %v1881_v17, %v5119_v29  ;;  %v5144_v9 = vunpack.i.h.bf16 %v5142_v36  ;;  %v5143_v10 = vunpack.i.l.bf16 %v5142_v36  ;;  %v4576_v17 = vld [vmem:[%s7451_s3 + $0x108] sm:$0xff] }
 0x1f1   : > { %v2099_v39 = vpop.f32.mrf.mxu0  ;;  %3319 = vmatmul.bf16.gmra.mxu1 %v6359_v62  ;;  %v1946_v38 = vsel %vm1923_vm10, %v1913_v5, %v5123_v58  ;;  %v1947_v15 = vsel %vm1923_vm10, %v1914_v37, %v5124_v26 }
 0x1f2   : > { %v2100_v18 = vadd.f32 %v6089_v3, %v2099_v39  ;;  %v1967_v27 = vpack.c.bf16 %v1947_v15, %v1946_v38  ;;  %v5169_v15 = vunpack.i.h.bf16 %v6372_v14  ;;  %3648 = vmatpush.bf16.msrb.mxu1 %v4576_v17  ;;  %v6443_v17 = vpop.f32.mrf.mxu1 }
 0x1f4   : > { %v2164_v23 = vmax.f32 %v2100_v18, 0.0  ;;  %4242 = vmatmul.msk.bf16.gmra.mxu3 %vm2012_vm11, %v1967_v27  ;;  %3576 = vmatmul.bf16.gmra.mxu0 %v6327_v61  ;;  %v5138_v61 = vunpack.i.l.bf16 %v6334_v2  ;;  %v5168_v18 = vunpack.i.l.bf16 %v6372_v14 }
 0x1f5   : > { %v5132_v46 = vpop.permute.xlu1 %5131 }
 0x1f6   : > { %2251 = vst [vmem:[#allocation3 + $0x91] sm:$0xff] %v2164_v23  ;;  %v5134_v56 = vunpack.i.h.bf16 %v5132_v46  ;;  %v5133_v16 = vunpack.i.l.bf16 %v5132_v46  ;;  %v5182_v32 = vpop.permute.xlu2 %5181  ;;  %v1719_v14 = vsel %vm291_vm0, %v406_v41, %v5168_v18  ;;  %3649 = vmatpush.bf16.msrb.mxu1 %v4575_v30 }
 0x1f7   : > { %v5157_v34 = vpop.permute.xlu0 %5156 }
 0x1f8   : > { %v1750_v42 = vsel %vm1725_vm4, %v1717_v47, %v5133_v16  ;;  %v1751_v1 = vsel %vm1725_vm4, %v1718_v52, %v5134_v56  ;;  %v5159_v50 = vunpack.i.h.bf16 %v5157_v34  ;;  %v5158_v26 = vunpack.i.l.bf16 %v5157_v34 }
 0x1f9   : > { %v2101_v59 = vpop.f32.mrf.mxu0  ;;  %v1784_v22 = vsel %vm1758_vm5, %v1751_v1, %v5139_v48  ;;  %v1783_v12 = vsel %vm1758_vm5, %v1750_v42, %v5138_v61  ;;  %v1720_v16 = vsel %vm291_vm0, %v407_v6, %v5169_v15  ;;  %v5183_v42 = vunpack.i.l.bf16 %v5182_v32 }
 0x1fa   : > { %v2102_v4 = vadd.f32 %v6089_v3, %v2101_v59  ;;  %v1816_v44 = vsel %vm1791_vm6, %v1783_v12, %v5143_v10  ;;  %v1817_v33 = vsel %vm1791_vm6, %v1784_v22, %v5144_v9  ;;  %v5184_v59 = vunpack.i.h.bf16 %v5182_v32 }
 0x1fc   : > { %v2165_v51 = vmax.f32 %v2102_v4, 0.0 }
 0x1fd   : > { %v5147_v2 = vpop.permute.xlu1 %5146  ;;  %v2285_v19 = vld [vmem:[#allocation3 + $0x90] sm:$0xff] }
 0x1fe   : > { %2252 = vst [vmem:[#allocation3 + $0x99] sm:$0xff] %v2165_v51  ;;  %v5149_v43 = vunpack.i.h.bf16 %v5147_v2  ;;  %v5148_v7 = vunpack.i.l.bf16 %v5147_v2  ;;  %v6392_v55 = vpack.c.bf16 %v2165_v51, %v2164_v23  ;;  %v5197_v24 = vpop.permute.xlu2 %5196 }
 0x1ff   : > { %v5172_v45 = vpop.permute.xlu0 %5171  ;;  %v5199_v13 = vunpack.i.h.bf16 %v5197_v24 }
 0x200   : > { %v1849_v53 = vsel %vm1824_vm7, %v1816_v44, %v5148_v7  ;;  %v1850_v63 = vsel %vm1824_vm7, %v1817_v33, %v5149_v43  ;;  %v5174_v46 = vunpack.i.h.bf16 %v5172_v45  ;;  %v5173_v56 = vunpack.i.l.bf16 %v5172_v45 }
 0x201   : > { %v1882_v58 = vsel %vm1857_vm8, %v1849_v53, %v5153_v0  ;;  %v1883_v29 = vsel %vm1857_vm8, %v1850_v63, %v5154_v49  ;;  %v5198_v45 = vunpack.i.l.bf16 %v5197_v24  ;;  %v4564_v24 = vld [vmem:[%s7451_s3 + $0xa8] sm:$0xff] }
 0x202   : > { %v1915_v36 = vsel %vm1890_vm9, %v1882_v58, %v5158_v26  ;;  %v1916_v5 = vsel %vm1890_vm9, %v1883_v29, %v5159_v50  ;;  %v1752_v48 = vsel %vm1725_vm4, %v1719_v14, %v5173_v56  ;;  %v1753_v61 = vsel %vm1725_vm4, %v1720_v16, %v5174_v46  ;;  %v6457_v16 = vld [vmem:[%s7450_s2] ss:$0 sm:$0xff] }
 0x204   : > { %3581 = vmatmul.bf16.gmra.mxu0 %v6359_v62 }
 0x205   : > { %v5162_v20 = vpop.permute.xlu1 %5161  ;;  %v2286_v54 = vld [vmem:[#allocation3 + $0x98] sm:$0xff] }
 0x206   : > { %v5164_v57 = vunpack.i.h.bf16 %v5162_v20  ;;  %v5163_v35 = vunpack.i.l.bf16 %v5162_v20  ;;  %v2616_v31 = vpack.c.bf16 %v2286_v54, %v2285_v19  ;;  %v5212_v43 = vpop.permute.xlu2 %5211 }
 0x207   : > { %v5187_v37 = vpop.permute.xlu0 %5186  ;;  %v5214_v41 = vunpack.i.h.bf16 %v5212_v43  ;;  %v5213_v6 = vunpack.i.l.bf16 %v5212_v43 }
 0x208   : > { %v2104_v39 = vpop.f32.mrf.mxu0  ;;  %3324 = vmatmul.bf16.gmra.mxu1 %v2616_v31  ;;  %v1948_v62 = vsel %vm1923_vm10, %v1915_v36, %v5163_v35  ;;  %v1949_v38 = vsel %vm1923_vm10, %v1916_v5, %v5164_v57  ;;  %v5189_v10 = vunpack.i.h.bf16 %v5187_v37  ;;  %v5188_v51 = vunpack.i.l.bf16 %v5187_v37  ;;  %v4566_v57 = vld [vmem:[%s7451_s3 + $0xb8] sm:$0xff] }
 0x209   : > { %v2105_v27 = vadd.f32 %v6089_v3, %v2104_v39  ;;  %v1968_v28 = vpack.c.bf16 %v1949_v38, %v1948_v62  ;;  %3464 = vmatpush.bf16.msrb.mxu3 %v4566_v57 }
 0x20b   : > { %v2166_v23 = vmax.f32 %v2105_v27, 0.0  ;;  %4243 = vmatmul.msk.bf16.gmra.mxu3 %vm2012_vm11, %v1968_v28  ;;  %v408_v27 = vld [vmem:[#allocation2 + $0x150] sm:$0xff]  ;;  %v409_v28 = vld [vmem:[#allocation2 + $0x158] sm:$0xff] }
 0x20d   : > { %2253 = vst [vmem:[#allocation3 + $0xa9] sm:$0xff] %v2166_v23  ;;  %v5177_v40 = vpop.permute.xlu1 %5176 }
 0x20e   : > { %v5179_v52 = vunpack.i.h.bf16 %v5177_v40  ;;  %v5178_v47 = vunpack.i.l.bf16 %v5177_v40  ;;  %v5227_v18 = vpop.permute.xlu2 %5226 }
 0x20f   : > { %v5202_v34 = vpop.permute.xlu0 %5201 }
 0x210   : > { %v2106_v1 = vpop.f32.mrf.mxu0  ;;  %v1785_v4 = vsel %vm1758_vm5, %v1752_v48, %v5178_v47  ;;  %v1786_v8 = vsel %vm1758_vm5, %v1753_v61, %v5179_v52  ;;  %v5204_v0 = vunpack.i.h.bf16 %v5202_v34  ;;  %v5203_v32 = vunpack.i.l.bf16 %v5202_v34 }
 0x211   : > { %v2107_v9 = vadd.f32 %v6089_v3, %v2106_v1  ;;  %v1818_v12 = vsel %vm1791_vm6, %v1785_v4, %v5183_v42  ;;  %v1819_v2 = vsel %vm1791_vm6, %v1786_v8, %v5184_v59  ;;  %v6462_v59 = vpop.f32.mrf.mxu1  ;;  %v4563_v4 = vld [vmem:[%s7451_s3 + $0xa0] sm:$0xff] }
 0x212   : > { %v1851_v53 = vsel %vm1824_vm7, %v1818_v12, %v5188_v51  ;;  %v1852_v63 = vsel %vm1824_vm7, %v1819_v2, %v5189_v10  ;;  %v5229_v51 = vunpack.i.h.bf16 %v5227_v18 }
 0x213   : > { %v2167_v22 = vmax.f32 %v2107_v9, 0.0 }
 0x214   : > { %3586 = vmatmul.bf16.gmra.mxu0 %v2616_v31  ;;  %v2287_v36 = vld [vmem:[#allocation3 + $0xa8] sm:$0xff] }
 0x215   : > { %2254 = vst [vmem:[#allocation3 + $0xb1] sm:$0xff] %v2167_v22  ;;  %v5192_v7 = vpop.permute.xlu1 %5191  ;;  %v6429_v44 = vpack.c.bf16 %v2167_v22, %v2166_v23  ;;  %v5228_v22 = vunpack.i.l.bf16 %v5227_v18 }
 0x216   : > { %v5194_v33 = vunpack.i.h.bf16 %v5192_v7  ;;  %v5193_v49 = vunpack.i.l.bf16 %v5192_v7  ;;  %v5242_v12 = vpop.permute.xlu2 %5241  ;;  %v2402_v7 = vld [vmem:[#allocation3 + $0x21] sm:$0xff] }
 0x217   : > { %v5217_v26 = vpop.permute.xlu0 %5216 }
 0x218   : > { %v1884_v60 = vsel %vm1857_vm8, %v1851_v53, %v5193_v49  ;;  %v1885_v50 = vsel %vm1857_vm8, %v1852_v63, %v5194_v33  ;;  %v5219_v40 = vunpack.i.h.bf16 %v5217_v26  ;;  %v5218_v52 = vunpack.i.l.bf16 %v5217_v26  ;;  %v4562_v49 = vld [vmem:[%s7451_s3 + $0x98] sm:$0xff]  ;;  %v2401_v53 = vld [vmem:[#allocation3 + $0x19] sm:$0xff] }
 0x219   : > { %v1917_v58 = vsel %vm1890_vm9, %v1884_v60, %v5198_v45  ;;  %v1918_v29 = vsel %vm1890_vm9, %v1885_v50, %v5199_v13  ;;  %v5244_v60 = vunpack.i.h.bf16 %v5242_v12  ;;  %v5243_v50 = vunpack.i.l.bf16 %v5242_v12 }
 0x21a   : > { %v2109_v20 = vpop.f32.mrf.mxu0  ;;  %v1950_v19 = vsel %vm1923_vm10, %v1917_v58, %v5203_v32  ;;  %v1951_v54 = vsel %vm1923_vm10, %v1918_v29, %v5204_v0  ;;  %v6478_v26 = vpack.c.bf16 %v2402_v7, %v2401_v53  ;;  %v4558_v53 = vld [vmem:[%s7451_s3 + $0x78] sm:$0xff] }
 0x21b   : > { %v2110_v35 = vadd.f32 %v6089_v3, %v2109_v20  ;;  %v1969_v31 = vpack.c.bf16 %v1951_v54, %v1950_v19  ;;  %v4565_v3 = vld [vmem:[%s7451_s3 + $0xb0] sm:$0xff]  ;;  %3375 = vmatpush.bf16.msrb.mxu2 %v4558_v53 }
 0x21c   : > { %v2288_v5 = vld [vmem:[#allocation3 + $0xb0] sm:$0xff]  ;;  %3465 = vmatpush.bf16.msrb.mxu3 %v4565_v3  ;;  %v410_v3 = vld [vmem:[#allocation2 + $0x168] sm:$0xff] }
 0x21d   : > { %v2168_v37 = vmax.f32 %v2110_v35, 0.0  ;;  %v5207_v39 = vpop.permute.xlu1 %5206  ;;  %4244 = vmatmul.msk.bf16.gmra.mxu3 %vm2012_vm11, %v1969_v31  ;;  %v2625_v62 = vpack.c.bf16 %v2288_v5, %v2287_v36  ;;  %v4561_v31 = vld [vmem:[%s7451_s3 + $0x90] sm:$0xff]  ;;  %v6486_v36 = vpop.f32.mrf.mxu1 }
 0x21e   : > { %v5209_v38 = vunpack.i.h.bf16 %v5207_v39  ;;  %v5208_v15 = vunpack.i.l.bf16 %v5207_v39  ;;  %v5257_v39 = vpop.permute.xlu2 %5256  ;;  %v2339_v53 = vld [vmem:[#allocation3 + $0x1a] sm:$0xff] }
 0x21f   : > { %2255 = vst [vmem:[#allocation3 + $0xc1] sm:$0xff] %v2168_v37  ;;  %3329 = vmatmul.bf16.gmra.mxu1 %v2625_v62  ;;  %v5232_v56 = vpop.permute.xlu0 %5231 }
 0x220   : > { %v1722_v30 = vsel %vm291_vm0, %v409_v28, %v5209_v38  ;;  %v1721_v23 = vsel %vm291_vm0, %v408_v27, %v5208_v15  ;;  %3466 = vmatpush.bf16.msrb.mxu3 %v4564_v24  ;;  %v5234_v45 = vunpack.i.h.bf16 %v5232_v56  ;;  %v5233_v33 = vunpack.i.l.bf16 %v5232_v56  ;;  %v4560_v24 = vld [vmem:[%s7451_s3 + $0x88] sm:$0xff] }
 0x221   : > { %v1755_v47 = vsel %vm1725_vm4, %v1722_v30, %v5214_v41  ;;  %v1754_v34 = vsel %vm1725_vm4, %v1721_v23, %v5213_v6  ;;  %v411_v41 = vld [vmem:[#allocation2 + $0x170] sm:$0xff] }
 0x222   : > { %v2111_v46 = vpop.f32.mrf.mxu0  ;;  %v1787_v9 = vsel %vm1758_vm5, %v1754_v34, %v5218_v52  ;;  %v1788_v10 = vsel %vm1758_vm5, %v1755_v47, %v5219_v40  ;;  %v5259_v47 = vunpack.i.h.bf16 %v5257_v39  ;;  %v5258_v34 = vunpack.i.l.bf16 %v5257_v39 }
 0x223   : > { %v2112_v14 = vadd.f32 %v6457_v16, %v2111_v46 }
 0x224   : > { %3591 = vmatmul.bf16.gmra.mxu0 %v2625_v62  ;;  %3467 = vmatpush.bf16.msrb.mxu3 %v4563_v4 }
 0x225   : > { %v2169_v48 = vmax.f32 %v2112_v14, 0.0  ;;  %v5222_v61 = vpop.permute.xlu1 %5221 }
 0x226   : > { %v5224_v42 = vunpack.i.h.bf16 %v5222_v61  ;;  %v5223_v1 = vunpack.i.l.bf16 %v5222_v61  ;;  %v2289_v20 = vld [vmem:[#allocation3 + $0xc0] sm:$0xff] }
 0x227   : > { %2256 = vst [vmem:[#allocation3 + $0xc9] sm:$0xff] %v2169_v48  ;;  %v6467_v8 = vpack.c.bf16 %v2169_v48, %v2168_v37  ;;  %v5247_v13 = vpop.permute.xlu0 %5246  ;;  %v4559_v48 = vld [vmem:[%s7451_s3 + $0x80] sm:$0xff] }
 0x228   : > { %v1820_v2 = vsel %vm1791_vm6, %v1787_v9, %v5223_v1  ;;  %v1821_v43 = vsel %vm1791_vm6, %v1788_v10, %v5224_v42  ;;  %3468 = vmatpush.bf16.msrb.mxu3 %v4562_v49  ;;  %v5249_v38 = vunpack.i.h.bf16 %v5247_v13  ;;  %v5248_v15 = vunpack.i.l.bf16 %v5247_v13  ;;  %v6504_v10 = vpop.f32.mrf.mxu1  ;;  %v2403_v13 = vld [vmem:[#allocation3 + $0x31] sm:$0xff] }
 0x229   : > { %v1853_v0 = vsel %vm1824_vm7, %v1820_v2, %v5228_v22  ;;  %v1854_v32 = vsel %vm1824_vm7, %v1821_v43, %v5229_v51  ;;  %v2404_v2 = vld [vmem:[#allocation3 + $0x39] sm:$0xff]  ;;  %v5272_v43 = vpop.permute.xlu2 %5271 }
 0x22a   : > { %v1886_v54 = vsel %vm1857_vm8, %v1853_v0, %v5233_v33  ;;  %v1887_v57 = vsel %vm1857_vm8, %v1854_v32, %v5234_v45  ;;  %v1724_v46 = vsel %vm291_vm0, %v411_v41, %v5249_v38  ;;  %v1723_v56 = vsel %vm291_vm0, %v410_v3, %v5248_v15 }
 0x22b   : > { %v6511_v0 = vpack.c.bf16 %v2404_v2, %v2403_v13  ;;  %v5274_v32 = vunpack.i.h.bf16 %v5272_v43 }
 0x22c   : > { %3469 = vmatpush.bf16.msrb.mxu3 %v4561_v31 }
 0x22d   : > { %v5237_v63 = vpop.permute.xlu1 %5236 }
 0x22e   : > { %v5239_v58 = vunpack.i.h.bf16 %v5237_v63  ;;  %v5238_v29 = vunpack.i.l.bf16 %v5237_v63  ;;  %v2290_v19 = vld [vmem:[#allocation3 + $0xc8] sm:$0xff] }
 0x22f   : > { %3650 = vmatmul.bf16.vlgmr.msrb.gmra.mxu1 %v6478_v26  ;;  %v2634_v35 = vpack.c.bf16 %v2290_v19, %v2289_v20  ;;  %v5262_v23 = vpop.permute.xlu0 %5261 }
 0x230   : > { %v1919_v5 = vsel %vm1890_vm9, %v1886_v54, %v5238_v29  ;;  %v1920_v37 = vsel %vm1890_vm9, %v1887_v57, %v5239_v58  ;;  %3470 = vmatpush.bf16.msrb.mxu3 %v4560_v24  ;;  %v5264_v4 = vunpack.i.h.bf16 %v5262_v23  ;;  %v5263_v9 = vunpack.i.l.bf16 %v5262_v23  ;;  %v2406_v24 = vld [vmem:[#allocation3 + $0x51] sm:$0xff]  ;;  %v2405_v23 = vld [vmem:[#allocation3 + $0x49] sm:$0xff] }
 0x231   : > { %v2114_v62 = vpop.f32.mrf.mxu0  ;;  %3334 = vmatmul.bf16.vlgmr.msra.gmra.mxu2 %v2634_v35  ;;  %v1952_v18 = vsel %vm1923_vm10, %v1919_v5, %v5243_v50  ;;  %v1953_v27 = vsel %vm1923_vm10, %v1920_v37, %v5244_v60  ;;  %v5273_v50 = vunpack.i.l.bf16 %v5272_v43 }
 0x232   : > { %v2115_v28 = vadd.f32 %v6457_v16, %v2114_v62  ;;  %v1970_v6 = vpack.c.bf16 %v1953_v27, %v1952_v18 }
 0x234   : > { %v2170_v30 = vmax.f32 %v2115_v28, 0.0  ;;  %4245 = vmatmul.msk.bf16.gmra.mxu3 %vm2012_vm11, %v1970_v6  ;;  %3596 = vmatmul.bf16.gmra.mxu0 %v2634_v35  ;;  %v6521_v35 = vpop.f32.mrf.mxu1 }
 0x235   : > { %v5252_v14 = vpop.permute.xlu1 %5251  ;;  %3471 = vmatpush.bf16.msrb.mxu3 %v4559_v48  ;;  %v2338_v48 = vld [vmem:[#allocation3 + $0xa] sm:$0xff] }
 0x236   : > { %2257 = vst [vmem:[#allocation3 + $0xd9] sm:$0xff] %v2170_v30  ;;  %v5254_v40 = vunpack.i.h.bf16 %v5252_v14  ;;  %v5253_v52 = vunpack.i.l.bf16 %v5252_v14 }
 0x237   : > { %v5277_v58 = vpop.permute.xlu0 %5276 }
 0x238   : > { %v1756_v61 = vsel %vm1725_vm4, %v1723_v56, %v5253_v52  ;;  %v1757_v42 = vsel %vm1725_vm4, %v1724_v46, %v5254_v40  ;;  %v5279_v54 = vunpack.i.h.bf16 %v5277_v58  ;;  %v5278_v57 = vunpack.i.l.bf16 %v5277_v58  ;;  %v4557_v40 = vld [vmem:[%s7451_s3 + $0x70] sm:$0xff] }
 0x239   : > { %v2116_v1 = vpop.f32.mrf.mxu0  ;;  %v1790_v22 = vsel %vm1758_vm5, %v1757_v42, %v5259_v47  ;;  %v1789_v12 = vsel %vm1758_vm5, %v1756_v61, %v5258_v34  ;;  %v6532_v46 = vpack.c.bf16 %v2406_v24, %v2405_v23  ;;  %3376 = vmatpush.bf16.msrb.mxu2 %v4557_v40  ;;  %v2337_v34 = vld [vmem:[#allocation3 + $0x2] sm:$0xff]  ;;  %v2344_v40 = vld [vmem:[#allocation3 + $0x52] sm:$0xff] }
 0x23a   : > { %v2117_v51 = vadd.f32 %v6457_v16, %v2116_v1  ;;  %v1822_v45 = vsel %vm1791_vm6, %v1789_v12, %v5263_v9  ;;  %v1823_v33 = vsel %vm1791_vm6, %v1790_v22, %v5264_v4  ;;  %v2564_v1 = vpack.c.bf16 %v2338_v48, %v2337_v34  ;;  %v6542_v9 = vld [vmem:[#allocation3 + $0x61] sm:$0xff]  ;;  %v4556_v22 = vld [vmem:[%s7451_s3 + $0x68] sm:$0xff] }
 0x23b   : > { %v2593_v12 = vpack.c.bf16 %v2161_v11, %v6542_v9 }
 0x23c   : > { %v2171_v7 = vmax.f32 %v2117_v51, 0.0 }
 0x23d   : > { %v5267_v49 = vpop.permute.xlu1 %5266  ;;  %v2291_v38 = vld [vmem:[#allocation3 + $0xd8] sm:$0xff]  ;;  %3377 = vmatpush.bf16.msrb.mxu2 %v4556_v22 }
 0x23e   : > { %2258 = vst [vmem:[#allocation3 + $0xe1] sm:$0xff] %v2171_v7  ;;  %v5269_v63 = vunpack.i.h.bf16 %v5267_v49  ;;  %v5268_v60 = vunpack.i.l.bf16 %v5267_v49  ;;  %v6516_v29 = vpack.c.bf16 %v2171_v7, %v2170_v30  ;;  %v6530_v30 = vpop.f32.mrf.mxu1 }
 0x23f   : > { %3655 = vmatmul.bf16.gmra.mxu1 %v6511_v0 }
 0x240   : > { %v1855_v20 = vsel %vm1824_vm7, %v1822_v45, %v5268_v60  ;;  %v1856_v19 = vsel %vm1824_vm7, %v1823_v33, %v5269_v63  ;;  %v2340_v63 = vld [vmem:[#allocation3 + $0x22] sm:$0xff] }
 0x241   : > { %v1888_v31 = vsel %vm1857_vm8, %v1855_v20, %v5273_v50  ;;  %v1889_v5 = vsel %vm1857_vm8, %v1856_v19, %v5274_v32  ;;  %v2573_v60 = vpack.c.bf16 %v2340_v63, %v2339_v53  ;;  %v6563_v19 = vpop.f32.mrf.mxu0 }
 0x242   : > { %v1921_v37 = vsel %vm1890_vm9, %v1888_v31, %v5278_v57  ;;  %v1922_v39 = vsel %vm1890_vm9, %v1889_v5, %v5279_v54  ;;  %v4555_v54 = vld [vmem:[%s7451_s3 + $0x60] sm:$0xff] }
 0x243   : > { %3378 = vmatpush.bf16.msrb.mxu2 %v4555_v54 }
 0x245   : > { %v5282_v62 = vpop.permute.xlu1 %5281  ;;  %v2292_v15 = vld [vmem:[#allocation3 + $0xe0] sm:$0xff] }
 0x246   : > { %v5284_v18 = vunpack.i.h.bf16 %v5282_v62  ;;  %v5283_v27 = vunpack.i.l.bf16 %v5282_v62  ;;  %v2643_v28 = vpack.c.bf16 %v2292_v15, %v2291_v38  ;;  %v6539_v47 = vpop.f32.mrf.mxu1 }
 0x248   : > { %3339 = vmatmul.bf16.gmra.mxu2 %v2643_v28  ;;  %3601 = vmatmul.bf16.gmra.mxu0 %v2643_v28  ;;  %v1954_v3 = vsel %vm1923_vm10, %v1921_v37, %v5283_v27  ;;  %v1955_v41 = vsel %vm1923_vm10, %v1922_v39, %v5284_v18  ;;  %v2341_v37 = vld [vmem:[#allocation3 + $0x32] sm:$0xff]  ;;  %v2342_v39 = vld [vmem:[#allocation3 + $0x3a] sm:$0xff]  ;;  %v4554_v28 = vld [vmem:[%s7451_s3 + $0x58] sm:$0xff] }
 0x249   : > { %v1971_v6 = vpack.c.bf16 %v1955_v41, %v1954_v3  ;;  %v6571_v15 = vpack.c.bf16 %v2342_v39, %v2341_v37  ;;  %v6574_v27 = vpop.f32.mrf.mxu0  ;;  %3379 = vmatpush.bf16.msrb.mxu2 %v4554_v28 }
 0x24b   : > { %4246 = vmatmul.msk.bf16.gmra.mxu3 %vm2012_vm11, %v1971_v6 }
 0x24e   : > { %v2119_v56 = vpop.f32.mrf.mxu3  ;;  %v6552_v2 = vpop.f32.mrf.mxu1 }
 0x24f   : > { %v2120_v14 = vadd.f32 %v6457_v16, %v2119_v56  ;;  %3660 = vmatmul.bf16.gmra.mxu1 %v6532_v46  ;;  %7456 = vst [vmem:[#allocation4_spill] sm:$0xff] %v6552_v2 }
 0x251   : > { %v2172_v52 = vmax.f32 %v2120_v14, 0.0  ;;  %v6585_v56 = vpop.f32.mrf.mxu0  ;;  %v2343_v14 = vld [vmem:[#allocation3 + $0x4a] sm:$0xff] }
 0x253   : > { %2259 = vst [vmem:[#allocation3 + $0xf1] sm:$0xff] %v2172_v52 }
 0x256   : > { %v2121_v61 = vpop.f32.mrf.mxu3 }
 0x257   : > { %v2122_v42 = vadd.f32 %v6457_v16, %v2121_v61 }
 0x259   : > { %v2173_v4 = vmax.f32 %v2122_v42, 0.0  ;;  %v4553_v42 = vld [vmem:[%s7451_s3 + $0x50] sm:$0xff]  ;;  %v6597_v22 = vpop.f32.mrf.mxu0 }
 0x25a   : > { %v2293_v13 = vld [vmem:[#allocation3 + $0xf0] sm:$0xff]  ;;  %3380 = vmatpush.bf16.msrb.mxu2 %v4553_v42 }
 0x25b   : > { %2260 = vst [vmem:[#allocation3 + $0xf9] sm:$0xff] %v2173_v4  ;;  %3472 = vmatmul.bf16.vlgmr.msrb.gmra.mxu3 %v2564_v1  ;;  %v6544_v51 = vpack.c.bf16 %v2173_v4, %v2172_v52  ;;  %v6587_v52 = vpack.c.bf16 %v2344_v40, %v2343_v14  ;;  %v4551_v40 = vld [vmem:[%s7451_s3 + $0x40] sm:$0xff] }
 0x25c   : > { %v6555_v32 = vpop.f32.mrf.mxu1 }
 0x25f   : > { %3665 = vmatmul.bf16.gmra.mxu1 %v2593_v12 }
 0x260   : > { %v2124_v43 = vpop.f32.mrf.mxu3 }
 0x261   : > { %v2125_v7 = vadd.f32 %v6457_v16, %v2124_v43  ;;  %v6604_v63 = vpop.f32.mrf.mxu0 }
 0x262   : > { %v2294_v45 = vld [vmem:[#allocation3 + $0xf8] sm:$0xff] }
 0x263   : > { %v2174_v33 = vmax.f32 %v2125_v7, 0.0  ;;  %v2652_v49 = vpack.c.bf16 %v2294_v45, %v2293_v13  ;;  %v2345_v13 = vld [vmem:[#allocation3 + $0x62] sm:$0xff]  ;;  %v2346_v45 = vld [vmem:[#allocation3 + $0x6a] sm:$0xff] }
 0x264   : > { %v6561_v20 = vpop.f32.mrf.mxu1  ;;  %v6602_v53 = vpack.c.bf16 %v2346_v45, %v2345_v13 }
 0x265   : > { %2261 = vst [vmem:[#allocation3 + $0x109] sm:$0xff] %v2174_v33  ;;  %3344 = vmatmul.bf16.gmra.mxu2 %v2652_v49  ;;  %3606 = vmatmul.bf16.gmra.mxu0 %v2652_v49 }
 0x266   : > { %7457 = vst [vmem:[#allocation5_spill] sm:$0xff] %v6561_v20 }
 0x268   : > { %v2126_v21 = vpop.f32.mrf.mxu3 }
 0x269   : > { %v2127_v11 = vadd.f32 %v6457_v16, %v2126_v21  ;;  %v6616_v37 = vpop.f32.mrf.mxu0 }
 0x26a   : > { %7460 = vst [vmem:[#allocation8_spill] sm:$0xff] %v6616_v37 }
 0x26b   : > { %v2175_v50 = vmax.f32 %v2127_v11, 0.0  ;;  %3477 = vmatmul.bf16.gmra.mxu3 %v2573_v60  ;;  %v4552_v11 = vld [vmem:[%s7451_s3 + $0x48] sm:$0xff] }
 0x26c   : > { %v2295_v57 = vld [vmem:[#allocation3 + $0x108] sm:$0xff]  ;;  %3381 = vmatpush.bf16.msrb.mxu2 %v4552_v11 }
 0x26d   : > { %2262 = vst [vmem:[#allocation3 + $0x111] sm:$0xff] %v2175_v50  ;;  %v6558_v58 = vpack.c.bf16 %v2175_v50, %v2174_v33 }
 0x26e   : > { %v6568_v38 = vpop.f32.mrf.mxu1 }
 0x26f   : > { %3670 = vmatmul.bf16.gmra.mxu1 %v6340_v25 }
 0x270   : > { %3382 = vmatpush.bf16.msrb.mxu2 %v4551_v40  ;;  %v4602_v40 = vld [vmem:[%s7451_s3 + $0x1d8] sm:$0xff] }
 0x271   : > { %v6628_v14 = vpop.f32.mrf.mxu0 }
 0x272   : > { %7461 = vst [vmem:[#allocation9_spill] sm:$0xff] %v6628_v14 }
 0x274   : > { %v2296_v31 = vld [vmem:[#allocation3 + $0x110] sm:$0xff] }
 0x275   : > { %v2661_v5 = vpack.c.bf16 %v2296_v31, %v2295_v57 }
 0x276   : > { %v6581_v6 = vpop.f32.mrf.mxu1 }
 0x277   : > { %v2129_v62 = vpop.f32.mrf.mxu3  ;;  %3349 = vmatmul.bf16.gmra.mxu2 %v2661_v5  ;;  %3611 = vmatmul.bf16.gmra.mxu0 %v2661_v5  ;;  %7458 = vst [vmem:[#allocation6_spill] sm:$0xff] %v6581_v6  ;;  %v4588_v6 = vld [vmem:[%s7451_s3 + $0x168] sm:$0xff] }
 0x278   : > { %v2130_v25 = vadd.f32 %v6457_v16, %v2129_v62  ;;  %v2347_v62 = vld [vmem:[#allocation3 + $0x7a] sm:$0xff] }
 0x27a   : > { %v2176_v18 = vmax.f32 %v2130_v25, 0.0  ;;  %v2348_v25 = vld [vmem:[#allocation3 + $0x82] sm:$0xff] }
 0x27b   : > { %3482 = vmatmul.bf16.gmra.mxu3 %v6571_v15  ;;  %v6621_v28 = vpack.c.bf16 %v2348_v25, %v2347_v62  ;;  %v4603_v25 = vld [vmem:[%s7451_s3 + $0x1e0] sm:$0xff] }
 0x27c   : > { %2263 = vst [vmem:[#allocation3 + $0x121] sm:$0xff] %v2176_v18 }
 0x27f   : > { %v2131_v3 = vpop.f32.mrf.mxu3  ;;  %3675 = vmatmul.bf16.gmra.mxu1 %v6392_v55 }
 0x280   : > { %v2132_v41 = vadd.f32 %v6457_v16, %v2131_v3 }
 0x282   : > { %v2177_v24 = vmax.f32 %v2132_v41, 0.0 }
 0x283   : > { %v2297_v55 = vld [vmem:[#allocation3 + $0x120] sm:$0xff] }
 0x284   : > { %2264 = vst [vmem:[#allocation3 + $0x129] sm:$0xff] %v2177_v24  ;;  %v6583_v23 = vpack.c.bf16 %v2177_v24, %v2176_v18 }
 0x285   : > { %v6589_v34 = vpop.f32.mrf.mxu1 }
 0x28b   : > { %3487 = vmatmul.bf16.gmra.mxu3 %v6587_v52  ;;  %v2298_v48 = vld [vmem:[#allocation3 + $0x128] sm:$0xff] }
 0x28c   : > { %v2670_v61 = vpack.c.bf16 %v2298_v48, %v2297_v55 }
 0x28d   : > { %v6599_v43 = vpop.f32.mrf.mxu1 }
 0x28e   : > { %v2134_v1 = vpop.f32.mrf.mxu3  ;;  %3354 = vmatmul.bf16.gmra.mxu2 %v2670_v61  ;;  %3616 = vmatmul.bf16.gmra.mxu0 %v2670_v61  ;;  %7459 = vst [vmem:[#allocation7_spill] sm:$0xff] %v6599_v43 }
 0x28f   : > { %v2135_v4 = vadd.f32 %v6457_v16, %v2134_v1  ;;  %3680 = vmatmul.bf16.gmra.mxu1 %v6429_v44  ;;  %v2349_v1 = vld [vmem:[#allocation3 + $0x92] sm:$0xff] }
 0x291   : > { %v2178_v12 = vmax.f32 %v2135_v4, 0.0  ;;  %v2350_v4 = vld [vmem:[#allocation3 + $0x9a] sm:$0xff] }
 0x292   : > { %v6642_v45 = vpack.c.bf16 %v2350_v4, %v2349_v1  ;;  %v4601_v4 = vld [vmem:[%s7451_s3 + $0x1d0] sm:$0xff] }
 0x293   : > { %2265 = vst [vmem:[#allocation3 + $0x139] sm:$0xff] %v2178_v12 }
 0x296   : > { %v2136_v7 = vpop.f32.mrf.mxu3 }
 0x297   : > { %v2137_v33 = vadd.f32 %v6457_v16, %v2136_v7  ;;  %v6636_v7 = vpop.f32.mrf.mxu0 }
 0x298   : > { %7462 = vst [vmem:[#allocation10_spill] sm:$0xff] %v6636_v7 }
 0x299   : > { %v2179_v49 = vmax.f32 %v2137_v33, 0.0 }
 0x29a   : > { %v2299_v54 = vld [vmem:[#allocation3 + $0x138] sm:$0xff] }
 0x29b   : > { %2266 = vst [vmem:[#allocation3 + $0x141] sm:$0xff] %v2179_v49  ;;  %3492 = vmatmul.bf16.gmra.mxu3 %v6602_v53  ;;  %v6607_v44 = vpack.c.bf16 %v2179_v49, %v2178_v12  ;;  %v4605_v49 = vld [vmem:[%s7451_s3 + $0x1f0] sm:$0xff] }
 0x29c   : > { %v6609_v21 = vpop.f32.mrf.mxu1 }
 0x29f   : > { %3685 = vmatmul.bf16.gmra.mxu1 %v6467_v8 }
 0x2a0   : > { %v2139_v60 = vpop.f32.mrf.mxu3 }
 0x2a1   : > { %v2140_v50 = vadd.f32 %v6457_v16, %v2139_v60  ;;  %v4590_v60 = vld [vmem:[%s7451_s3 + $0x178] sm:$0xff] }
 0x2a2   : > { %v2300_v57 = vld [vmem:[#allocation3 + $0x140] sm:$0xff]  ;;  %3731 = vmatpush.bf16.msra.mxu2 %v4590_v60  ;;  %v4600_v60 = vld [vmem:[%s7451_s3 + $0x1c8] sm:$0xff] }
 0x2a3   : > { %v2180_v31 = vmax.f32 %v2140_v50, 0.0  ;;  %v2679_v5 = vpack.c.bf16 %v2300_v57, %v2299_v54  ;;  %v4604_v50 = vld [vmem:[%s7451_s3 + $0x1e8] sm:$0xff]  ;;  %v4598_v57 = vld [vmem:[%s7451_s3 + $0x1b8] sm:$0xff] }
 0x2a4   : > { %v6618_v39 = vpop.f32.mrf.mxu1  ;;  %3820 = vmatpush.bf16.msra.mxu3 %v4598_v57  ;;  %v4599_v57 = vld [vmem:[%s7451_s3 + $0x1c0] sm:$0xff] }
 0x2a5   : > { %2267 = vst [vmem:[#allocation3 + $0x151] sm:$0xff] %v2180_v31  ;;  %3359 = vmatmul.bf16.gmra.mxu2 %v2679_v5  ;;  %3621 = vmatmul.bf16.gmra.mxu0 %v2679_v5  ;;  %v6661_v5 = vpop.f32.mrf.mxu0 }
 0x2a6   : > { %7463 = vst [vmem:[#allocation11_spill] sm:$0xff] %v6661_v5  ;;  %v2362_v5 = vld [vmem:[#allocation3 + $0x12a] sm:$0xff] }
 0x2a8   : > { %v2141_v18 = vpop.f32.mrf.mxu3 }
 0x2a9   : > { %v2142_v8 = vadd.f32 %v6457_v16, %v2141_v18 }
 0x2ab   : > { %v2181_v3 = vmax.f32 %v2142_v8, 0.0  ;;  %3497 = vmatmul.bf16.gmra.mxu3 %v6621_v28  ;;  %v2351_v8 = vld [vmem:[#allocation3 + $0xaa] sm:$0xff] }
 0x2ac   : > { %v6624_v41 = vpop.f32.mrf.mxu1  ;;  %v2301_v48 = vld [vmem:[#allocation3 + $0x150] sm:$0xff] }
 0x2ad   : > { %2268 = vst [vmem:[#allocation3 + $0x159] sm:$0xff] %v2181_v3  ;;  %v6626_v24 = vpack.c.bf16 %v2181_v3, %v2180_v31  ;;  %v2352_v3 = vld [vmem:[#allocation3 + $0xb2] sm:$0xff] }
 0x2af   : > { %3690 = vmatmul.bf16.gmra.mxu1 %v6516_v29  ;;  %v4606_v29 = vld [vmem:[%s7451_s3 + $0x1f8] sm:$0xff] }
 0x2b0   : > { %3909 = vmatpush.bf16.msra.mxu0 %v4606_v29 }
 0x2b4   : > { %v6634_v55 = vpop.f32.mrf.mxu1  ;;  %v2302_v61 = vld [vmem:[#allocation3 + $0x158] sm:$0xff]  ;;  %3910 = vmatpush.bf16.msra.mxu0 %v4605_v49 }
 0x2b5   : > { %v2688_v42 = vpack.c.bf16 %v2302_v61, %v2301_v48  ;;  %v6673_v48 = vpack.c.bf16 %v2352_v3, %v2351_v8  ;;  %v4614_v61 = vld [vmem:[%s7451_s3 + $0x238] sm:$0xff] }
 0x2b6   : > { %3998 = vmatpush.bf16.msra.mxu1 %v4614_v61  ;;  %v2354_v8 = vld [vmem:[#allocation3 + $0xca] sm:$0xff] }
 0x2b7   : > { %v2144_v12 = vpop.f32.mrf.mxu3  ;;  %3364 = vmatmul.bf16.gmra.mxu2 %v2688_v42  ;;  %3626 = vmatmul.bf16.gmra.mxu0 %v2688_v42  ;;  %v2306_v61 = vld [vmem:[#allocation3 + $0x9] sm:$0xff] }
 0x2b8   : > { %v2145_v13 = vadd.f32 %v6457_v16, %v2144_v12  ;;  %3911 = vmatpush.bf16.msra.mxu0 %v4604_v50  ;;  %v6682_v12 = vpop.f32.mrf.mxu0 }
 0x2b9   : > { %7464 = vst [vmem:[#allocation12_spill] sm:$0xff] %v6682_v12 }
 0x2ba   : > { %v2182_v33 = vmax.f32 %v2145_v13, 0.0 }
 0x2bb   : > { %3502 = vmatmul.bf16.gmra.mxu3 %v6642_v45 }
 0x2bc   : > { %2269 = vst [vmem:[#allocation3 + $0x169] sm:$0xff] %v2182_v33  ;;  %v6648_v11 = vpop.f32.mrf.mxu1  ;;  %3912 = vmatpush.bf16.msra.mxu0 %v4603_v25  ;;  %v2353_v25 = vld [vmem:[#allocation3 + $0xc2] sm:$0xff] }
 0x2bf   : > { %v2146_v54 = vpop.f32.mrf.mxu3  ;;  %3695 = vmatmul.bf16.gmra.mxu1 %v6544_v51 }
 0x2c0   : > { %v2147_v31 = vadd.f32 %v6457_v16, %v2146_v54  ;;  %3913 = vmatpush.bf16.msra.mxu0 %v4602_v40  ;;  %v6694_v54 = vpop.f32.mrf.mxu2  ;;  %v2305_v40 = vld [vmem:[#allocation3 + $0x1] sm:$0xff] }
 0x2c2   : > { %v2183_v62 = vmax.f32 %v2147_v31, 0.0 }
 0x2c3   : > { %v2303_v42 = vld [vmem:[#allocation3 + $0x168] sm:$0xff] }
 0x2c4   : > { %2270 = vst [vmem:[#allocation3 + $0x171] sm:$0xff] %v2183_v62  ;;  %v6666_v18 = vpop.f32.mrf.mxu1  ;;  %v6668_v51 = vpack.c.bf16 %v2183_v62, %v2182_v33  ;;  %3914 = vmatpush.bf16.msra.mxu0 %v4601_v4  ;;  %v2563_v4 = vpack.c.bf16 %v2306_v61, %v2305_v40 }
 0x2c8   : > { %3915 = vmatpush.bf16.msra.mxu0 %v4600_v60 }
 0x2cb   : > { %3507 = vmatmul.bf16.gmra.mxu3 %v6673_v48  ;;  %v2304_v1 = vld [vmem:[#allocation3 + $0x170] sm:$0xff] }
 0x2cc   : > { %v6684_v13 = vpop.f32.mrf.mxu1  ;;  %v2697_v29 = vpack.c.bf16 %v2304_v1, %v2303_v42  ;;  %3916 = vmatpush.bf16.msra.mxu0 %v4599_v57  ;;  %v6706_v1 = vpack.c.bf16 %v2354_v8, %v2353_v25  ;;  %v4597_v57 = vld [vmem:[%s7451_s3 + $0x1b0] sm:$0xff] }
 0x2cd   : > { %3821 = vmatpush.bf16.msra.mxu3 %v4597_v57 }
 0x2ce   : > { %v2149_v33 = vpop.f32.mrf.mxu3  ;;  %3369 = vmatmul.bf16.gmra.mxu2 %v2697_v29  ;;  %3631 = vmatmul.bf16.gmra.mxu0 %v2697_v29 }
 0x2cf   : > { %v6687_v49 = vadd.f32 %v6457_v16, %v2149_v33  ;;  %3700 = vmatmul.bf16.gmra.mxu1 %v6558_v58  ;;  %v6703_v58 = vpop.f32.mrf.mxu0  ;;  %v6711_v33 = vpop.f32.mrf.mxu2 }
 0x2d0   : > { %7466 = vst [vmem:[#allocation14_spill] sm:$0xff] %v6703_v58 }
 0x2d1   : > { %v7454_v50 = vmax.f32 %v6687_v49, 0.0  ;;  %7468 = vst [vmem:[#allocation16_spill] sm:$0xff] %v6711_v33  ;;  %v4613_v33 = vld [vmem:[%s7451_s3 + $0x230] sm:$0xff] }
 0x2d2   : > { %3999 = vmatpush.bf16.msra.mxu1 %v4613_v33  ;;  %v2357_v33 = vld [vmem:[#allocation3 + $0xf2] sm:$0xff] }
 0x2d3   : > { %2271 = vst [vmem:[#allocation3 + $0x181] sm:$0xff] %v7454_v50  ;;  %v2355_v50 = vld [vmem:[#allocation3 + $0xda] sm:$0xff] }
 0x2d4   : > { %v6701_v31 = vpop.f32.mrf.mxu1 }
 0x2d5   : > { %7465 = vst [vmem:[#allocation13_spill] sm:$0xff] %v6701_v31  ;;  %v2469_v31 = vld [vmem:[#allocation3 + $0x50] sm:$0xff] }
 0x2d6   : > { %v2151_v62 = vpop.f32.mrf.mxu3 }
 0x2d7   : > { %v2152_v3 = vadd.f32 %v6457_v16, %v2151_v62  ;;  %v4589_v16 = vld [vmem:[%s7451_s3 + $0x170] sm:$0xff]  ;;  %v6722_v62 = vpop.f32.mrf.mxu0  ;;  %v6726_v61 = vpop.f32.mrf.mxu2 }
 0x2d8   : > { %7469 = vst [vmem:[#allocation17_spill] sm:$0xff] %v6722_v62  ;;  %3732 = vmatpush.bf16.msra.mxu2 %v4589_v16 }
 0x2d9   : > { %v2185_v42 = vmax.f32 %v2152_v3, 0.0 }
 0x2da   : > { %v2399_v25 = vld [vmem:[#allocation3 + $0x180] sm:$0xff] }
 0x2db   : > { %2272 = vst [vmem:[#allocation3 + $0x189] sm:$0xff] %v2185_v42  ;;  %3512 = vmatmul.bf16.gmra.mxu3 %v6706_v1 }
 0x2dc   : > { %v6709_v29 = vpop.f32.mrf.mxu1  ;;  %3733 = vmatpush.bf16.msra.mxu2 %v4588_v6 }
 0x2dd   : > { %7467 = vst [vmem:[#allocation15_spill] sm:$0xff] %v6709_v29 }
 0x2de   : > { %3383 = vmatmul.bf16.vlgmr.msrb.gmra.mxu2 %v2563_v4  ;;  %v6713_v60 = vpop.f32.mrf.mxu3 }
 0x2df   : > { %3705 = vmatmul.bf16.gmra.mxu1 %v6583_v23  ;;  %v2356_v23 = vld [vmem:[#allocation3 + $0xe2] sm:$0xff]  ;;  %v6735_v16 = vpop.f32.mrf.mxu0 }
 0x2e0   : > { %v6733_v43 = vpack.c.bf16 %v2356_v23, %v2355_v50  ;;  %7471 = vst [vmem:[#allocation19_spill] sm:$0xff] %v6735_v16  ;;  %v2358_v23 = vld [vmem:[#allocation3 + $0xfa] sm:$0xff] }
 0x2e1   : > { %v4612_v16 = vld [vmem:[%s7451_s3 + $0x228] sm:$0xff] }
 0x2e2   : > { %v2400_v8 = vld [vmem:[#allocation3 + $0x188] sm:$0xff]  ;;  %4000 = vmatpush.bf16.msra.mxu1 %v4612_v16  ;;  %v7477_v16 = vmax.f32 %v6687_v49, 0.0  ;;  %v4609_v49 = vld [vmem:[%s7451_s3 + $0x210] sm:$0xff] }
 0x2e3   : > { %v2700_v3 = vpack.c.bf16 %v2400_v8, %v2399_v25  ;;  %v6743_v8 = vpop.f32.mrf.mxu2 }
 0x2e4   : > { %v6724_v40 = vpop.f32.mrf.mxu1  ;;  %7473 = vst [vmem:[#allocation21_spill] sm:$0xff] %v6743_v8  ;;  %v6758_v8 = vpack.c.bf16 %v2358_v23, %v2357_v33  ;;  %v2701_v33 = vpack.c.bf16 %v2185_v42, %v7477_v16  ;;  %v4596_v23 = vld [vmem:[%s7451_s3 + $0x1a8] sm:$0xff]  ;;  %v2359_v42 = vld [vmem:[#allocation3 + $0x10a] sm:$0xff] }
 0x2e5   : > { %7470 = vst [vmem:[#allocation18_spill] sm:$0xff] %v6724_v40  ;;  %3636 = vmatmul.bf16.gmra.mxu0 %v2700_v3  ;;  %3822 = vmatpush.bf16.msra.mxu3 %v4596_v23  ;;  %v2360_v16 = vld [vmem:[#allocation3 + $0x112] sm:$0xff]  ;;  %v2363_v40 = vld [vmem:[#allocation3 + $0x13a] sm:$0xff] }
 0x2e6   : > { %v6728_v4 = vpop.f32.mrf.mxu3  ;;  %v4608_v23 = vld [vmem:[%s7451_s3 + $0x208] sm:$0xff] }
 0x2e7   : > { %v6746_v3 = vpop.f32.mrf.mxu0 }
 0x2e8   : > { %7474 = vst [vmem:[#allocation22_spill] sm:$0xff] %v6746_v3 }
 0x2eb   : > { %3517 = vmatmul.bf16.gmra.mxu3 %v6733_v43  ;;  %v6754_v62 = vpop.f32.mrf.mxu2 }
 0x2ec   : > { %v6738_v57 = vpop.f32.mrf.mxu1 }
 0x2ed   : > { %7472 = vst [vmem:[#allocation20_spill] sm:$0xff] %v6738_v57  ;;  %v2361_v57 = vld [vmem:[#allocation3 + $0x122] sm:$0xff] }
 0x2ee   : > { %3388 = vmatmul.bf16.gmra.mxu2 %v6478_v26  ;;  %v6741_v25 = vpop.f32.mrf.mxu3 }
 0x2ef   : > { %3710 = vmatmul.bf16.gmra.mxu1 %v6607_v44  ;;  %v4611_v44 = vld [vmem:[%s7451_s3 + $0x220] sm:$0xff]  ;;  %v6764_v3 = vpop.f32.mrf.mxu0 }
 0x2f0   : > { %7476 = vst [vmem:[#allocation24_spill] sm:$0xff] %v6764_v3  ;;  %4001 = vmatpush.bf16.msra.mxu1 %v4611_v44 }
 0x2f3   : > { %v6781_v3 = vpop.f32.mrf.mxu2 }
 0x2f4   : > { %v6756_v26 = vpop.f32.mrf.mxu1  ;;  %7478 = vst [vmem:[#allocation25_spill] sm:$0xff] %v6781_v3  ;;  %v6795_v3 = vpack.c.bf16 %v2360_v16, %v2359_v42  ;;  %v2503_v16 = vld [vmem:[#allocation3 + $0x69] sm:$0xff] }
 0x2f5   : > { %3917 = vmatmul.bf16.vlgmr.msra.gmra.mxu0 %v6511_v0  ;;  %7475 = vst [vmem:[#allocation23_spill] sm:$0xff] %v6756_v26 }
 0x2f6   : > { %v6749_v50 = vpop.f32.mrf.mxu3 }
 0x2f7   : > { %v6791_v26 = vpop.f32.mrf.mxu0 }
 0x2f8   : > { %7480 = vst [vmem:[#allocation27_spill] sm:$0xff] %v6791_v26 }
 0x2fb   : > { %3522 = vmatmul.bf16.gmra.mxu3 %v6758_v8  ;;  %v6793_v6 = vpop.f32.mrf.mxu2 }
 0x2fc   : > { %v6783_v44 = vpop.f32.mrf.mxu1 }
 0x2fd   : > { %7479 = vst [vmem:[#allocation26_spill] sm:$0xff] %v6783_v44  ;;  %v4607_v44 = vld [vmem:[%s7451_s3 + $0x200] sm:$0xff] }
 0x2fe   : > { %3393 = vmatmul.bf16.gmra.mxu2 %v6511_v0  ;;  %v6767_v58 = vpop.f32.mrf.mxu3  ;;  %v4610_v0 = vld [vmem:[%s7451_s3 + $0x218] sm:$0xff] }
 0x2ff   : > { %3715 = vmatmul.bf16.gmra.mxu1 %v6626_v24  ;;  %v6810_v42 = vpop.f32.mrf.mxu0 }
 0x300   : > { %4002 = vmatpush.bf16.msra.mxu1 %v4610_v0  ;;  %7483 = vst [vmem:[#allocation30_spill] sm:$0xff] %v6810_v42 }
 0x303   : > { %v6812_v26 = vpop.f32.mrf.mxu2 }
 0x304   : > { %4003 = vmatpush.bf16.msra.mxu1 %v4609_v49  ;;  %v6800_v0 = vpop.f32.mrf.mxu1  ;;  %7484 = vst [vmem:[#allocation31_spill] sm:$0xff] %v6812_v26 }
 0x305   : > { %3922 = vmatmul.bf16.gmra.mxu0 %v6532_v46  ;;  %7481 = vst [vmem:[#allocation28_spill] sm:$0xff] %v6800_v0  ;;  %v2587_v0 = vpack.c.bf16 %v2503_v16, %v6542_v9  ;;  %v4587_v9 = vld [vmem:[%s7451_s3 + $0x160] sm:$0xff] }
 0x306   : > { %v6789_v24 = vpop.f32.mrf.mxu3  ;;  %3734 = vmatpush.bf16.msra.mxu2 %v4587_v9  ;;  %v4594_v9 = vld [vmem:[%s7451_s3 + $0x198] sm:$0xff] }
 0x307   : > { %v6821_v20 = vpop.f32.mrf.mxu0 }
 0x308   : > { %4004 = vmatpush.bf16.msra.mxu1 %v4608_v23  ;;  %7487 = vst [vmem:[#allocation34_spill] sm:$0xff] %v6821_v20  ;;  %v2504_v20 = vld [vmem:[#allocation3 + $0x79] sm:$0xff] }
 0x30b   : > { %3527 = vmatmul.bf16.gmra.mxu3 %v6795_v3 }
 0x30c   : > { %4005 = vmatpush.bf16.msra.mxu1 %v4607_v44  ;;  %v6815_v12 = vpop.f32.mrf.mxu1 }
 0x30d   : > { %7485 = vst [vmem:[#allocation32_spill] sm:$0xff] %v6815_v12 }
 0x30e   : > { %3398 = vmatmul.bf16.gmra.mxu2 %v6532_v46  ;;  %v6807_v49 = vpop.f32.mrf.mxu3  ;;  %v6819_v46 = vpack.c.bf16 %v2362_v5, %v2361_v57  ;;  %v4595_v5 = vld [vmem:[%s7451_s3 + $0x1a0] sm:$0xff]  ;;  %v2505_v57 = vld [vmem:[#allocation3 + $0x81] sm:$0xff] }
 0x30f   : > { %7482 = vst [vmem:[#allocation29_spill] sm:$0xff] %v6807_v49  ;;  %3720 = vmatmul.bf16.gmra.mxu1 %v6668_v51  ;;  %3823 = vmatpush.bf16.msra.mxu3 %v4595_v5  ;;  %v6836_v26 = vpop.f32.mrf.mxu0  ;;  %v2468_v49 = vld [vmem:[#allocation3 + $0x48] sm:$0xff] }
 0x310   : > { %7490 = vst [vmem:[#allocation37_spill] sm:$0xff] %v6836_v26  ;;  %v2577_v37 = vpack.c.bf16 %v2469_v31, %v2468_v49  ;;  %v2470_v49 = vld [vmem:[#allocation3 + $0x60] sm:$0xff] }
 0x311   : > { %v6823_v51 = vpop.f32.mrf.mxu2 }
 0x313   : > { %3824 = vmatpush.bf16.msra.mxu3 %v4594_v9  ;;  %v2365_v9 = vld [vmem:[#allocation3 + $0x152] sm:$0xff] }
 0x314   : > { %v6831_v16 = vpop.f32.mrf.mxu1 }
 0x315   : > { %3927 = vmatmul.bf16.gmra.mxu0 %v2587_v0  ;;  %7489 = vst [vmem:[#allocation36_spill] sm:$0xff] %v6831_v16 }
 0x316   : > { %v6817_v23 = vpop.f32.mrf.mxu3 }
 0x317   : > { %7486 = vst [vmem:[#allocation33_spill] sm:$0xff] %v6817_v23  ;;  %v6847_v7 = vpop.f32.mrf.mxu0 }
 0x318   : > { %7494 = vst [vmem:[#allocation41_spill] sm:$0xff] %v6847_v7 }
 0x319   : > { %v6838_v42 = vpop.f32.mrf.mxu2 }
 0x31a   : > { %7491 = vst [vmem:[#allocation38_spill] sm:$0xff] %v6838_v42 }
 0x31b   : > { %3532 = vmatmul.bf16.gmra.mxu3 %v6819_v46 }
 0x31c   : > { %v6842_v16 = vpop.f32.mrf.mxu1 }
 0x31d   : > { %7493 = vst [vmem:[#allocation40_spill] sm:$0xff] %v6842_v16  ;;  %v2366_v16 = vld [vmem:[#allocation3 + $0x15a] sm:$0xff] }
 0x31e   : > { %3403 = vmatmul.bf16.gmra.mxu2 %v2587_v0  ;;  %v6826_v44 = vpop.f32.mrf.mxu3  ;;  %v2596_v0 = vpack.c.bf16 %v2505_v57, %v2504_v20  ;;  %v2506_v57 = vld [vmem:[#allocation3 + $0x91] sm:$0xff] }
 0x31f   : > { %7488 = vst [vmem:[#allocation35_spill] sm:$0xff] %v6826_v44  ;;  %3725 = vmatmul.bf16.gmra.mxu1 %v2701_v33  ;;  %v2364_v44 = vld [vmem:[#allocation3 + $0x142] sm:$0xff]  ;;  %v6862_v26 = vpop.f32.mrf.mxu0 }
 0x320   : > { %v6844_v33 = vpack.c.bf16 %v2364_v44, %v2363_v40  ;;  %v4593_v40 = vld [vmem:[%s7451_s3 + $0x190] sm:$0xff]  ;;  %7497 = vst [vmem:[#allocation44_spill] sm:$0xff] %v6862_v26 }
 0x321   : > { %v2507_v44 = vld [vmem:[#allocation3 + $0x99] sm:$0xff]  ;;  %3825 = vmatpush.bf16.msra.mxu3 %v4593_v40 }
 0x322   : > { %v2605_v7 = vpack.c.bf16 %v2507_v44, %v2506_v57 }
 0x324   : > { %v6860_v42 = vpop.f32.mrf.mxu1 }
 0x325   : > { %3932 = vmatmul.bf16.gmra.mxu0 %v2596_v0  ;;  %7496 = vst [vmem:[#allocation43_spill] sm:$0xff] %v6860_v42  ;;  %v6874_v42 = vpack.c.bf16 %v2366_v16, %v2365_v9  ;;  %v2508_v9 = vld [vmem:[#allocation3 + $0xa9] sm:$0xff] }
 0x326   : > { %v6840_v12 = vpop.f32.mrf.mxu3 }
 0x327   : > { %7492 = vst [vmem:[#allocation39_spill] sm:$0xff] %v6840_v12  ;;  %v6879_v57 = vpop.f32.mrf.mxu0  ;;  %v2509_v12 = vld [vmem:[#allocation3 + $0xb1] sm:$0xff] }
 0x328   : > { %v6852_v20 = vpop.f32.mrf.mxu2  ;;  %7500 = vst [vmem:[#allocation47_spill] sm:$0xff] %v6879_v57  ;;  %v2368_v57 = vld [vmem:[#allocation3 + $0x172] sm:$0xff] }
 0x32b   : > { %3537 = vmatmul.bf16.gmra.mxu3 %v6844_v33 }
 0x32c   : > { %v6877_v44 = vpop.f32.mrf.mxu1 }
 0x32d   : > { %7499 = vst [vmem:[#allocation46_spill] sm:$0xff] %v6877_v44  ;;  %v2367_v44 = vld [vmem:[#allocation3 + $0x16a] sm:$0xff] }
 0x32e   : > { %3408 = vmatmul.bf16.gmra.mxu2 %v2596_v0  ;;  %v6854_v5 = vpop.f32.mrf.mxu3  ;;  %v4592_v0 = vld [vmem:[%s7451_s3 + $0x188] sm:$0xff]  ;;  %v6895_v23 = vpack.c.bf16 %v2368_v57, %v2367_v44  ;;  %v2466_v57 = vld [vmem:[#allocation3 + $0x30] sm:$0xff] }
 0x32f   : > { %7495 = vst [vmem:[#allocation42_spill] sm:$0xff] %v6854_v5  ;;  %4006 = vmatmul.bf16.vlgmr.msra.gmra.mxu1 %v6571_v15  ;;  %3826 = vmatpush.bf16.msra.mxu3 %v4592_v0  ;;  %v4591_v15 = vld [vmem:[%s7451_s3 + $0x180] sm:$0xff]  ;;  %v4586_v0 = vld [vmem:[%s7451_s3 + $0x158] sm:$0xff]  ;;  %v2467_v44 = vld [vmem:[#allocation3 + $0x38] sm:$0xff] }
 0x330   : > { %v6870_v5 = vpop.f32.mrf.mxu2  ;;  %3735 = vmatpush.bf16.msra.mxu2 %v4586_v0 }
 0x333   : > { %3827 = vmatpush.bf16.msra.mxu3 %v4591_v15  ;;  %v2614_v15 = vpack.c.bf16 %v2509_v12, %v2508_v9  ;;  %v2511_v12 = vld [vmem:[#allocation3 + $0xc9] sm:$0xff] }
 0x335   : > { %3937 = vmatmul.bf16.gmra.mxu0 %v2605_v7 }
 0x336   : > { %v6872_v40 = vpop.f32.mrf.mxu3 }
 0x337   : > { %7498 = vst [vmem:[#allocation45_spill] sm:$0xff] %v6872_v40  ;;  %v6889_v40 = vpop.f32.mrf.mxu0 }
 0x338   : > { %7502 = vst [vmem:[#allocation49_spill] sm:$0xff] %v6889_v40  ;;  %v2510_v40 = vld [vmem:[#allocation3 + $0xc1] sm:$0xff] }
 0x33a   : > { %v6884_v26 = vpop.f32.mrf.mxu2 }
 0x33b   : > { %3542 = vmatmul.bf16.gmra.mxu3 %v6874_v42 }
 0x33e   : > { %3413 = vmatmul.bf16.gmra.mxu2 %v2605_v7  ;;  %v6887_v16 = vpop.f32.mrf.mxu3  ;;  %v6891_v7 = vpop.f32.mrf.mxu1 }
 0x33f   : > { %4011 = vmatmul.bf16.gmra.mxu1 %v6587_v52  ;;  %7501 = vst [vmem:[#allocation48_spill] sm:$0xff] %v6887_v16  ;;  %v6901_v52 = vpop.f32.mrf.mxu0 }
 0x340   : > { %7503 = vst [vmem:[#allocation50_spill] sm:$0xff] %v6891_v7  ;;  %v2623_v7 = vpack.c.bf16 %v2511_v12, %v2510_v40  ;;  %v4585_v40 = vld [vmem:[%s7451_s3 + $0x150] sm:$0xff] }
 0x341   : > { %7505 = vst [vmem:[#allocation52_spill] sm:$0xff] %v6901_v52  ;;  %v6918_v52 = vld [vmem:[%s7452_s4] ss:$0 sm:$0xff]  ;;  %3736 = vmatpush.bf16.msra.mxu2 %v4585_v40 }
 0x342   : > { %v6893_v29 = vpop.f32.mrf.mxu2 }
 0x345   : > { %3942 = vmatmul.bf16.gmra.mxu0 %v2614_v15 }
 0x346   : > { %v6897_v14 = vpop.f32.mrf.mxu3  ;;  %v6903_v0 = vpop.f32.mrf.mxu1 }
 0x347   : > { %7504 = vst [vmem:[#allocation51_spill] sm:$0xff] %v6897_v14  ;;  %v6909_v14 = vpop.f32.mrf.mxu0 }
 0x348   : > { %7506 = vst [vmem:[#allocation53_spill] sm:$0xff] %v6903_v0 }
 0x349   : > { %7508 = vst [vmem:[#allocation55_spill] sm:$0xff] %v6909_v14 }
 0x34b   : > { %3547 = vmatmul.bf16.gmra.mxu3 %v6895_v23 }
 0x34e   : > { %3418 = vmatmul.bf16.gmra.mxu2 %v2614_v15  ;;  %v6907_v16 = vpop.f32.mrf.mxu3  ;;  %v2568_v15 = vpack.c.bf16 %v2467_v44, %v2466_v57  ;;  %v3296_v44 = vadd.f32 %v6918_v52, %v6443_v17  ;;  %v2513_v57 = vld [vmem:[#allocation3 + $0xe1] sm:$0xff] }
 0x34f   : > { %4016 = vmatmul.bf16.gmra.mxu1 %v6602_v53  ;;  %7507 = vst [vmem:[#allocation54_spill] sm:$0xff] %v6907_v16  ;;  %v6913_v53 = vpop.f32.mrf.mxu1  ;;  %v6930_v0 = vpop.f32.mrf.mxu0 }
 0x350   : > { %7509 = vst [vmem:[#allocation56_spill] sm:$0xff] %v6913_v53  ;;  %v2512_v53 = vld [vmem:[#allocation3 + $0xd9] sm:$0xff] }
 0x351   : > { %v6905_v9 = vpop.f32.mrf.mxu2  ;;  %7511 = vst [vmem:[#allocation58_spill] sm:$0xff] %v6930_v0  ;;  %v2514_v0 = vld [vmem:[#allocation3 + $0xf1] sm:$0xff] }
 0x355   : > { %3947 = vmatmul.bf16.gmra.mxu0 %v2623_v7 }
 0x356   : > { %v6923_v12 = vpop.f32.mrf.mxu3 }
 0x357   : > { %7510 = vst [vmem:[#allocation57_spill] sm:$0xff] %v6923_v12  ;;  %v6932_v16 = vpop.f32.mrf.mxu1  ;;  %v6938_v17 = vpop.f32.mrf.mxu0 }
 0x358   : > { %7512 = vst [vmem:[#allocation59_spill] sm:$0xff] %v6932_v16 }
 0x359   : > { %v6911_v2 = vpop.f32.mrf.mxu2  ;;  %7514 = vst [vmem:[#allocation61_spill] sm:$0xff] %v6938_v17 }
 0x35b   : > { %3828 = vmatmul.bf16.vlgmr.msra.gmra.mxu3 %v2568_v15 }
 0x35e   : > { %3423 = vmatmul.bf16.gmra.mxu2 %v2623_v7  ;;  %v2632_v7 = vpack.c.bf16 %v2513_v57, %v2512_v53  ;;  %v6934_v12 = vpop.f32.mrf.mxu3  ;;  %v3301_v53 = vadd.f32 %v6918_v52, %v6486_v36 }
 0x35f   : > { %4021 = vmatmul.bf16.gmra.mxu1 %v6621_v28  ;;  %7513 = vst [vmem:[#allocation60_spill] sm:$0xff] %v6934_v12  ;;  %v6940_v40 = vpop.f32.mrf.mxu1  ;;  %v6949_v31 = vpop.f32.mrf.mxu0 }
 0x360   : > { %7515 = vst [vmem:[#allocation62_spill] sm:$0xff] %v6940_v40 }
 0x361   : > { %v3384_v15 = vpop.f32.mrf.mxu2  ;;  %7517 = vst [vmem:[#allocation64_spill] sm:$0xff] %v6949_v31 }
 0x362   : > { %v6928_v14 = vadd.f32 %v3384_v15, %v3296_v44  ;;  %v2515_v44 = vld [vmem:[#allocation3 + $0xf9] sm:$0xff] }
 0x363   : > { %v2641_v12 = vpack.c.bf16 %v2515_v44, %v2514_v0  ;;  %v4584_v0 = vld [vmem:[%s7451_s3 + $0x148] sm:$0xff] }
 0x364   : > { %v2517_v44 = vld [vmem:[#allocation3 + $0x111] sm:$0xff]  ;;  %3737 = vmatpush.bf16.msra.mxu2 %v4584_v0 }
 0x365   : > { %3952 = vmatmul.bf16.gmra.mxu0 %v2632_v7 }
 0x366   : > { %v6947_v16 = vpop.f32.mrf.mxu3 }
 0x367   : > { %7516 = vst [vmem:[#allocation63_spill] sm:$0xff] %v6947_v16  ;;  %v6955_v36 = vpop.f32.mrf.mxu0 }
 0x368   : > { %7519 = vst [vmem:[#allocation66_spill] sm:$0xff] %v6955_v36 }
 0x369   : > { %v6936_v28 = vpop.f32.mrf.mxu2 }
 0x36b   : > { %3833 = vmatmul.bf16.gmra.mxu3 %v2577_v37  ;;  %v2471_v37 = vld [vmem:[#allocation3 + $0x68] sm:$0xff] }
 0x36e   : > { %3428 = vmatmul.bf16.gmra.mxu2 %v2632_v7  ;;  %v6951_v7 = vpop.f32.mrf.mxu1  ;;  %v6957_v40 = vpop.f32.mrf.mxu3 }
 0x36f   : > { %4026 = vmatmul.bf16.gmra.mxu1 %v6642_v45  ;;  %7518 = vst [vmem:[#allocation65_spill] sm:$0xff] %v6951_v7  ;;  %v2586_v45 = vpack.c.bf16 %v2471_v37, %v2470_v49  ;;  %v2516_v37 = vld [vmem:[#allocation3 + $0x109] sm:$0xff]  ;;  %v6969_v36 = vpop.f32.mrf.mxu0 }
 0x370   : > { %7520 = vst [vmem:[#allocation67_spill] sm:$0xff] %v6957_v40  ;;  %v2472_v40 = vld [vmem:[#allocation3 + $0x78] sm:$0xff] }
 0x371   : > { %v3389_v57 = vpop.f32.mrf.mxu2  ;;  %7522 = vst [vmem:[#allocation69_spill] sm:$0xff] %v6969_v36 }
 0x372   : > { %v6945_v15 = vadd.f32 %v3389_v57, %v3301_v53  ;;  %v3306_v53 = vadd.f32 %v6918_v52, %v6521_v35 }
 0x375   : > { %3957 = vmatmul.bf16.gmra.mxu0 %v2641_v12 }
 0x376   : > { %v6967_v49 = vpop.f32.mrf.mxu1  ;;  %v6971_v7 = vpop.f32.mrf.mxu3 }
 0x377   : > { %7521 = vst [vmem:[#allocation68_spill] sm:$0xff] %v6967_v49  ;;  %v6977_v0 = vpop.f32.mrf.mxu0  ;;  %v2518_v49 = vld [vmem:[#allocation3 + $0x121] sm:$0xff] }
 0x378   : > { %7523 = vst [vmem:[#allocation70_spill] sm:$0xff] %v6971_v7 }
 0x379   : > { %v6953_v17 = vpop.f32.mrf.mxu2  ;;  %7525 = vst [vmem:[#allocation72_spill] sm:$0xff] %v6977_v0 }
 0x37b   : > { %3838 = vmatmul.bf16.gmra.mxu3 %v2586_v45  ;;  %v2650_v45 = vpack.c.bf16 %v2517_v44, %v2516_v37  ;;  %v2519_v44 = vld [vmem:[#allocation3 + $0x129] sm:$0xff] }
 0x37c   : > { %v2659_v7 = vpack.c.bf16 %v2519_v44, %v2518_v49  ;;  %v3316_v49 = vadd.f32 %v6918_v52, %v6555_v32 }
 0x37e   : > { %3433 = vmatmul.bf16.gmra.mxu2 %v2641_v12  ;;  %v2473_v12 = vld [vmem:[#allocation3 + $0x80] sm:$0xff]  ;;  %v6975_v35 = vpop.f32.mrf.mxu1 }
 0x37f   : > { %4031 = vmatmul.bf16.gmra.mxu1 %v6673_v48  ;;  %v2595_v16 = vpack.c.bf16 %v2473_v12, %v2472_v40  ;;  %7524 = vst [vmem:[#allocation71_spill] sm:$0xff] %v6975_v35  ;;  %v6988_v12 = vpop.f32.mrf.mxu0 }
 0x380   : > { %7528 = vst [vmem:[#allocation75_spill] sm:$0xff] %v6988_v12 }
 0x381   : > { %v3394_v57 = vpop.f32.mrf.mxu2 }
 0x382   : > { %v6965_v31 = vadd.f32 %v3394_v57, %v3306_v53  ;;  %v3311_v53 = vadd.f32 %v6918_v52, %v6539_v47  ;;  %v6982_v57 = vpop.f32.mrf.mxu3  ;;  %v4583_v47 = vld [vmem:[%s7451_s3 + $0x140] sm:$0xff] }
 0x383   : > { %7526 = vst [vmem:[#allocation73_spill] sm:$0xff] %v6982_v57  ;;  %3738 = vmatpush.bf16.msra.mxu2 %v4583_v47 }
 0x385   : > { %3962 = vmatmul.bf16.gmra.mxu0 %v2650_v45 }
 0x386   : > { %v6986_v40 = vpop.f32.mrf.mxu1 }
 0x387   : > { %7527 = vst [vmem:[#allocation74_spill] sm:$0xff] %v6986_v40  ;;  %v2477_v40 = vld [vmem:[#allocation3 + $0xb0] sm:$0xff] }
 0x389   : > { %v6973_v48 = vpop.f32.mrf.mxu2 }
 0x38a   : > { %v6992_v35 = vpop.f32.mrf.mxu3 }
 0x38b   : > { %3843 = vmatmul.bf16.gmra.mxu3 %v2595_v16  ;;  %v2475_v16 = vld [vmem:[#allocation3 + $0x98] sm:$0xff]  ;;  %7530 = vst [vmem:[#allocation77_spill] sm:$0xff] %v6992_v35  ;;  %v2476_v35 = vld [vmem:[#allocation3 + $0xa8] sm:$0xff] }
 0x38c   : > { %v2613_v57 = vpack.c.bf16 %v2477_v40, %v2476_v35 }
 0x38e   : > { %3438 = vmatmul.bf16.gmra.mxu2 %v2650_v45  ;;  %v2474_v45 = vld [vmem:[#allocation3 + $0x90] sm:$0xff]  ;;  %v7000_v44 = vpop.f32.mrf.mxu1 }
 0x38f   : > { %4036 = vmatmul.bf16.gmra.mxu1 %v6706_v1  ;;  %v2604_v1 = vpack.c.bf16 %v2475_v16, %v2474_v45  ;;  %7531 = vst [vmem:[#allocation78_spill] sm:$0xff] %v7000_v44  ;;  %v2520_v16 = vld [vmem:[#allocation3 + $0x139] sm:$0xff]  ;;  %v7004_v45 = vpop.f32.mrf.mxu0 }
 0x391   : > { %v3399_v37 = vpop.f32.mrf.mxu2 }
 0x392   : > { %v6984_v36 = vadd.f32 %v3399_v37, %v3311_v53  ;;  %v2521_v53 = vld [vmem:[#allocation3 + $0x141] sm:$0xff] }
 0x395   : > { %3967 = vmatmul.bf16.gmra.mxu0 %v2659_v7 }
 0x396   : > { %v7010_v32 = vpop.f32.mrf.mxu1 }
 0x397   : > { %7535 = vst [vmem:[#allocation82_spill] sm:$0xff] %v7010_v32  ;;  %v7012_v47 = vpop.f32.mrf.mxu0 }
 0x399   : > { %v6990_v0 = vpop.f32.mrf.mxu2 }
 0x39a   : > { %7529 = vst [vmem:[#allocation76_spill] sm:$0xff] %v6990_v0 }
 0x39b   : > { %3848 = vmatmul.bf16.gmra.mxu3 %v2604_v1  ;;  %v7006_v1 = vpop.f32.mrf.mxu3 }
 0x39c   : > { %7533 = vst [vmem:[#allocation80_spill] sm:$0xff] %v7006_v1  ;;  %v2522_v1 = vld [vmem:[#allocation3 + $0x151] sm:$0xff] }
 0x39e   : > { %3443 = vmatmul.bf16.gmra.mxu2 %v2659_v7  ;;  %v2668_v7 = vpack.c.bf16 %v2521_v53, %v2520_v16  ;;  %v3321_v53 = vadd.f32 %v6918_v52, %v6568_v38  ;;  %v7021_v35 = vpop.f32.mrf.mxu1 }
 0x39f   : > { %4041 = vmatmul.bf16.gmra.mxu1 %v6733_v43  ;;  %7538 = vst [vmem:[#allocation85_spill] sm:$0xff] %v7021_v35  ;;  %v7023_v40 = vpop.f32.mrf.mxu0 }
 0x3a1   : > { %v3404_v37 = vpop.f32.mrf.mxu2 }
 0x3a2   : > { %v7002_v12 = vadd.f32 %v3404_v37, %v3316_v49  ;;  %v2523_v37 = vld [vmem:[#allocation3 + $0x159] sm:$0xff] }
 0x3a3   : > { %v7014_v49 = vpop.f32.mrf.mxu3 }
 0x3a4   : > { %7532 = vst [vmem:[#allocation79_spill] sm:$0xff] %v7002_v12  ;;  %v2434_v12 = vld [vmem:[#allocation3 + $0x22] sm:$0xff] }
 0x3a5   : > { %3972 = vmatmul.bf16.gmra.mxu0 %v2668_v7  ;;  %7536 = vst [vmem:[#allocation83_spill] sm:$0xff] %v7014_v49 }
 0x3a6   : > { %v7029_v38 = vpop.f32.mrf.mxu1 }
 0x3a7   : > { %7541 = vst [vmem:[#allocation88_spill] sm:$0xff] %v7029_v38 }
 0x3a9   : > { %v7008_v43 = vpop.f32.mrf.mxu2 }
 0x3aa   : > { %7534 = vst [vmem:[#allocation81_spill] sm:$0xff] %v7008_v43  ;;  %v2677_v43 = vpack.c.bf16 %v2523_v37, %v2522_v1  ;;  %v3326_v1 = vadd.f32 %v6918_v52, %v6589_v34  ;;  %v7034_v37 = vpop.f32.mrf.mxu0 }
 0x3ab   : > { %3853 = vmatmul.bf16.gmra.mxu3 %v2613_v57  ;;  %v2479_v57 = vld [vmem:[#allocation3 + $0xc8] sm:$0xff]  ;;  %v7025_v32 = vpop.f32.mrf.mxu3 }
 0x3ac   : > { %7539 = vst [vmem:[#allocation86_spill] sm:$0xff] %v7025_v32 }
 0x3ae   : > { %3448 = vmatmul.bf16.gmra.mxu2 %v2668_v7  ;;  %v2478_v7 = vld [vmem:[#allocation3 + $0xc0] sm:$0xff] }
 0x3af   : > { %4046 = vmatmul.bf16.gmra.mxu1 %v6758_v8  ;;  %v2622_v8 = vpack.c.bf16 %v2479_v57, %v2478_v7  ;;  %v2481_v57 = vld [vmem:[#allocation3 + $0xe0] sm:$0xff]  ;;  %v7040_v7 = vpop.f32.mrf.mxu1 }
 0x3b0   : > { %7544 = vst [vmem:[#allocation91_spill] sm:$0xff] %v7040_v7 }
 0x3b1   : > { %v3409_v16 = vpop.f32.mrf.mxu2 }
 0x3b2   : > { %v7019_v44 = vadd.f32 %v3409_v16, %v3321_v53  ;;  %v2525_v53 = vld [vmem:[#allocation3 + $0x171] sm:$0xff]  ;;  %v7044_v38 = vpop.f32.mrf.mxu0 }
 0x3b3   : > { %v7038_v32 = vpop.f32.mrf.mxu3 }
 0x3b4   : > { %7537 = vst [vmem:[#allocation84_spill] sm:$0xff] %v7019_v44  ;;  %v2524_v44 = vld [vmem:[#allocation3 + $0x169] sm:$0xff] }
 0x3b5   : > { %3977 = vmatmul.bf16.gmra.mxu0 %v2677_v43  ;;  %7543 = vst [vmem:[#allocation90_spill] sm:$0xff] %v7038_v32 }
 0x3b7   : > { %v7053_v7 = vpop.f32.mrf.mxu1 }
 0x3b8   : > { %7548 = vst [vmem:[#allocation95_spill] sm:$0xff] %v7053_v7 }
 0x3b9   : > { %v7027_v49 = vpop.f32.mrf.mxu2 }
 0x3ba   : > { %7540 = vst [vmem:[#allocation87_spill] sm:$0xff] %v7027_v49  ;;  %v2686_v49 = vpack.c.bf16 %v2525_v53, %v2524_v44  ;;  %v2526_v44 = vld [vmem:[#allocation3 + $0x181] sm:$0xff]  ;;  %v2527_v53 = vld [vmem:[#allocation3 + $0x189] sm:$0xff] }
 0x3bb   : > { %3858 = vmatmul.bf16.gmra.mxu3 %v2622_v8  ;;  %v7046_v34 = vpop.f32.mrf.mxu3 }
 0x3bc   : > { %7546 = vst [vmem:[#allocation93_spill] sm:$0xff] %v7046_v34 }
 0x3be   : > { %3453 = vmatmul.bf16.gmra.mxu2 %v2677_v43  ;;  %v2480_v43 = vld [vmem:[#allocation3 + $0xd8] sm:$0xff] }
 0x3bf   : > { %4051 = vmatmul.bf16.gmra.mxu1 %v6795_v3  ;;  %v2631_v3 = vpack.c.bf16 %v2481_v57, %v2480_v43  ;;  %v7055_v57 = vpop.f32.mrf.mxu0  ;;  %v2483_v43 = vld [vmem:[#allocation3 + $0xf8] sm:$0xff] }
 0x3c1   : > { %v3414_v16 = vpop.f32.mrf.mxu2 }
 0x3c2   : > { %v7036_v35 = vadd.f32 %v3414_v16, %v3326_v1  ;;  %v3331_v1 = vadd.f32 %v6918_v52, %v6609_v21 }
 0x3c4   : > { %7542 = vst [vmem:[#allocation89_spill] sm:$0xff] %v7036_v35  ;;  %v2433_v35 = vld [vmem:[#allocation3 + $0x1a] sm:$0xff] }
 0x3c5   : > { %3982 = vmatmul.bf16.gmra.mxu0 %v2686_v49 }
 0x3c9   : > { %v7042_v8 = vpop.f32.mrf.mxu2 }
 0x3ca   : > { %7545 = vst [vmem:[#allocation92_spill] sm:$0xff] %v7042_v8  ;;  %v2695_v8 = vpack.c.bf16 %v2527_v53, %v2526_v44 }
 0x3cb   : > { %3863 = vmatmul.bf16.gmra.mxu3 %v2631_v3  ;;  %v7057_v3 = vpop.f32.mrf.mxu3 }
 0x3cc   : > { %7549 = vst [vmem:[#allocation96_spill] sm:$0xff] %v7057_v3 }
 0x3ce   : > { %3458 = vmatmul.bf16.gmra.mxu2 %v2686_v49  ;;  %v2482_v49 = vld [vmem:[#allocation3 + $0xf0] sm:$0xff] }
 0x3cf   : > { %4056 = vmatmul.bf16.gmra.mxu1 %v6819_v46  ;;  %v3333_v46 = vadd.f32 %v6918_v52, %v6618_v39  ;;  %v2640_v21 = vpack.c.bf16 %v2483_v43, %v2482_v49  ;;  %v2485_v43 = vld [vmem:[#allocation3 + $0x110] sm:$0xff] }
 0x3d1   : > { %v3419_v16 = vpop.f32.mrf.mxu2 }
 0x3d2   : > { %v7051_v32 = vadd.f32 %v3419_v16, %v3331_v1  ;;  %v2567_v1 = vpack.c.bf16 %v2434_v12, %v2433_v35  ;;  %v7063_v16 = vpop.f32.mrf.mxu1  ;;  %v2435_v35 = vld [vmem:[#allocation3 + $0x32] sm:$0xff] }
 0x3d3   : > { %v7068_v44 = vpop.f32.mrf.mxu3 }
 0x3d4   : > { %7547 = vst [vmem:[#allocation94_spill] sm:$0xff] %v7051_v32  ;;  %v2446_v32 = vld [vmem:[#allocation3 + $0xb2] sm:$0xff] }
 0x3d5   : > { %3987 = vmatmul.bf16.gmra.mxu0 %v2695_v8  ;;  %v3336_v8 = vadd.f32 %v6918_v52, %v6694_v54  ;;  %7551 = vst [vmem:[#allocation98_spill] sm:$0xff] %v7068_v44  ;;  %v3341_v54 = vadd.f32 %v6918_v52, %v6726_v61 }
 0x3d9   : > { %v3421_v34 = vpop.f32.mrf.mxu2 }
 0x3da   : > { %v7061_v0 = vadd.f32 %v3421_v34, %v3333_v46  ;;  %v7072_v49 = vpop.f32.mrf.mxu1  ;;  %v2484_v34 = vld [vmem:[#allocation3 + $0x108] sm:$0xff] }
 0x3db   : > { %3868 = vmatmul.bf16.gmra.mxu3 %v2640_v21  ;;  %v2649_v12 = vpack.c.bf16 %v2485_v43, %v2484_v34  ;;  %v2436_v21 = vld [vmem:[#allocation3 + $0x3a] sm:$0xff]  ;;  %v2487_v43 = vld [vmem:[#allocation3 + $0x128] sm:$0xff] }
 0x3dc   : > { %7550 = vst [vmem:[#allocation97_spill] sm:$0xff] %v7061_v0  ;;  %v2486_v34 = vld [vmem:[#allocation3 + $0x120] sm:$0xff]  ;;  %v2492_v0 = vld [vmem:[#allocation3 + $0x168] sm:$0xff] }
 0x3de   : > { %3739 = vmatmul.bf16.vlgmr.msra.gmra.mxu2 %v2567_v1  ;;  %v7076_v1 = vpop.f32.mrf.mxu3 }
 0x3df   : > { %4061 = vmatmul.bf16.gmra.mxu1 %v6844_v33  ;;  %7554 = vst [vmem:[#allocation101_spill] sm:$0xff] %v7076_v1  ;;  %v2576_v33 = vpack.c.bf16 %v2436_v21, %v2435_v35  ;;  %v2658_v1 = vpack.c.bf16 %v2487_v43, %v2486_v34  ;;  %v2438_v35 = vld [vmem:[#allocation3 + $0x52] sm:$0xff]  ;;  %v2489_v43 = vld [vmem:[#allocation3 + $0x140] sm:$0xff] }
 0x3e0   : > { %v2488_v34 = vld [vmem:[#allocation3 + $0x138] sm:$0xff] }
 0x3e1   : > { %v3424_v39 = vpop.f32.mrf.mxu2 }
 0x3e2   : > { %v7070_v53 = vadd.f32 %v3424_v39, %v3336_v8  ;;  %v7081_v8 = vpop.f32.mrf.mxu1 }
 0x3e4   : > { %7552 = vst [vmem:[#allocation99_spill] sm:$0xff] %v7070_v53 }
 0x3e6   : > { %v7085_v44 = vpop.f32.mrf.mxu3 }
 0x3e7   : > { %7556 = vst [vmem:[#allocation103_spill] sm:$0xff] %v7085_v44 }
 0x3e9   : > { %v7074_v46 = vpop.f32.mrf.mxu2 }
 0x3ea   : > { %7553 = vst [vmem:[#allocation100_spill] sm:$0xff] %v7074_v46  ;;  %v7089_v21 = vpop.f32.mrf.mxu1 }
 0x3eb   : > { %3873 = vmatmul.bf16.gmra.mxu3 %v2649_v12  ;;  %v2437_v12 = vld [vmem:[#allocation3 + $0x4a] sm:$0xff] }
 0x3ee   : > { %3744 = vmatmul.bf16.gmra.mxu2 %v2576_v33  ;;  %v7091_v61 = vpop.f32.mrf.mxu3  ;;  %v3346_v33 = vadd.f32 %v6918_v52, %v6754_v62 }
 0x3ef   : > { %4066 = vmatmul.bf16.gmra.mxu1 %v6874_v42  ;;  %v2585_v42 = vpack.c.bf16 %v2438_v35, %v2437_v12  ;;  %7558 = vst [vmem:[#allocation105_spill] sm:$0xff] %v7091_v61  ;;  %v2439_v12 = vld [vmem:[#allocation3 + $0x62] sm:$0xff]  ;;  %v2440_v35 = vld [vmem:[#allocation3 + $0x6a] sm:$0xff] }
 0x3f0   : > { %v2559_v61 = vld [vmem:[#allocation3 + $0x18a] sm:$0xff] }
 0x3f1   : > { %v3429_v39 = vpop.f32.mrf.mxu2 }
 0x3f2   : > { %v7083_v7 = vadd.f32 %v3429_v39, %v3341_v54  ;;  %v7098_v44 = vpop.f32.mrf.mxu1 }
 0x3f4   : > { %7555 = vst [vmem:[#allocation102_spill] sm:$0xff] %v7083_v7 }
 0x3f9   : > { %v7087_v3 = vpop.f32.mrf.mxu2 }
 0x3fa   : > { %7557 = vst [vmem:[#allocation104_spill] sm:$0xff] %v7087_v3  ;;  %v7100_v3 = vpop.f32.mrf.mxu3  ;;  %v7106_v62 = vpop.f32.mrf.mxu1 }
 0x3fb   : > { %3878 = vmatmul.bf16.gmra.mxu3 %v2658_v1  ;;  %v2667_v1 = vpack.c.bf16 %v2489_v43, %v2488_v34  ;;  %v2491_v34 = vld [vmem:[#allocation3 + $0x158] sm:$0xff] }
 0x3fe   : > { %3749 = vmatmul.bf16.gmra.mxu2 %v2585_v42  ;;  %v2558_v42 = vld [vmem:[#allocation3 + $0x182] sm:$0xff] }
 0x3ff   : > { %4071 = vmatmul.bf16.gmra.mxu1 %v6895_v23  ;;  %v2594_v23 = vpack.c.bf16 %v2440_v35, %v2439_v12  ;;  %v7104_v46 = vpack.c.bf16 %v2559_v61, %v2558_v42  ;;  %v2441_v61 = vld [vmem:[#allocation3 + $0x7a] sm:$0xff]  ;;  %v2442_v12 = vld [vmem:[#allocation3 + $0x82] sm:$0xff] }
 0x400   : > { %v2603_v35 = vpack.c.bf16 %v2442_v12, %v2441_v61  ;;  %v3361_v61 = vadd.f32 %v6918_v52, %v6852_v20 }
 0x401   : > { %v3434_v54 = vpop.f32.mrf.mxu2  ;;  %7561 = vst [vmem:[#allocation108_spill] sm:$0xff] %v7104_v46 }
 0x402   : > { %v7096_v39 = vadd.f32 %v3434_v54, %v3346_v33  ;;  %v3351_v33 = vadd.f32 %v6918_v52, %v6793_v6  ;;  %v7113_v43 = vpop.f32.mrf.mxu3  ;;  %v3356_v6 = vadd.f32 %v6918_v52, %v6823_v51 }
 0x404   : > { %7559 = vst [vmem:[#allocation106_spill] sm:$0xff] %v7096_v39 }
 0x409   : > { %v7102_v7 = vpop.f32.mrf.mxu2 }
 0x40a   : > { %7560 = vst [vmem:[#allocation107_spill] sm:$0xff] %v7102_v7  ;;  %v2490_v7 = vld [vmem:[#allocation3 + $0x150] sm:$0xff]  ;;  %v7117_v42 = vpop.f32.mrf.mxu3 }
 0x40b   : > { %3883 = vmatmul.bf16.gmra.mxu3 %v2667_v1  ;;  %v2676_v1 = vpack.c.bf16 %v2491_v34, %v2490_v7  ;;  %v2443_v34 = vld [vmem:[#allocation3 + $0x92] sm:$0xff] }
 0x40e   : > { %3754 = vmatmul.bf16.gmra.mxu2 %v2594_v23 }
 0x40f   : > { %4076 = vmatmul.bf16.gmra.mxu1 %v7104_v46 }
 0x411   : > { %v3439_v54 = vpop.f32.mrf.mxu2 }
 0x412   : > { %v7111_v39 = vadd.f32 %v3439_v54, %v3351_v33  ;;  %v2493_v54 = vld [vmem:[#allocation3 + $0x170] sm:$0xff] }
 0x413   : > { %v2685_v7 = vpack.c.bf16 %v2493_v54, %v2492_v0  ;;  %v2445_v54 = vld [vmem:[#allocation3 + $0xaa] sm:$0xff] }
 0x414   : > { %7562 = vst [vmem:[#allocation109_spill] sm:$0xff] %v7111_v39  ;;  %v7123_v39 = vpop.f32.mrf.mxu3  ;;  %v2621_v20 = vpack.c.bf16 %v2446_v32, %v2445_v54  ;;  %v3371_v32 = vadd.f32 %v6918_v52, %v6905_v9  ;;  %v3474_v54 = vadd.f32 %v6713_v60, %v6928_v14 }
 0x419   : > { %v7115_v53 = vpop.f32.mrf.mxu2 }
 0x41a   : > { %7563 = vst [vmem:[#allocation110_spill] sm:$0xff] %v7115_v53  ;;  %v2444_v53 = vld [vmem:[#allocation3 + $0x9a] sm:$0xff] }
 0x41b   : > { %3888 = vmatmul.bf16.gmra.mxu3 %v2676_v1  ;;  %v2612_v1 = vpack.c.bf16 %v2444_v53, %v2443_v34  ;;  %v3366_v34 = vadd.f32 %v6918_v52, %v6884_v26  ;;  %v3373_v26 = vadd.f32 %v6918_v52, %v6911_v2 }
 0x41c   : > { %v7129_v12 = vpop.f32.mrf.mxu3 }
 0x41e   : > { %3759 = vmatmul.bf16.gmra.mxu2 %v2603_v35 }
 0x421   : > { %v3444_v23 = vpop.f32.mrf.mxu2 }
 0x422   : > { %v7121_v33 = vadd.f32 %v3444_v23, %v3356_v6  ;;  %v2494_v6 = vld [vmem:[#allocation3 + $0x180] sm:$0xff]  ;;  %v2495_v23 = vld [vmem:[#allocation3 + $0x188] sm:$0xff] }
 0x423   : > { %v2694_v0 = vpack.c.bf16 %v2495_v23, %v2494_v6  ;;  %v2447_v6 = vld [vmem:[#allocation3 + $0xc2] sm:$0xff]  ;;  %v2448_v23 = vld [vmem:[#allocation3 + $0xca] sm:$0xff] }
 0x424   : > { %7564 = vst [vmem:[#allocation111_spill] sm:$0xff] %v7121_v33  ;;  %v3363_v33 = vadd.f32 %v6918_v52, %v6870_v5  ;;  %v7137_v53 = vpop.f32.mrf.mxu3  ;;  %v3368_v5 = vadd.f32 %v6918_v52, %v6893_v29 }
 0x429   : > { %v7125_v46 = vpop.f32.mrf.mxu2 }
 0x42a   : > { %7565 = vst [vmem:[#allocation112_spill] sm:$0xff] %v7125_v46 }
 0x42b   : > { %3893 = vmatmul.bf16.gmra.mxu3 %v2685_v7 }
 0x42e   : > { %3764 = vmatmul.bf16.gmra.mxu2 %v2612_v1 }
 0x431   : > { %v3449_v51 = vpop.f32.mrf.mxu2 }
 0x432   : > { %v7131_v35 = vadd.f32 %v3449_v51, %v3361_v61 }
 0x434   : > { %7566 = vst [vmem:[#allocation113_spill] sm:$0xff] %v7131_v35 }
 0x439   : > { %v3451_v46 = vpop.f32.mrf.mxu2 }
 0x43a   : > { %v7135_v7 = vadd.f32 %v3451_v46, %v3363_v33  ;;  %v2630_v46 = vpack.c.bf16 %v2448_v23, %v2447_v6  ;;  %v3563_v6 = vadd.f32 %v6563_v19, %v3474_v54  ;;  %v3479_v19 = vadd.f32 %v6741_v25, %v6945_v15  ;;  %v2452_v54 = vld [vmem:[#allocation3 + $0xfa] sm:$0xff] }
 0x43b   : > { %3898 = vmatmul.bf16.gmra.mxu3 %v2694_v0 }
 0x43c   : > { %v3652_v23 = vadd.f32 %v6624_v41, %v3563_v6 }
 0x43e   : > { %3769 = vmatmul.bf16.gmra.mxu2 %v2621_v20  ;;  %v2449_v20 = vld [vmem:[#allocation3 + $0xda] sm:$0xff] }
 0x441   : > { %v3454_v1 = vpop.f32.mrf.mxu2 }
 0x442   : > { %v7141_v61 = vadd.f32 %v3454_v1, %v3366_v34  ;;  %v2450_v34 = vld [vmem:[#allocation3 + $0xe2] sm:$0xff]  ;;  %v3298_v1 = vadd.f32 %v6918_v52, %v6462_v59 }
 0x443   : > { %v2639_v9 = vpack.c.bf16 %v2450_v34, %v2449_v20 }
 0x449   : > { %v3456_v51 = vpop.f32.mrf.mxu2 }
 0x44a   : > { %v7145_v35 = vadd.f32 %v3456_v51, %v3368_v5  ;;  %v3387_v51 = vadd.f32 %v6936_v28, %v3298_v1 }
 0x44c   : > { %v3476_v2 = vadd.f32 %v6728_v4, %v3387_v51 }
 0x44e   : > { %3774 = vmatmul.bf16.gmra.mxu2 %v2630_v46  ;;  %v7163_v46 = vpop.f32.mrf.mxu3  ;;  %v3565_v59 = vadd.f32 %v6574_v27, %v3476_v2 }
 0x450   : > { %v3654_v41 = vadd.f32 %v6634_v55, %v3565_v59 }
 0x451   : > { %v3459_v33 = vpop.f32.mrf.mxu2 }
 0x452   : > { %v7149_v0 = vadd.f32 %v3459_v33, %v3371_v32  ;;  %v7167_v33 = vpop.f32.mrf.mxu0 }
 0x456   : > { %v7189_v34 = vpop.f32.mrf.mxu3 }
 0x459   : > { %v3461_v29 = vpop.f32.mrf.mxu2 }
 0x45a   : > { %v7157_v5 = vadd.f32 %v3461_v29, %v3373_v26  ;;  %v7170_v26 = vpop.f32.mrf.mxu1  ;;  %v7192_v51 = vpop.f32.mrf.mxu0 }
 0x45e   : > { %3779 = vmatmul.bf16.gmra.mxu2 %v2639_v9 }
 0x461   : > { %v3740_v14 = vpop.f32.mrf.mxu2 }
 0x462   : > { %v3741_v60 = vadd.f32 %v3740_v14, %v3652_v23  ;;  %v7197_v6 = vpop.f32.mrf.mxu1 }
 0x464   : > { %v3830_v32 = vadd.f32 %v7100_v3, %v3741_v60  ;;  %v2451_v3 = vld [vmem:[#allocation3 + $0xf2] sm:$0xff]  ;;  %v7203_v60 = vpop.f32.mrf.mxu3 }
 0x465   : > { %v2648_v15 = vpack.c.bf16 %v2452_v54, %v2451_v3 }
 0x466   : > { %v3919_v28 = vadd.f32 %v7004_v45, %v3830_v32  ;;  %v3303_v45 = vadd.f32 %v6918_v52, %v6504_v10  ;;  %v7209_v32 = vpop.f32.mrf.mxu0 }
 0x468   : > { %v4008_v4 = vadd.f32 %v7063_v16, %v3919_v28  ;;  %v3392_v25 = vadd.f32 %v6953_v17, %v3303_v45  ;;  %v3568_v16 = vadd.f32 %v6585_v56, %v3479_v19  ;;  %v2453_v28 = vld [vmem:[#allocation3 + $0x10a] sm:$0xff]  ;;  %v2454_v19 = vld [vmem:[#allocation3 + $0x112] sm:$0xff] }
 0x469   : > { %v3742_v27 = vpop.f32.mrf.mxu2 }
 0x46a   : > { %v4087_v29 = vmax.f32 %v4008_v4, 0.0  ;;  %v3743_v20 = vadd.f32 %v3742_v27, %v3654_v41  ;;  %v3481_v10 = vadd.f32 %v6749_v50, %v3392_v25  ;;  %v3657_v17 = vadd.f32 %v6648_v11, %v3568_v16 }
 0x46b   : > { %v3484_v50 = vadd.f32 %v6767_v58, %v6965_v31  ;;  %v2657_v31 = vpack.c.bf16 %v2454_v19, %v2453_v28 }
 0x46c   : > { %4119 = vst [vmem:[%s7181_s11] sm:$0xff] %v4087_v29  ;;  %v3832_v55 = vadd.f32 %v7113_v43, %v3743_v20  ;;  %v7223_v54 = vpop.f32.mrf.mxu3 }
 0x46e   : > { %v3921_v1 = vadd.f32 %v7012_v47, %v3832_v55  ;;  %3784 = vmatmul.bf16.gmra.mxu2 %v2648_v15  ;;  %v3570_v47 = vadd.f32 %v6597_v22, %v3481_v10  ;;  %v7225_v20 = vpop.f32.mrf.mxu0  ;;  %v7569_v15 = vld [vmem:[#allocation13_spill] sm:$0xff]  ;;  %v2455_v10 = vld [vmem:[#allocation3 + $0x122] sm:$0xff] }
 0x470   : > { %v4010_v9 = vadd.f32 %v7072_v49, %v3921_v1  ;;  %v3659_v49 = vadd.f32 %v6666_v18, %v3570_v47  ;;  %v3573_v18 = vadd.f32 %v6604_v63, %v3484_v50 }
 0x471   : > { %v3745_v2 = vpop.f32.mrf.mxu2 }
 0x472   : > { %v4088_v43 = vmax.f32 %v4010_v9, 0.0  ;;  %v3746_v23 = vadd.f32 %v3745_v2, %v3657_v17  ;;  %v3662_v3 = vadd.f32 %v6684_v13, %v3573_v18  ;;  %v2456_v9 = vld [vmem:[#allocation3 + $0x12a] sm:$0xff] }
 0x473   : > { %v7570_v17 = vld [vmem:[#allocation4_spill] sm:$0xff]  ;;  %v2666_v47 = vpack.c.bf16 %v2456_v9, %v2455_v10 }
 0x474   : > { %4120 = vst [vmem:[%s7181_s11 + $0x8] sm:$0xff] %v4088_v43  ;;  %v3835_v56 = vadd.f32 %v7117_v42, %v3746_v23  ;;  %v3308_v42 = vadd.f32 %v6918_v52, %v6530_v30  ;;  %v3313_v2 = vadd.f32 %v6918_v52, %v7570_v17  ;;  %v7239_v23 = vpop.f32.mrf.mxu3 }
 0x476   : > { %v3924_v14 = vadd.f32 %v7023_v40, %v3835_v56  ;;  %v7213_v40 = vpop.f32.mrf.mxu1  ;;  %v3397_v41 = vadd.f32 %v6973_v48, %v3308_v42  ;;  %v7571_v56 = vld [vmem:[#allocation76_spill] sm:$0xff]  ;;  %v7245_v50 = vpop.f32.mrf.mxu0  ;;  %v7574_v42 = vld [vmem:[#allocation15_spill] sm:$0xff] }
 0x478   : > { %v4013_v11 = vadd.f32 %v7081_v8, %v3924_v14  ;;  %v3486_v27 = vadd.f32 %v6789_v24, %v3397_v41 }
 0x479   : > { %v3747_v59 = vpop.f32.mrf.mxu2 }
 0x47a   : > { %v4089_v22 = vmax.f32 %v4013_v11, 0.0  ;;  %v3748_v4 = vadd.f32 %v3747_v59, %v3659_v49  ;;  %v7573_v59 = vld [vmem:[#allocation33_spill] sm:$0xff] }
 0x47c   : > { %4121 = vst [vmem:[%s7181_s11 + $0x10] sm:$0xff] %v4089_v22  ;;  %v3837_v58 = vadd.f32 %v7123_v39, %v3748_v4  ;;  %v7567_v39 = vld [vmem:[#allocation8_spill] sm:$0xff] }
 0x47e   : > { %v3926_v8 = vadd.f32 %v7034_v37, %v3837_v58  ;;  %3789 = vmatmul.bf16.gmra.mxu2 %v2657_v31  ;;  %v3575_v37 = vadd.f32 %v7567_v39, %v3486_v27  ;;  %v7230_v25 = vpop.f32.mrf.mxu1  ;;  %v7575_v31 = vld [vmem:[#allocation10_spill] sm:$0xff]  ;;  %v7259_v27 = vpop.f32.mrf.mxu0 }
 0x480   : > { %v4015_v30 = vadd.f32 %v7089_v21, %v3926_v8  ;;  %v7568_v21 = vld [vmem:[#allocation29_spill] sm:$0xff]  ;;  %v3664_v16 = vadd.f32 %v7569_v15, %v3575_v37  ;;  %v7256_v8 = vpop.f32.mrf.mxu3  ;;  %v2458_v37 = vld [vmem:[#allocation3 + $0x142] sm:$0xff] }
 0x481   : > { %v3750_v45 = vpop.f32.mrf.mxu2  ;;  %v3489_v13 = vadd.f32 %v7568_v21, %v6984_v36 }
 0x482   : > { %v4090_v29 = vmax.f32 %v4015_v30, 0.0  ;;  %v3751_v48 = vadd.f32 %v3750_v45, %v3662_v3  ;;  %v7576_v30 = vld [vmem:[#allocation79_spill] sm:$0xff] }
 0x483   : > { %v7577_v3 = vld [vmem:[#allocation35_spill] sm:$0xff] }
 0x484   : > { %4122 = vst [vmem:[%s7181_s11 + $0x18] sm:$0xff] %v4090_v29  ;;  %v3840_v63 = vadd.f32 %v7129_v12, %v3751_v48  ;;  %v7578_v29 = vld [vmem:[#allocation18_spill] sm:$0xff] }
 0x486   : > { %v3929_v24 = vadd.f32 %v7044_v38, %v3840_v63  ;;  %v3402_v38 = vadd.f32 %v7571_v56, %v3313_v2  ;;  %v7248_v49 = vpop.f32.mrf.mxu1  ;;  %v7582_v2 = vld [vmem:[#allocation39_spill] sm:$0xff]  ;;  %v7583_v56 = vld [vmem:[#allocation20_spill] sm:$0xff] }
 0x488   : > { %v4018_v55 = vadd.f32 %v7098_v44, %v3929_v24  ;;  %v7572_v44 = vld [vmem:[#allocation9_spill] sm:$0xff]  ;;  %v3491_v28 = vadd.f32 %v7573_v59, %v3402_v38  ;;  %v7274_v17 = vpop.f32.mrf.mxu3 }
 0x489   : > { %v3752_v1 = vpop.f32.mrf.mxu2  ;;  %v3578_v14 = vadd.f32 %v7572_v44, %v3489_v13  ;;  %v7579_v24 = vld [vmem:[#allocation5_spill] sm:$0xff] }
 0x48a   : > { %v4091_v12 = vmax.f32 %v4018_v55, 0.0  ;;  %v3753_v43 = vadd.f32 %v3752_v1, %v3664_v16  ;;  %v3580_v18 = vadd.f32 %v7575_v31, %v3491_v28  ;;  %v3318_v21 = vadd.f32 %v6918_v52, %v7579_v24 }
 0x48b   : > { %v3667_v22 = vadd.f32 %v7574_v42, %v3578_v14  ;;  %v7586_v42 = vld [vmem:[#allocation42_spill] sm:$0xff] }
 0x48c   : > { %4123 = vst [vmem:[%s7181_s11 + $0x20] sm:$0xff] %v4091_v12  ;;  %v3842_v36 = vadd.f32 %v7137_v53, %v3753_v43  ;;  %v3669_v48 = vadd.f32 %v7578_v29, %v3580_v18 }
 0x48e   : > { %v3931_v11 = vadd.f32 %v7055_v57, %v3842_v36  ;;  %3794 = vmatmul.bf16.gmra.mxu2 %v2666_v47  ;;  %v7265_v63 = vpop.f32.mrf.mxu1  ;;  %v7279_v36 = vpop.f32.mrf.mxu0 }
 0x490   : > { %v4020_v19 = vadd.f32 %v7106_v62, %v3931_v11  ;;  %v3494_v62 = vadd.f32 %v7577_v3, %v7576_v30  ;;  %v7291_v31 = vpop.f32.mrf.mxu3 }
 0x491   : > { %v3755_v4 = vpop.f32.mrf.mxu2 }
 0x492   : > { %v4092_v41 = vmax.f32 %v4020_v19, 0.0  ;;  %v3756_v58 = vadd.f32 %v3755_v4, %v3667_v22  ;;  %v7585_v19 = vld [vmem:[#allocation84_spill] sm:$0xff]  ;;  %v7587_v4 = vld [vmem:[#allocation23_spill] sm:$0xff] }
 0x494   : > { %4124 = vst [vmem:[%s7181_s11 + $0x28] sm:$0xff] %v4092_v41  ;;  %v3845_v53 = vadd.f32 %v7163_v46, %v3756_v58  ;;  %v2457_v46 = vld [vmem:[#allocation3 + $0x13a] sm:$0xff]  ;;  %v2459_v58 = vld [vmem:[#allocation3 + $0x152] sm:$0xff] }
 0x495   : > { %v2675_v1 = vpack.c.bf16 %v2458_v37, %v2457_v46  ;;  %v7590_v46 = vld [vmem:[#allocation14_spill] sm:$0xff] }
 0x496   : > { %v3934_v57 = vadd.f32 %v7167_v33, %v3845_v53  ;;  %v7580_v33 = vld [vmem:[#allocation81_spill] sm:$0xff] }
 0x497   : > { %v3407_v15 = vadd.f32 %v7580_v33, %v3318_v21  ;;  %v2460_v53 = vld [vmem:[#allocation3 + $0x15a] sm:$0xff] }
 0x498   : > { %v4023_v45 = vadd.f32 %v7170_v26, %v3934_v57  ;;  %v7581_v26 = vld [vmem:[#allocation11_spill] sm:$0xff]  ;;  %v7588_v57 = vld [vmem:[#allocation6_spill] sm:$0xff]  ;;  %v2684_v29 = vpack.c.bf16 %v2460_v53, %v2459_v58 }
 0x499   : > { %v3757_v39 = vpop.f32.mrf.mxu2  ;;  %v3583_v10 = vadd.f32 %v7581_v26, %v3494_v62  ;;  %v3496_v12 = vadd.f32 %v7582_v2, %v3407_v15  ;;  %v5289_v62 = vld [vmem:[#allocation3] sm:$0xff] }
 0x49a   : > { %v4093_v13 = vmax.f32 %v4023_v45, 0.0  ;;  %v3758_v55 = vadd.f32 %v3757_v39, %v3669_v48  ;;  %v7295_v45 = vpop.f32.mrf.mxu0  ;;  %v7589_v48 = vld [vmem:[#allocation87_spill] sm:$0xff]  ;;  %v7592_v15 = vld [vmem:[#allocation26_spill] sm:$0xff] }
 0x49b   : > { %v3672_v38 = vadd.f32 %v7583_v56, %v3583_v10  ;;  %v2528_v26 = vld [vmem:[#allocation3 + $0x199] sm:$0xff]  ;;  %v2529_v10 = vld [vmem:[#allocation3 + $0x1a1] sm:$0xff] }
 0x49c   : > { %4125 = vst [vmem:[%s7181_s11 + $0x30] sm:$0xff] %v4093_v13  ;;  %v3847_v16 = vadd.f32 %v7189_v34, %v3758_v55  ;;  %v7281_v34 = vpop.f32.mrf.mxu1  ;;  %v7591_v13 = vld [vmem:[#allocation45_spill] sm:$0xff]  ;;  %v2704_v2 = vpack.c.bf16 %v2529_v10, %v2528_v26  ;;  %v2561_v56 = vld [vmem:[#allocation3 + $0x1a2] sm:$0xff] }
 0x49d   : > { %v7604_v26 = vld [vmem:[#allocation54_spill] sm:$0xff] }
 0x49e   : > { %v3936_v9 = vadd.f32 %v7192_v51, %v3847_v16  ;;  %3799 = vmatmul.bf16.gmra.mxu2 %v2675_v1  ;;  %v7584_v51 = vld [vmem:[#allocation12_spill] sm:$0xff]  ;;  %3992 = vmatmul.bf16.gmra.mxu0 %v2704_v2 }
 0x49f   : > { %v3585_v59 = vadd.f32 %v7584_v51, %v3496_v12  ;;  %v7307_v12 = vpop.f32.mrf.mxu3  ;;  %v7594_v51 = vld [vmem:[#allocation89_spill] sm:$0xff] }
 0x4a0   : > { %v4025_v43 = vadd.f32 %v7197_v6, %v3936_v9  ;;  %v3499_v6 = vadd.f32 %v7586_v42, %v7585_v19  ;;  %v7596_v42 = vld [vmem:[#allocation28_spill] sm:$0xff] }
 0x4a1   : > { %v3760_v47 = vpop.f32.mrf.mxu2  ;;  %v3674_v41 = vadd.f32 %v7587_v4, %v3585_v59  ;;  %v7595_v59 = vld [vmem:[#allocation48_spill] sm:$0xff] }
 0x4a2   : > { %v4094_v44 = vmax.f32 %v4025_v43, 0.0  ;;  %v3761_v14 = vadd.f32 %v3760_v47, %v3672_v38  ;;  %v3588_v37 = vadd.f32 %v7590_v46, %v3499_v6  ;;  %v2560_v43 = vld [vmem:[#allocation3 + $0x19a] sm:$0xff]  ;;  %v2461_v4 = vld [vmem:[#allocation3 + $0x16a] sm:$0xff] }
 0x4a3   : > { %v7593_v38 = vld [vmem:[#allocation17_spill] sm:$0xff] }
 0x4a4   : > { %4126 = vst [vmem:[%s7181_s11 + $0x38] sm:$0xff] %v4094_v44  ;;  %v3850_v11 = vadd.f32 %v7203_v60, %v3761_v14  ;;  %v3323_v60 = vadd.f32 %v6918_v52, %v7588_v57  ;;  %v7301_v24 = vpop.f32.mrf.mxu1  ;;  %v3677_v16 = vadd.f32 %v7592_v15, %v3588_v37  ;;  %v3953_v44 = vpop.f32.mrf.mxu0  ;;  %v7598_v57 = vld [vmem:[#allocation92_spill] sm:$0xff] }
 0x4a6   : > { %v3939_v28 = vadd.f32 %v7209_v32, %v3850_v11  ;;  %v2703_v32 = vpack.c.bf16 %v5289_v62, %v5289_v62  ;;  %v3412_v39 = vadd.f32 %v7589_v48, %v3323_v60  ;;  %v7600_v48 = vld [vmem:[#allocation51_spill] sm:$0xff] }
 0x4a8   : > { %v4028_v22 = vadd.f32 %v7213_v40, %v3939_v28  ;;  %3903 = vmatmul.bf16.gmra.mxu3 %v2703_v32  ;;  %v3501_v55 = vadd.f32 %v7591_v13, %v3412_v39  ;;  %v3504_v28 = vadd.f32 %v7595_v59, %v7594_v51  ;;  %v7608_v51 = vld [vmem:[#allocation97_spill] sm:$0xff] }
 0x4a9   : > { %v3762_v18 = vpop.f32.mrf.mxu2  ;;  %v7609_v59 = vld [vmem:[#allocation57_spill] sm:$0xff] }
 0x4aa   : > { %v4095_v30 = vmax.f32 %v4028_v22, 0.0  ;;  %v3763_v3 = vadd.f32 %v3762_v18, %v3674_v41  ;;  %v3590_v47 = vadd.f32 %v7593_v38, %v3501_v55  ;;  %v7597_v41 = vld [vmem:[#allocation7_spill] sm:$0xff] }
 0x4ab   : > { %v3328_v58 = vadd.f32 %v6918_v52, %v7597_v41 }
 0x4ac   : > { %4127 = vst [vmem:[%s7181_s11 + $0x40] sm:$0xff] %v4095_v30  ;;  %v3852_v40 = vadd.f32 %v7223_v54, %v3763_v3  ;;  %v4042_v11 = vpop.f32.mrf.mxu1  ;;  %v3679_v6 = vadd.f32 %v7596_v42, %v3590_v47  ;;  %v7599_v3 = vld [vmem:[#allocation19_spill] sm:$0xff]  ;;  %v7606_v47 = vld [vmem:[#allocation24_spill] sm:$0xff] }
 0x4ad   : > { %v3417_v60 = vadd.f32 %v7598_v57, %v3328_v58  ;;  %v3593_v62 = vadd.f32 %v7599_v3, %v3504_v28  ;;  %v7611_v58 = vld [vmem:[#allocation27_spill] sm:$0xff] }
 0x4ae   : > { %v3941_v21 = vadd.f32 %v7225_v20, %v3852_v40  ;;  %3804 = vmatmul.bf16.gmra.mxu2 %v2684_v29  ;;  %v3955_v29 = vpop.f32.mrf.mxu0  ;;  %v7601_v40 = vld [vmem:[#allocation32_spill] sm:$0xff]  ;;  %v7612_v57 = vld [vmem:[#allocation99_spill] sm:$0xff] }
 0x4af   : > { %v3506_v39 = vadd.f32 %v7600_v48, %v3417_v60  ;;  %v3682_v46 = vadd.f32 %v7601_v40, %v3593_v62  ;;  %v7613_v60 = vld [vmem:[#allocation60_spill] sm:$0xff] }
 0x4b0   : > { %v4030_v33 = vadd.f32 %v7230_v25, %v3941_v21  ;;  %v2705_v25 = vpack.c.bf16 %v2561_v56, %v2560_v43  ;;  %v7615_v48 = vld [vmem:[#allocation16_spill] sm:$0xff] }
 0x4b1   : > { %v3765_v1 = vpop.f32.mrf.mxu2 }
 0x4b2   : > { %v4096_v9 = vmax.f32 %v4030_v33, 0.0  ;;  %v3766_v54 = vadd.f32 %v3765_v1, %v3677_v16  ;;  %4081 = vmatmul.bf16.gmra.mxu1 %v2705_v25  ;;  %v7602_v33 = vld [vmem:[#allocation22_spill] sm:$0xff] }
 0x4b3   : > { %v3595_v15 = vadd.f32 %v7602_v33, %v3506_v39  ;;  %v7603_v1 = vld [vmem:[#allocation94_spill] sm:$0xff] }
 0x4b4   : > { %4128 = vst [vmem:[%s7181_s11 + $0x48] sm:$0xff] %v4096_v9  ;;  %v3855_v20 = vadd.f32 %v7239_v23, %v3766_v54  ;;  %v2462_v23 = vld [vmem:[#allocation3 + $0x172] sm:$0xff]  ;;  %v4044_v37 = vpop.f32.mrf.mxu1  ;;  %v3509_v10 = vadd.f32 %v7604_v26, %v7603_v1  ;;  %v7619_v26 = vld [vmem:[#allocation46_spill] sm:$0xff] }
 0x4b5   : > { %v2693_v30 = vpack.c.bf16 %v2462_v23, %v2461_v4  ;;  %v7605_v9 = vld [vmem:[#allocation36_spill] sm:$0xff] }
 0x4b6   : > { %v3944_v14 = vadd.f32 %v7245_v50, %v3855_v20  ;;  %v3684_v54 = vadd.f32 %v7605_v9, %v3595_v15  ;;  %v3958_v2 = vpop.f32.mrf.mxu0  ;;  %v3598_v25 = vadd.f32 %v7606_v47, %v3509_v10  ;;  %v7618_v15 = vld [vmem:[#allocation63_spill] sm:$0xff] }
 0x4b8   : > { %v4033_v19 = vadd.f32 %v7248_v49, %v3944_v14  ;;  %v3866_v49 = vpop.f32.mrf.mxu3  ;;  %v7607_v14 = vld [vmem:[#allocation108_spill] sm:$0xff] }
 0x4b9   : > { %v3767_v22 = vpop.f32.mrf.mxu2 }
 0x4ba   : > { %v4097_v53 = vmax.f32 %v4033_v19, 0.0  ;;  %v3768_v18 = vadd.f32 %v3767_v22, %v3679_v6  ;;  %v7610_v19 = vld [vmem:[#allocation40_spill] sm:$0xff] }
 0x4bb   : > { %v3687_v42 = vadd.f32 %v7610_v19, %v3598_v25  ;;  %v7621_v25 = vld [vmem:[#allocation102_spill] sm:$0xff] }
 0x4bc   : > { %4129 = vst [vmem:[%s7181_s11 + $0x50] sm:$0xff] %v4097_v53  ;;  %v3857_v50 = vadd.f32 %v7256_v8, %v3768_v18  ;;  %v4047_v38 = vpop.f32.mrf.mxu1 }
 0x4be   : > { %v3946_v32 = vadd.f32 %v7259_v27, %v3857_v50  ;;  %3809 = vmatmul.bf16.gmra.mxu2 %v2693_v30  ;;  %v3960_v41 = vpop.f32.mrf.mxu0  ;;  %v3514_v50 = vadd.f32 %v7613_v60, %v7612_v57  ;;  %v7628_v60 = vld [vmem:[#allocation53_spill] sm:$0xff] }
 0x4c0   : > { %v4035_v52 = vadd.f32 %v7265_v63, %v3946_v32  ;;  %v3869_v16 = vpop.f32.mrf.mxu3  ;;  %v7353_v32 = vld [vmem:[%s7452_s4] ss:$0 sm:$0xff] }
 0x4c1   : > { %v3770_v21 = vpop.f32.mrf.mxu2  ;;  %v3338_v39 = vadd.f32 %v7353_v32, %v7615_v48 }
 0x4c2   : > { %v4098_v13 = vmax.f32 %v4035_v52, 0.0  ;;  %v3771_v55 = vadd.f32 %v3770_v21, %v3682_v46 }
 0x4c4   : > { %4130 = vst [vmem:[%s7181_s11 + $0x58] sm:$0xff] %v4098_v13  ;;  %v3860_v8 = vadd.f32 %v7274_v17, %v3771_v55  ;;  %v4049_v53 = vpop.f32.mrf.mxu1 }
 0x4c6   : > { %v3949_v27 = vadd.f32 %v7279_v36, %v3860_v8  ;;  %v3963_v55 = vpop.f32.mrf.mxu0 }
 0x4c8   : > { %v4038_v63 = vadd.f32 %v7281_v34, %v3949_v27  ;;  %v3511_v34 = vadd.f32 %v7609_v59, %v7608_v51  ;;  %v3871_v6 = vpop.f32.mrf.mxu3  ;;  %v7623_v51 = vld [vmem:[#allocation50_spill] sm:$0xff] }
 0x4c9   : > { %v3772_v43 = vpop.f32.mrf.mxu2 }
 0x4ca   : > { %v4099_v56 = vmax.f32 %v4038_v63, 0.0  ;;  %v3773_v20 = vadd.f32 %v3772_v43, %v3684_v54 }
 0x4cc   : > { %4131 = vst [vmem:[%s7181_s11 + $0x60] sm:$0xff] %v4099_v56  ;;  %v3862_v17 = vadd.f32 %v7291_v31, %v3773_v20  ;;  %v4052_v33 = vpop.f32.mrf.mxu1  ;;  %v7620_v56 = vld [vmem:[#allocation34_spill] sm:$0xff] }
 0x4ce   : > { %v3951_v36 = vadd.f32 %v7295_v45, %v3862_v17  ;;  %3814 = vmatmul.bf16.gmra.mxu2 %v7607_v14  ;;  %v3600_v45 = vadd.f32 %v7611_v58, %v3511_v34  ;;  %v3965_v47 = vpop.f32.mrf.mxu0 }
 0x4d0   : > { %v4040_v28 = vadd.f32 %v7301_v24, %v3951_v36  ;;  %v7614_v24 = vld [vmem:[#allocation43_spill] sm:$0xff]  ;;  %v3874_v40 = vpop.f32.mrf.mxu3 }
 0x4d1   : > { %v3775_v22 = vpop.f32.mrf.mxu2  ;;  %v3689_v3 = vadd.f32 %v7614_v24, %v3600_v45  ;;  %v7622_v36 = vld [vmem:[#allocation67_spill] sm:$0xff] }
 0x4d2   : > { %v4100_v4 = vmax.f32 %v4040_v28, 0.0  ;;  %v3776_v23 = vadd.f32 %v3775_v22, %v3687_v42  ;;  %v7624_v28 = vld [vmem:[#allocation21_spill] sm:$0xff] }
 0x4d3   : > { %v3343_v19 = vadd.f32 %v7353_v32, %v7624_v28  ;;  %v7638_v28 = vld [vmem:[#allocation47_spill] sm:$0xff] }
 0x4d4   : > { %4132 = vst [vmem:[%s7181_s11 + $0x68] sm:$0xff] %v4100_v4  ;;  %v3865_v31 = vadd.f32 %v7307_v12, %v3776_v23 }
 0x4d6   : > { %v3954_v18 = vadd.f32 %v3953_v44, %v3865_v31  ;;  %v7616_v44 = vld [vmem:[#allocation100_spill] sm:$0xff] }
 0x4d7   : > { %v3427_v46 = vadd.f32 %v7616_v44, %v3338_v39  ;;  %v7630_v44 = vld [vmem:[#allocation106_spill] sm:$0xff] }
 0x4d8   : > { %v4043_v30 = vadd.f32 %v4042_v11, %v3954_v18  ;;  %v7617_v11 = vld [vmem:[#allocation30_spill] sm:$0xff]  ;;  %v3876_v17 = vpop.f32.mrf.mxu3 }
 0x4d9   : > { %v3777_v62 = vpop.f32.mrf.mxu2  ;;  %v3603_v13 = vadd.f32 %v7617_v11, %v3514_v50  ;;  %v3516_v27 = vadd.f32 %v7618_v15, %v3427_v46  ;;  %v7627_v18 = vld [vmem:[#allocation70_spill] sm:$0xff]  ;;  %v7631_v46 = vld [vmem:[#allocation73_spill] sm:$0xff]  ;;  %v7632_v11 = vld [vmem:[#allocation56_spill] sm:$0xff] }
 0x4da   : > { %v4101_v12 = vmax.f32 %v4043_v30, 0.0  ;;  %v3778_v52 = vadd.f32 %v3777_v62, %v3689_v3  ;;  %v3968_v30 = vpop.f32.mrf.mxu0  ;;  %v7633_v15 = vld [vmem:[#allocation25_spill] sm:$0xff] }
 0x4db   : > { %v3692_v10 = vadd.f32 %v7619_v26, %v3603_v13  ;;  %v3605_v20 = vadd.f32 %v7620_v56, %v3516_v27  ;;  %v3348_v27 = vadd.f32 %v7353_v32, %v7633_v15 }
 0x4dc   : > { %4133 = vst [vmem:[%s7181_s11 + $0x70] sm:$0xff] %v4101_v12  ;;  %v3867_v21 = vadd.f32 %v3866_v49, %v3778_v52  ;;  %v7629_v12 = vld [vmem:[#allocation41_spill] sm:$0xff] }
 0x4dd   : > { %v3694_v59 = vadd.f32 %v7623_v51, %v3605_v20 }
 0x4de   : > { %v3956_v8 = vadd.f32 %v3955_v29, %v3867_v21  ;;  %v3519_v29 = vadd.f32 %v7622_v36, %v7621_v25  ;;  %v7637_v25 = vld [vmem:[#allocation59_spill] sm:$0xff] }
 0x4e0   : > { %v4045_v1 = vadd.f32 %v4044_v37, %v3956_v8  ;;  %v4054_v37 = vpop.f32.mrf.mxu1  ;;  %v3879_v45 = vpop.f32.mrf.mxu3 }
 0x4e1   : > { %v3780_v63 = vpop.f32.mrf.mxu2 }
 0x4e2   : > { %v4102_v9 = vmax.f32 %v4045_v1, 0.0  ;;  %v3781_v54 = vadd.f32 %v3780_v63, %v3692_v10  ;;  %v3970_v10 = vpop.f32.mrf.mxu0  ;;  %v7634_v63 = vld [vmem:[#allocation107_spill] sm:$0xff] }
 0x4e4   : > { %4134 = vst [vmem:[%s7181_s11 + $0x78] sm:$0xff] %v4102_v9  ;;  %v3870_v43 = vadd.f32 %v3869_v16, %v3781_v54  ;;  %v7625_v16 = vld [vmem:[#allocation104_spill] sm:$0xff] }
 0x4e5   : > { %v3432_v4 = vadd.f32 %v7625_v16, %v3343_v19  ;;  %v7639_v16 = vld [vmem:[#allocation109_spill] sm:$0xff] }
 0x4e6   : > { %v3959_v49 = vadd.f32 %v3958_v2, %v3870_v43  ;;  %v7626_v2 = vld [vmem:[#allocation37_spill] sm:$0xff] }
 0x4e7   : > { %v3608_v31 = vadd.f32 %v7626_v2, %v3519_v29  ;;  %v7641_v2 = vld [vmem:[#allocation62_spill] sm:$0xff] }
 0x4e8   : > { %v4048_v14 = vadd.f32 %v4047_v38, %v3959_v49  ;;  %v3521_v38 = vadd.f32 %v7627_v18, %v3432_v4  ;;  %v4057_v48 = vpop.f32.mrf.mxu1  ;;  %v7640_v4 = vld [vmem:[#allocation80_spill] sm:$0xff] }
 0x4e9   : > { %v3782_v34 = vpop.f32.mrf.mxu2  ;;  %v3697_v50 = vadd.f32 %v7628_v60, %v3608_v31  ;;  %v7643_v60 = vld [vmem:[#allocation110_spill] sm:$0xff] }
 0x4ea   : > { %v4103_v42 = vmax.f32 %v4048_v14, 0.0  ;;  %v3783_v22 = vadd.f32 %v3782_v34, %v3694_v59  ;;  %v3610_v52 = vadd.f32 %v7629_v12, %v3521_v38  ;;  %v7645_v12 = vld [vmem:[#allocation83_spill] sm:$0xff] }
 0x4ec   : > { %4135 = vst [vmem:[%s7181_s11 + $0x80] sm:$0xff] %v4103_v42  ;;  %v3872_v23 = vadd.f32 %v3871_v6, %v3783_v22  ;;  %v3699_v13 = vadd.f32 %v7632_v11, %v3610_v52  ;;  %v3973_v42 = vpop.f32.mrf.mxu0 }
 0x4ee   : > { %v3961_v58 = vadd.f32 %v3960_v41, %v3872_v23  ;;  %v3524_v41 = vadd.f32 %v7631_v46, %v7630_v44 }
 0x4f0   : > { %v4050_v57 = vadd.f32 %v4049_v53, %v3961_v58  ;;  %v3881_v53 = vpop.f32.mrf.mxu3  ;;  %v4059_v43 = vpop.f32.mrf.mxu1  ;;  %v7642_v58 = vld [vmem:[#allocation31_spill] sm:$0xff] }
 0x4f1   : > { %v3785_v24 = vpop.f32.mrf.mxu2  ;;  %v3353_v18 = vadd.f32 %v7353_v32, %v7642_v58 }
 0x4f2   : > { %v4104_v3 = vmax.f32 %v4050_v57, 0.0  ;;  %v3786_v62 = vadd.f32 %v3785_v24, %v3697_v50  ;;  %v7644_v24 = vld [vmem:[#allocation49_spill] sm:$0xff] }
 0x4f4   : > { %4136 = vst [vmem:[%s7181_s11 + $0x88] sm:$0xff] %v4104_v3  ;;  %v3875_v39 = vadd.f32 %v3874_v40, %v3786_v62  ;;  %v3437_v40 = vadd.f32 %v7634_v63, %v3348_v27 }
 0x4f6   : > { %v3964_v6 = vadd.f32 %v3963_v55, %v3875_v39  ;;  %v7635_v55 = vld [vmem:[#allocation44_spill] sm:$0xff]  ;;  %v3975_v39 = vpop.f32.mrf.mxu0 }
 0x4f7   : > { %v3613_v54 = vadd.f32 %v7635_v55, %v3524_v41 }
 0x4f8   : > { %v4053_v21 = vadd.f32 %v4052_v33, %v3964_v6  ;;  %v7636_v33 = vld [vmem:[#allocation77_spill] sm:$0xff]  ;;  %v3884_v59 = vpop.f32.mrf.mxu3  ;;  %v4062_v22 = vpop.f32.mrf.mxu1 }
 0x4f9   : > { %v3787_v8 = vpop.f32.mrf.mxu2  ;;  %v3526_v20 = vadd.f32 %v7636_v33, %v3437_v40  ;;  %v3702_v36 = vadd.f32 %v7637_v25, %v3613_v54  ;;  %v7646_v6 = vld [vmem:[#allocation65_spill] sm:$0xff]  ;;  %v7650_v40 = vld [vmem:[#allocation68_spill] sm:$0xff] }
 0x4fa   : > { %v4105_v1 = vmax.f32 %v4053_v21, 0.0  ;;  %v3788_v26 = vadd.f32 %v3787_v8, %v3699_v13  ;;  %v7647_v8 = vld [vmem:[#allocation52_spill] sm:$0xff] }
 0x4fb   : > { %v3615_v19 = vadd.f32 %v7638_v28, %v3526_v20  ;;  %v7652_v25 = vld [vmem:[#allocation112_spill] sm:$0xff] }
 0x4fc   : > { %4137 = vst [vmem:[%s7181_s11 + $0x90] sm:$0xff] %v4105_v1  ;;  %v3877_v9 = vadd.f32 %v3876_v17, %v3788_v26  ;;  %v7648_v1 = vld [vmem:[#allocation111_spill] sm:$0xff]  ;;  %v7649_v26 = vld [vmem:[#allocation86_spill] sm:$0xff] }
 0x4fe   : > { %v3966_v56 = vadd.f32 %v3965_v47, %v3877_v9  ;;  %v3529_v47 = vadd.f32 %v7640_v4, %v7639_v16  ;;  %v3978_v55 = vpop.f32.mrf.mxu0 }
 0x500   : > { %v4055_v49 = vadd.f32 %v4054_v37, %v3966_v56  ;;  %v3704_v37 = vadd.f32 %v7641_v2, %v3615_v19  ;;  %v3886_v3 = vpop.f32.mrf.mxu3  ;;  %v4064_v46 = vpop.f32.mrf.mxu1  ;;  %v7656_v2 = vld [vmem:[#allocation58_spill] sm:$0xff] }
 0x501   : > { %v3790_v29 = vpop.f32.mrf.mxu2 }
 0x502   : > { %v4106_v14 = vmax.f32 %v4055_v49, 0.0  ;;  %v3791_v51 = vadd.f32 %v3790_v29, %v3702_v36 }
 0x504   : > { %4138 = vst [vmem:[%s7181_s11 + $0x98] sm:$0xff] %v4106_v14  ;;  %v3880_v34 = vadd.f32 %v3879_v45, %v3791_v51  ;;  %v3442_v45 = vadd.f32 %v7643_v60, %v3353_v18  ;;  %v7653_v14 = vld [vmem:[#allocation55_spill] sm:$0xff]  ;;  %v7657_v18 = vld [vmem:[#allocation113_spill] sm:$0xff] }
 0x506   : > { %v3969_v17 = vadd.f32 %v3968_v30, %v3880_v34  ;;  %v3618_v30 = vadd.f32 %v7644_v24, %v3529_v47  ;;  %v7654_v34 = vld [vmem:[#allocation90_spill] sm:$0xff]  ;;  %v3980_v47 = vpop.f32.mrf.mxu0 }
 0x508   : > { %v4058_v23 = vadd.f32 %v4057_v48, %v3969_v17  ;;  %v3531_v48 = vadd.f32 %v7645_v12, %v3442_v45  ;;  %v3707_v44 = vadd.f32 %v7646_v6, %v3618_v30  ;;  %v3889_v27 = vpop.f32.mrf.mxu3  ;;  %v4067_v49 = vpop.f32.mrf.mxu1  ;;  %v7659_v45 = vld [vmem:[#allocation74_spill] sm:$0xff]  ;;  %v7660_v12 = vld [vmem:[#allocation61_spill] sm:$0xff] }
 0x509   : > { %v3792_v31 = vpop.f32.mrf.mxu2 }
 0x50a   : > { %v4107_v38 = vmax.f32 %v4058_v23, 0.0  ;;  %v3793_v57 = vadd.f32 %v3792_v31, %v3704_v37  ;;  %v3620_v15 = vadd.f32 %v7647_v8, %v3531_v48 }
 0x50c   : > { %4139 = vst [vmem:[%s7181_s11 + $0xa0] sm:$0xff] %v4107_v38  ;;  %v3882_v50 = vadd.f32 %v3881_v53, %v3793_v57  ;;  %v3709_v9 = vadd.f32 %v7650_v40, %v3620_v15  ;;  %v7658_v38 = vld [vmem:[#allocation93_spill] sm:$0xff] }
 0x50d   : > { %v3539_v57 = vadd.f32 %v7658_v38, %v7657_v18  ;;  %v7671_v18 = vld [vmem:[#allocation88_spill] sm:$0xff] }
 0x50e   : > { %v3971_v62 = vadd.f32 %v3970_v10, %v3882_v50  ;;  %v3534_v10 = vadd.f32 %v7649_v26, %v7648_v1  ;;  %v7663_v1 = vld [vmem:[#allocation64_spill] sm:$0xff] }
 0x50f   : > { %v3628_v48 = vadd.f32 %v7660_v12, %v3539_v57  ;;  %v7673_v12 = vld [vmem:[#allocation105_spill] sm:$0xff] }
 0x510   : > { %v4060_v52 = vadd.f32 %v4059_v43, %v3971_v62  ;;  %v7651_v43 = vld [vmem:[#allocation38_spill] sm:$0xff]  ;;  %v3623_v51 = vadd.f32 %v7653_v14, %v3534_v10  ;;  %v4069_v31 = vpop.f32.mrf.mxu1 }
 0x511   : > { %v3795_v41 = vpop.f32.mrf.mxu2  ;;  %v3358_v56 = vadd.f32 %v7353_v32, %v7651_v43  ;;  %v7665_v43 = vld [vmem:[#allocation82_spill] sm:$0xff] }
 0x512   : > { %v4108_v21 = vmax.f32 %v4060_v52, 0.0  ;;  %v3796_v11 = vadd.f32 %v3795_v41, %v3707_v44  ;;  %v3983_v52 = vpop.f32.mrf.mxu0 }
 0x513   : > { %v3447_v36 = vadd.f32 %v7652_v25, %v3358_v56 }
 0x514   : > { %4140 = vst [vmem:[%s7181_s11 + $0xa8] sm:$0xff] %v4108_v21  ;;  %v3885_v13 = vadd.f32 %v3884_v59, %v3796_v11  ;;  %v7662_v11 = vld [vmem:[#allocation78_spill] sm:$0xff] }
 0x515   : > { %v3536_v28 = vadd.f32 %v7654_v34, %v3447_v36  ;;  %v7666_v36 = vld [vmem:[#allocation66_spill] sm:$0xff] }
 0x516   : > { %v3974_v53 = vadd.f32 %v3973_v42, %v3885_v13  ;;  %v7655_v42 = vld [vmem:[#allocation71_spill] sm:$0xff]  ;;  %v3717_v13 = vadd.f32 %v7662_v11, %v3628_v48  ;;  %v3551_v48 = vadd.f32 %v7673_v12, %v7157_v5 }
 0x517   : > { %v3712_v17 = vadd.f32 %v7655_v42, %v3623_v51  ;;  %v3625_v37 = vadd.f32 %v7656_v2, %v3536_v28 }
 0x518   : > { %v4063_v63 = vadd.f32 %v4062_v22, %v3974_v53  ;;  %v3891_v22 = vpop.f32.mrf.mxu3  ;;  %v4072_v44 = vpop.f32.mrf.mxu1 }
 0x519   : > { %v3797_v54 = vpop.f32.mrf.mxu2  ;;  %v3714_v50 = vadd.f32 %v7659_v45, %v3625_v37  ;;  %v7670_v37 = vld [vmem:[#allocation103_spill] sm:$0xff] }
 0x51a   : > { %v4109_v33 = vmax.f32 %v4063_v63, 0.0  ;;  %v3798_v20 = vadd.f32 %v3797_v54, %v3709_v9  ;;  %v3985_v40 = vpop.f32.mrf.mxu0  ;;  %v7664_v9 = vld [vmem:[#allocation98_spill] sm:$0xff] }
 0x51c   : > { %4141 = vst [vmem:[%s7181_s11 + $0xb0] sm:$0xff] %v4109_v33  ;;  %v3887_v29 = vadd.f32 %v3886_v3, %v3798_v20 }
 0x51e   : > { %v3976_v59 = vadd.f32 %v3975_v39, %v3887_v29 }
 0x520   : > { %v4065_v19 = vadd.f32 %v4064_v46, %v3976_v59  ;;  %v3894_v62 = vpop.f32.mrf.mxu3  ;;  %v7661_v46 = vld [vmem:[#allocation96_spill] sm:$0xff]  ;;  %v4074_v56 = vpop.f32.mrf.mxu1  ;;  %v7667_v59 = vld [vmem:[#allocation101_spill] sm:$0xff] }
 0x521   : > { %v3800_v16 = vpop.f32.mrf.mxu2  ;;  %v3541_v41 = vadd.f32 %v7661_v46, %v7135_v7  ;;  %v3546_v34 = vadd.f32 %v7667_v59, %v7145_v35 }
 0x522   : > { %v4110_v32 = vmax.f32 %v4065_v19, 0.0  ;;  %v3801_v4 = vadd.f32 %v3800_v16, %v3712_v17  ;;  %v7668_v19 = vld [vmem:[#allocation85_spill] sm:$0xff]  ;;  %v3988_v42 = vpop.f32.mrf.mxu0 }
 0x523   : > { %v3630_v26 = vadd.f32 %v7663_v1, %v3541_v41 }
 0x524   : > { %4142 = vst [vmem:[%s7181_s11 + $0xb8] sm:$0xff] %v4110_v32  ;;  %v3890_v23 = vadd.f32 %v3889_v27, %v3801_v4 }
 0x525   : > { %v3719_v7 = vadd.f32 %v7665_v43, %v3630_v26  ;;  %v7676_v26 = vld [vmem:[#allocation95_spill] sm:$0xff] }
 0x526   : > { %v3979_v58 = vadd.f32 %v3978_v55, %v3890_v23  ;;  %v3544_v55 = vadd.f32 %v7664_v9, %v7141_v61 }
 0x528   : > { %v4068_v60 = vadd.f32 %v4067_v49, %v3979_v58  ;;  %v3896_v10 = vpop.f32.mrf.mxu3  ;;  %v3633_v29 = vadd.f32 %v7666_v36, %v3544_v55  ;;  %v4077_v32 = vpop.f32.mrf.mxu1 }
 0x529   : > { %v3802_v24 = vpop.f32.mrf.mxu2 }
 0x52a   : > { %v4111_v30 = vmax.f32 %v4068_v60, 0.0  ;;  %v3803_v3 = vadd.f32 %v3802_v24, %v3714_v50  ;;  %v3722_v61 = vadd.f32 %v7668_v19, %v3633_v29  ;;  %v3990_v50 = vpop.f32.mrf.mxu0 }
 0x52c   : > { %4143 = vst [vmem:[%s7181_s11 + $0xc0] sm:$0xff] %v4111_v30  ;;  %v3892_v39 = vadd.f32 %v3891_v22, %v3803_v3  ;;  %v7672_v30 = vld [vmem:[#allocation72_spill] sm:$0xff] }
 0x52e   : > { %v3981_v6 = vadd.f32 %v3980_v47, %v3892_v39  ;;  %v7669_v47 = vld [vmem:[#allocation69_spill] sm:$0xff] }
 0x52f   : > { %v3635_v23 = vadd.f32 %v7669_v47, %v3546_v34 }
 0x530   : > { %v4070_v21 = vadd.f32 %v4069_v31, %v3981_v6  ;;  %v3899_v51 = vpop.f32.mrf.mxu3  ;;  %v3549_v31 = vadd.f32 %v7670_v37, %v7149_v0  ;;  %v7674_v0 = vld [vmem:[#allocation91_spill] sm:$0xff] }
 0x531   : > { %v3805_v8 = vpop.f32.mrf.mxu2  ;;  %v3724_v35 = vadd.f32 %v7671_v18, %v3635_v23 }
 0x532   : > { %v4112_v15 = vmax.f32 %v4070_v21, 0.0  ;;  %v3806_v53 = vadd.f32 %v3805_v8, %v3717_v13  ;;  %v3638_v3 = vadd.f32 %v7672_v30, %v3549_v31  ;;  %v3993_v11 = vpop.f32.mrf.mxu0  ;;  %v7675_v8 = vld [vmem:[#allocation75_spill] sm:$0xff] }
 0x534   : > { %4144 = vst [vmem:[%s7181_s11 + $0xc8] sm:$0xff] %v4112_v15  ;;  %v3895_v27 = vadd.f32 %v3894_v62, %v3806_v53  ;;  %v4079_v62 = vpop.f32.mrf.mxu1  ;;  %v3727_v6 = vadd.f32 %v7674_v0, %v3638_v3  ;;  %v3640_v15 = vadd.f32 %v7675_v8, %v3551_v48 }
 0x536   : > { %v3984_v63 = vadd.f32 %v3983_v52, %v3895_v27 }
 0x538   : > { %v4073_v54 = vadd.f32 %v4072_v44, %v3984_v63  ;;  %v3901_v38 = vpop.f32.mrf.mxu3 }
 0x539   : > { %v3807_v33 = vpop.f32.mrf.mxu2 }
 0x53a   : > { %v4113_v20 = vmax.f32 %v4073_v54, 0.0  ;;  %v3808_v49 = vadd.f32 %v3807_v33, %v3719_v7  ;;  %v3995_v54 = vpop.f32.mrf.mxu0 }
 0x53c   : > { %4145 = vst [vmem:[%s7181_s11 + $0xd0] sm:$0xff] %v4113_v20  ;;  %v3897_v25 = vadd.f32 %v3896_v10, %v3808_v49  ;;  %v4082_v53 = vpop.f32.mrf.mxu1  ;;  %v3729_v10 = vadd.f32 %v7676_v26, %v3640_v15 }
 0x53e   : > { %v3986_v14 = vadd.f32 %v3985_v40, %v3897_v25 }
 0x540   : > { %v4075_v28 = vadd.f32 %v4074_v56, %v3986_v14  ;;  %v3904_v44 = vpop.f32.mrf.mxu3 }
 0x541   : > { %v3810_v17 = vpop.f32.mrf.mxu2 }
 0x542   : > { %v4114_v22 = vmax.f32 %v4075_v28, 0.0  ;;  %v3811_v16 = vadd.f32 %v3810_v17, %v3722_v61 }
 0x544   : > { %4146 = vst [vmem:[%s7181_s11 + $0xd8] sm:$0xff] %v4114_v22  ;;  %v3900_v4 = vadd.f32 %v3899_v51, %v3811_v16  ;;  %v4084_v7 = vpop.f32.mrf.mxu1 }
 0x546   : > { %v3989_v2 = vadd.f32 %v3988_v42, %v3900_v4 }
 0x548   : > { %v4078_v58 = vadd.f32 %v4077_v32, %v3989_v2  ;;  %v3906_v9 = vpop.f32.mrf.mxu3 }
 0x549   : > { %v3812_v57 = vpop.f32.mrf.mxu2 }
 0x54a   : > { %v4115_v60 = vmax.f32 %v4078_v58, 0.0  ;;  %v3813_v45 = vadd.f32 %v3812_v57, %v3724_v35 }
 0x54c   : > { %4147 = vst [vmem:[%s7181_s11 + $0xe0] sm:$0xff] %v4115_v60  ;;  %v3902_v24 = vadd.f32 %v3901_v38, %v3813_v45 }
 0x54e   : > { %v3991_v39 = vadd.f32 %v3990_v50, %v3902_v24 }
 0x550   : > { %v4080_v52 = vadd.f32 %v4079_v62, %v3991_v39 }
 0x551   : > { %v3815_v46 = vpop.f32.mrf.mxu2 }
 0x552   : > { %v4116_v41 = vmax.f32 %v4080_v52, 0.0  ;;  %v3816_v21 = vadd.f32 %v3815_v46, %v3727_v6 }
 0x554   : > { %4148 = vst [vmem:[%s7181_s11 + $0xe8] sm:$0xff] %v4116_v41  ;;  %v3905_v13 = vadd.f32 %v3904_v44, %v3816_v21 }
 0x556   : > { %v3994_v27 = vadd.f32 %v3993_v11, %v3905_v13 }
 0x558   : > { %v4083_v1 = vadd.f32 %v4082_v53, %v3994_v27 }
 0x559   : > { %v3817_v5 = vpop.f32.mrf.mxu2 }
 0x55a   : > { %v4117_v63 = vmax.f32 %v4083_v1, 0.0  ;;  %v3818_v40 = vadd.f32 %v3817_v5, %v3729_v10 }
 0x55c   : > { %4149 = vst [vmem:[%s7181_s11 + $0xf0] sm:$0xff] %v4117_v63  ;;  %v3907_v55 = vadd.f32 %v3906_v9, %v3818_v40 }
 0x55e   : > { %v3996_v43 = vadd.f32 %v3995_v54, %v3907_v55 }
 0x560   : > { %v4085_v56 = vadd.f32 %v4084_v7, %v3996_v43 }
 0x562   : > { %v4118_v33 = vmax.f32 %v4085_v56, 0.0 }
 0x564   : > { %4150 = vst [vmem:[%s7181_s11 + $0xf8] sm:$0xff] %v4118_v33 }
 0x565 PF: > { %s15_s18 = sadd.s32 1, %s5297_s18  }
 0x566   : > { %p12_p4 = scmp.ge.s32.totalorder %s15_s18, 4  }
 0x568   :  { %14 = sbr.rel (!%p12_p4) target bundleno = 1 (0x1), region = 74 }

</bundles_post_ra>
